<compile_context>
chip_gen: v6e
topology: v6e:2x2x1
jax: 0.10.0
libtpu: 0.0.40
codegen_flags: <defaults>
</compile_context>

<pallas_src>
import functools

import jax
import jax.numpy as jnp
from jax.experimental import pallas as pl
from jax.experimental.pallas import tpu as pltpu

INPUT_SIZE = 32 * 32          # 1024
OUTPUT_SIZE = 3
N_LAYERS = 3
BN_EPS = 1e-5

H1 = INPUT_SIZE // 2          # 512
H2 = INPUT_SIZE // 4          # 256
PADDED_OUT = 128              # lane-dense padded output width (first 3 cols are real)

_MIB = 1024 * 1024


def _vmem_capacity_bytes():
    """Generation-aware VMEM capacity (v5e/v6e: 128 MiB, v7x: 64 MiB)."""
    try:
        info = pltpu.get_tpu_info()
        cap = int(getattr(info, "vmem_capacity_bytes", 0) or 0)
        if cap > 0:
            return cap
    except Exception:
        pass
    return 64 * _MIB   # v7x floor -- safe default for every generation


# ---------------------------------------------------------------------------
# Primary path: whole batch VMEM-resident, single pass.
# ---------------------------------------------------------------------------
def fcnn_resident_kernel(x_ref,
                         w1_ref, b1_ref, g1_ref, be1_ref,
                         w2_ref, b2_ref, g2_ref, be2_ref,
                         w3_ref, b3_ref,
                         o_ref):
    def batchnorm(h, g_ref, be_ref):
        # Exact PyTorch training-mode BN (biased variance, two-pass / centered).
        mu = jnp.mean(h, axis=0, keepdims=True)
        d = h - mu
        var = jnp.mean(d * d, axis=0, keepdims=True)
        scale = g_ref[...] * jax.lax.rsqrt(var + BN_EPS)
        shift = be_ref[...] - mu * scale
        return h * scale + shift

    x = x_ref[...].astype(jnp.bfloat16)                      # f32 HBM read, free VPU cast
    h1 = jnp.maximum(
        jnp.dot(x, w1_ref[...], preferred_element_type=jnp.float32) + b1_ref[...], 0.0)
    h1n = batchnorm(h1, g1_ref, be1_ref).astype(jnp.bfloat16)
    h2 = jnp.maximum(
        jnp.dot(h1n, w2_ref[...], preferred_element_type=jnp.float32) + b2_ref[...], 0.0)
    h2n = batchnorm(h2, g2_ref, be2_ref).astype(jnp.bfloat16)
    o_ref[...] = jnp.dot(h2n, w3_ref[...],
                         preferred_element_type=jnp.float32) + b3_ref[...]


def _forward_resident(x, w1b, b1, g1, be1, w2b, b2, g2, be2, w3b, b3p,
                      *, batch, cap, need):
    full = lambda i: (0, 0)

    weight_bytes = (w1b.size + w2b.size + w3b.size) * 2 + \
        (b1.size + g1.size + be1.size + b2.size + g2.size + be2.size + b3p.size) * 4
    cost = pl.CostEstimate(
        flops=int(2 * batch * (INPUT_SIZE * H1 + H1 * H2 + H2 * PADDED_OUT)),
        transcendentals=int(2 * (H1 + H2)),
        bytes_accessed=int(x.size * 4 + weight_bytes + batch * PADDED_OUT * 4),
    )

    out = pl.pallas_call(
        fcnn_resident_kernel,
        out_shape=jax.ShapeDtypeStruct((batch, PADDED_OUT), jnp.float32),
        grid=(1,),
        in_specs=[
            pl.BlockSpec((batch, INPUT_SIZE), full),     # x (f32)
            pl.BlockSpec((INPUT_SIZE, H1), full),        # w1 (bf16)
            pl.BlockSpec((1, H1), full),                 # b1
            pl.BlockSpec((1, H1), full),                 # gamma1
            pl.BlockSpec((1, H1), full),                 # beta1
            pl.BlockSpec((H1, H2), full),                # w2 (bf16)
            pl.BlockSpec((1, H2), full),                 # b2
            pl.BlockSpec((1, H2), full),                 # gamma2
            pl.BlockSpec((1, H2), full),                 # beta2
            pl.BlockSpec((H2, PADDED_OUT), full),        # w3 (bf16, padded)
            pl.BlockSpec((1, PADDED_OUT), full),         # b3 (padded)
        ],
        out_specs=pl.BlockSpec((batch, PADDED_OUT), full),
        compiler_params=pltpu.CompilerParams(
            dimension_semantics=("arbitrary",),
            vmem_limit_bytes=int(min(0.9 * cap, max(need, 32 * _MIB))),
        ),
        cost_estimate=cost,
    )(x, w1b, b1, g1, be1, w2b, b2, g2, be2, w3b, b3p)

    return out[:, :OUTPUT_SIZE]


# ---------------------------------------------------------------------------
# Fallback path: batch-tiled 3-phase grid (huge batches only).
# ---------------------------------------------------------------------------
def fcnn_tiled_kernel(x_ref,
                      w1_ref, b1_ref, g1_ref, be1_ref,
                      w2_ref, b2_ref, g2_ref, be2_ref,
                      w3_ref, b3_ref,
                      o_ref,
                      s1_ref, q1_ref, s2_ref, q2_ref,
                      sc1_ref, sh1_ref, sc2_ref, sh2_ref,
                      *, batch_size, tile_rows, padded):
    """grid = (phase, batch_tile); both axes sequential ('arbitrary')."""
    phase = pl.program_id(0)
    tile = pl.program_id(1)
    inv_b = 1.0 / float(batch_size)

    if padded:
        row = tile * tile_rows + jax.lax.broadcasted_iota(jnp.int32, (tile_rows, 1), 0)
        valid = (row < batch_size).astype(jnp.float32)
    else:
        valid = None

    def mask(h):
        return h if valid is None else h * valid

    def layer1():
        x = x_ref[...].astype(jnp.bfloat16)
        h = jnp.dot(x, w1_ref[...], preferred_element_type=jnp.float32)
        return jnp.maximum(h + b1_ref[...], 0.0)

    def layer2(h1n):
        h = jnp.dot(h1n.astype(jnp.bfloat16), w2_ref[...],
                    preferred_element_type=jnp.float32)
        return jnp.maximum(h + b2_ref[...], 0.0)

    def finalize_scale_shift(s_ref, q_ref, g_ref, be_ref, sc_ref, sh_ref):
        mu = s_ref[...] * inv_b
        # TODO(synk): one-pass variance can cancel for very large batches; switch to a
        # Chan-style centered per-tile combine if this path ever sees batch >> 1e4.
        var = q_ref[...] * inv_b - mu * mu              # biased variance (PyTorch BN)
        sc = g_ref[...] * jax.lax.rsqrt(var + BN_EPS)
        sc_ref[...] = sc
        sh_ref[...] = be_ref[...] - mu * sc

    @pl.when((phase == 0) & (tile == 0))
    def _init_stats():
        s1_ref[...] = jnp.zeros_like(s1_ref)
        q1_ref[...] = jnp.zeros_like(q1_ref)
        s2_ref[...] = jnp.zeros_like(s2_ref)
        q2_ref[...] = jnp.zeros_like(q2_ref)

    @pl.when(phase == 0)
    def _bn1_stats():
        h1 = mask(layer1())
        s1_ref[...] += jnp.sum(h1, axis=0, keepdims=True)
        q1_ref[...] += jnp.sum(h1 * h1, axis=0, keepdims=True)

    @pl.when((phase == 1) & (tile == 0))
    def _bn1_finalize():
        finalize_scale_shift(s1_ref, q1_ref, g1_ref, be1_ref, sc1_ref, sh1_ref)

    @pl.when(phase == 1)
    def _bn2_stats():
        # TODO(synk): read an HBM-stashed bf16 h1 here instead of recomputing layer1.
        h1n = layer1() * sc1_ref[...] + sh1_ref[...]
        h2 = mask(layer2(h1n))
        s2_ref[...] += jnp.sum(h2, axis=0, keepdims=True)
        q2_ref[...] += jnp.sum(h2 * h2, axis=0, keepdims=True)

    @pl.when((phase == 2) & (tile == 0))
    def _bn2_finalize():
        finalize_scale_shift(s2_ref, q2_ref, g2_ref, be2_ref, sc2_ref, sh2_ref)

    @pl.when(phase == 2)
    def _final():
        h1n = layer1() * sc1_ref[...] + sh1_ref[...]
        h2n = layer2(h1n) * sc2_ref[...] + sh2_ref[...]
        o_ref[...] = jnp.dot(h2n.astype(jnp.bfloat16), w3_ref[...],
                             preferred_element_type=jnp.float32) + b3_ref[...]


def _forward_tiled(x, w1b, b1, g1, be1, w2b, b2, g2, be2, w3b, b3p,
                   *, batch, cap, tile_batch):
    if tile_batch is None:
        tile_batch = 1024     # large tiles amortize per-step overhead; fits v7x's 64 MiB
    tb = max(8, min(tile_batch, batch))
    tb = max(8, (tb // 8) * 8)                      # keep tiles sublane-aligned
    padded_batch = -(-batch // tb) * tb
    padded = padded_batch != batch
    xp = x
    if padded:
        xp = jnp.zeros((padded_batch, INPUT_SIZE), x.dtype).at[:batch].set(x)
    num_tiles = padded_batch // tb

    kernel = functools.partial(fcnn_tiled_kernel,
                               batch_size=batch, tile_rows=tb, padded=padded)

    resident = lambda p, t: (0, 0)                  # weights/params stay VMEM-resident
    x_tiled = lambda p, t: (t, 0)                   # x follows the batch-tile axis
    # Output window only advances during phase 2 (p // 2 == 1); during phases 0/1 the
    # block index stays at 0, so no garbage tile is ever written back to HBM.
    out_map = lambda p, t: (t * (p // 2), 0)

    weight_bytes = (w1b.size + w2b.size + w3b.size) * 2 + \
        (b1.size + g1.size + be1.size + b2.size + g2.size + be2.size + b3p.size) * 4
    cost = pl.CostEstimate(
        flops=int(2 * padded_batch *
                  (3 * INPUT_SIZE * H1 + 2 * H1 * H2 + H2 * PADDED_OUT)),
        transcendentals=int(2 * (H1 + H2)),
        bytes_accessed=int(3 * xp.size * 4 + weight_bytes + padded_batch * PADDED_OUT * 4),
    )

    out = pl.pallas_call(
        kernel,
        out_shape=jax.ShapeDtypeStruct((padded_batch, PADDED_OUT), jnp.float32),
        grid_spec=pltpu.PrefetchScalarGridSpec(
            num_scalar_prefetch=0,
            grid=(3, num_tiles),                    # (phase, batch tile)
            in_specs=[
                pl.BlockSpec((tb, INPUT_SIZE), x_tiled),     # x (f32)
                pl.BlockSpec((INPUT_SIZE, H1), resident),    # w1 (bf16)
                pl.BlockSpec((1, H1), resident),             # b1
                pl.BlockSpec((1, H1), resident),             # gamma1
                pl.BlockSpec((1, H1), resident),             # beta1
                pl.BlockSpec((H1, H2), resident),            # w2 (bf16)
                pl.BlockSpec((1, H2), resident),             # b2
                pl.BlockSpec((1, H2), resident),             # gamma2
                pl.BlockSpec((1, H2), resident),             # beta2
                pl.BlockSpec((H2, PADDED_OUT), resident),    # w3 (bf16, padded)
                pl.BlockSpec((1, PADDED_OUT), resident),     # b3 (padded)
            ],
            out_specs=pl.BlockSpec((tb, PADDED_OUT), out_map),
            scratch_shapes=[
                pltpu.VMEM((1, H1), jnp.float32),   # sum(h1)
                pltpu.VMEM((1, H1), jnp.float32),   # sum(h1^2)
                pltpu.VMEM((1, H2), jnp.float32),   # sum(h2)
                pltpu.VMEM((1, H2), jnp.float32),   # sum(h2^2)
                pltpu.VMEM((1, H1), jnp.float32),   # BN1 scale
                pltpu.VMEM((1, H1), jnp.float32),   # BN1 shift
                pltpu.VMEM((1, H2), jnp.float32),   # BN2 scale
                pltpu.VMEM((1, H2), jnp.float32),   # BN2 shift
            ],
        ),
        compiler_params=pltpu.CompilerParams(
            dimension_semantics=("arbitrary", "arbitrary"),   # both axes carry BN state
            vmem_limit_bytes=int(min(0.75 * cap, 64 * _MIB)),
        ),
        cost_estimate=cost,
    )(xp, w1b, b1, g1, be1, w2b, b2, g2, be2, w3b, b3p)

    return out[:batch, :OUTPUT_SIZE]


# ---------------------------------------------------------------------------
# Wrapper
# ---------------------------------------------------------------------------
def fcnn_forward(x, params, *, tile_batch=None, force_tiled=False):
    (w1, b1, g1, be1, w2, b2, g2, be2, w3, b3) = params
    batch = x.shape[0]

    # Pad the final Linear to 128 output lanes (unmasked stores, full MXU columns).
    w3p = jnp.zeros((H2, PADDED_OUT), jnp.float32).at[:, :OUTPUT_SIZE].set(w3)
    b3p = jnp.zeros((1, PADDED_OUT), jnp.float32).at[:, :OUTPUT_SIZE].set(b3)

    # bf16 MXU weights; biases / BN affine params stay f32 (v5e has no bf16 VPU path).
    w1b = w1.astype(jnp.bfloat16)
    w2b = w2.astype(jnp.bfloat16)
    w3b = w3p.astype(jnp.bfloat16)

    cap = _vmem_capacity_bytes()
    # ~16 KB/row of live activations (x f32/bf16, h1, h2, casts, output) + ~4 MB fixed.
    resident_need = batch * 16 * 1024 + 4 * _MIB
    use_resident = (not force_tiled) and (resident_need <= int(0.8 * cap))

    if use_resident:
        return _forward_resident(x, w1b, b1, g1, be1, w2b, b2, g2, be2, w3b, b3p,
                                 batch=batch, cap=cap, need=resident_need)
    return _forward_tiled(x, w1b, b1, g1, be1, w2b, b2, g2, be2, w3b, b3p,
                          batch=batch, cap=cap, tile_batch=tile_batch)


# ---------------------------------------------------------------------------
# Params / references / test
# ---------------------------------------------------------------------------
def init_params(key):
    """nn.Linear default init (U[-1/sqrt(fan_in), +1/sqrt(fan_in)]), BN gamma=1/beta=0.
    Linear weights stored pre-transposed as (in, out)."""
    dims = []
    for i in range(N_LAYERS):
        d_in = INPUT_SIZE // (2 ** i)
        d_out = INPUT_SIZE // (2 ** (i + 1)) if i != N_LAYERS - 1 else OUTPUT_SIZE
        dims.append((d_in, d_out))

    keys = jax.random.split(key, 2 * N_LAYERS)
    params = []
    for i, (d_in, d_out) in enumerate(dims):
        bound = 1.0 / jnp.sqrt(d_in)
        w = jax.random.uniform(keys[2 * i], (d_in, d_out), jnp.float32, -bound, bound)
        b = jax.random.uniform(keys[2 * i + 1], (1, d_out), jnp.float32, -bound, bound)
        params.append(w)
        params.append(b)
        if i != N_LAYERS - 1:
            params.append(jnp.ones((1, d_out), jnp.float32))   # gamma
            params.append(jnp.zeros((1, d_out), jnp.float32))  # beta
    return tuple(params)


def fcnn_reference_f32(x, params):
    """Pure-f32 reference with PyTorch training-mode BN semantics."""
    (w1, b1, g1, be1, w2, b2, g2, be2, w3, b3) = params

    def block(h, w, b, g, be):
        h = jnp.maximum(h @ w + b, 0.0)
        mu = jnp.mean(h, axis=0, keepdims=True)
        var = jnp.mean((h - mu) ** 2, axis=0, keepdims=True)
        return (h - mu) * jax.lax.rsqrt(var + BN_EPS) * g + be

    h = block(x, w1, b1, g1, be1)
    h = block(h, w2, b2, g2, be2)
    return h @ w3 + b3


def fcnn_reference_matched(x, params):
    """Same math, but matmul operands rounded to bf16 exactly like the kernels."""
    (w1, b1, g1, be1, w2, b2, g2, be2, w3, b3) = params
    bf = lambda v: v.astype(jnp.bfloat16)

    def block(h, w, b, g, be):
        h = jnp.dot(bf(h), bf(w), preferred_element_type=jnp.float32) + b
        h = jnp.maximum(h, 0.0)
        mu = jnp.mean(h, axis=0, keepdims=True)
        var = jnp.mean((h - mu) ** 2, axis=0, keepdims=True)
        return (h - mu) * jax.lax.rsqrt(var + BN_EPS) * g + be

    h = block(x, w1, b1, g1, be1)
    h = block(h, w2, b2, g2, be2)
    return jnp.dot(bf(h), bf(w3), preferred_element_type=jnp.float32) + b3


if __name__ == "__main__":
    key = jax.random.PRNGKey(0)
    pkey, xkey = jax.random.split(key)
    params = init_params(pkey)

    batch = 64   # BatchNorm1d (training mode) needs batch > 1
    x = jax.random.normal(xkey, (batch, INPUT_SIZE), jnp.float32)

    ref_matched = fcnn_reference_matched(x, params)   # bf16 matmul inputs, like the kernels
    ref_f32 = fcnn_reference_f32(x, params)           # pure-f32 module semantics

    # Primary path: whole-batch VMEM-resident single pass.
    out = jax.block_until_ready(fcnn_forward(x, params))
    assert out.shape == (batch, OUTPUT_SIZE)
    assert jnp.allclose(out, ref_matched, atol=2e-3, rtol=2e-3), \
        "resident kernel mismatch vs matched-precision ref"
    assert jnp.allclose(out, ref_f32, atol=5e-2, rtol=5e-2), \
        "resident kernel mismatch vs f32 reference"

    # Fallback path (forced): 2 batch tiles exercise the cross-tile full-batch BN stats.
    out_t = jax.block_until_ready(fcnn_forward(x, params, tile_batch=32, force_tiled=True))
    assert out_t.shape == (batch, OUTPUT_SIZE)
    assert jnp.allclose(out_t, ref_matched, atol=2e-3, rtol=2e-3), \
        "tiled kernel mismatch vs matched-precision ref"
    assert jnp.allclose(out_t, ref_f32, atol=5e-2, rtol=5e-2), \
        "tiled kernel mismatch vs f32 reference"

    print("KERNEL_OK")
</pallas_src>

<mosaic_0001>
module attributes {stable_mosaic.version = 11 : i64} {
  func.func @fcnn_resident_kernel(%arg0: i32, %arg1: memref<64x1024xf32, #tpu.memory_space<vmem>>, %arg2: memref<1024x512xbf16, #tpu.memory_space<vmem>>, %arg3: memref<1x512xf32, #tpu.memory_space<vmem>>, %arg4: memref<1x512xf32, #tpu.memory_space<vmem>>, %arg5: memref<1x512xf32, #tpu.memory_space<vmem>>, %arg6: memref<512x256xbf16, #tpu.memory_space<vmem>>, %arg7: memref<1x256xf32, #tpu.memory_space<vmem>>, %arg8: memref<1x256xf32, #tpu.memory_space<vmem>>, %arg9: memref<1x256xf32, #tpu.memory_space<vmem>>, %arg10: memref<256x128xbf16, #tpu.memory_space<vmem>>, %arg11: memref<1x128xf32, #tpu.memory_space<vmem>>, %arg12: memref<64x128xf32, #tpu.memory_space<vmem>>) attributes {dimension_semantics = [#tpu.dimension_semantics<arbitrary>], iteration_bounds = array<i64: 1>, scalar_prefetch = 0 : i64, scratch_operands = 0 : i64, tpu.core_type = #tpu.core_type<tc>, window_params = [{pipeline_mode = #tpu.pipeline_mode<synchronous>, transform_indices = @transform_0, window_bounds = array<i64: 64, 1024>}, {pipeline_mode = #tpu.pipeline_mode<synchronous>, transform_indices = @transform_1, window_bounds = array<i64: 1024, 512>}, {pipeline_mode = #tpu.pipeline_mode<synchronous>, transform_indices = @transform_2, window_bounds = array<i64: 1, 512>}, {pipeline_mode = #tpu.pipeline_mode<synchronous>, transform_indices = @transform_3, window_bounds = array<i64: 1, 512>}, {pipeline_mode = #tpu.pipeline_mode<synchronous>, transform_indices = @transform_4, window_bounds = array<i64: 1, 512>}, {pipeline_mode = #tpu.pipeline_mode<synchronous>, transform_indices = @transform_5, window_bounds = array<i64: 512, 256>}, {pipeline_mode = #tpu.pipeline_mode<synchronous>, transform_indices = @transform_6, window_bounds = array<i64: 1, 256>}, {pipeline_mode = #tpu.pipeline_mode<synchronous>, transform_indices = @transform_7, window_bounds = array<i64: 1, 256>}, {pipeline_mode = #tpu.pipeline_mode<synchronous>, transform_indices = @transform_8, window_bounds = array<i64: 1, 256>}, {pipeline_mode = #tpu.pipeline_mode<synchronous>, transform_indices = @transform_9, window_bounds = array<i64: 256, 128>}, {pipeline_mode = #tpu.pipeline_mode<synchronous>, transform_indices = @transform_10, window_bounds = array<i64: 1, 128>}, {pipeline_mode = #tpu.pipeline_mode<synchronous>, transform_indices = @transform_11, window_bounds = array<i64: 64, 128>}]} {
    %c0 = arith.constant 0 : index
    %c0_0 = arith.constant 0 : index
    %0 = vector.load %arg1[%c0, %c0_0] : memref<64x1024xf32, #tpu.memory_space<vmem>>, vector<64x1024xf32>
    %1 = arith.truncf %0 : vector<64x1024xf32> to vector<64x1024xbf16>
    %c0_1 = arith.constant 0 : index
    %c0_2 = arith.constant 0 : index
    %2 = vector.load %arg2[%c0_1, %c0_2] : memref<1024x512xbf16, #tpu.memory_space<vmem>>, vector<1024x512xbf16>
    %cst = arith.constant dense<0.000000e+00> : vector<64x512xf32>
    %3 = tpu.matmul %1, %2, %cst {dimension_numbers = #tpu.dot_dimension_numbers<[1], [0], [0], [1], [0, 0, 1, 1], [], []>} : vector<64x1024xbf16>, vector<1024x512xbf16>, vector<64x512xf32> -> vector<64x512xf32>
    %c0_3 = arith.constant 0 : index
    %c0_4 = arith.constant 0 : index
    %4 = vector.load %arg3[%c0_3, %c0_4] : memref<1x512xf32, #tpu.memory_space<vmem>>, vector<1x512xf32>
    %5 = vector.broadcast %4 : vector<1x512xf32> to vector<64x512xf32>
    %6 = arith.addf %3, %5 : vector<64x512xf32>
    %cst_5 = arith.constant 0.000000e+00 : f32
    %7 = vector.broadcast %cst_5 : f32 to vector<64x512xf32>
    %8 = arith.maximumf %6, %7 : vector<64x512xf32>
    %cst_6 = arith.constant dense<0.000000e+00> : vector<512xf32>
    %9 = vector.multi_reduction <add>, %8, %cst_6 [0] : vector<64x512xf32> to vector<512xf32>
    %10 = vector.shape_cast %9 : vector<512xf32> to vector<1x512xf32>
    %cst_7 = arith.constant 6.400000e+01 : f32
    %11 = vector.broadcast %cst_7 : f32 to vector<1x512xf32>
    %12 = arith.divf %10, %11 : vector<1x512xf32>
    %13 = vector.broadcast %12 : vector<1x512xf32> to vector<64x512xf32>
    %14 = arith.subf %8, %13 : vector<64x512xf32>
    %15 = arith.mulf %14, %14 : vector<64x512xf32>
    %cst_8 = arith.constant dense<0.000000e+00> : vector<512xf32>
    %16 = vector.multi_reduction <add>, %15, %cst_8 [0] : vector<64x512xf32> to vector<512xf32>
    %17 = vector.shape_cast %16 : vector<512xf32> to vector<1x512xf32>
    %cst_9 = arith.constant 6.400000e+01 : f32
    %18 = vector.broadcast %cst_9 : f32 to vector<1x512xf32>
    %19 = arith.divf %17, %18 : vector<1x512xf32>
    %c0_10 = arith.constant 0 : index
    %c0_11 = arith.constant 0 : index
    %20 = vector.load %arg4[%c0_10, %c0_11] : memref<1x512xf32, #tpu.memory_space<vmem>>, vector<1x512xf32>
    %cst_12 = arith.constant 9.99999974E-6 : f32
    %21 = vector.broadcast %cst_12 : f32 to vector<1x512xf32>
    %22 = arith.addf %19, %21 : vector<1x512xf32>
    %23 = math.rsqrt %22 : vector<1x512xf32>
    %24 = arith.mulf %20, %23 : vector<1x512xf32>
    %c0_13 = arith.constant 0 : index
    %c0_14 = arith.constant 0 : index
    %25 = vector.load %arg5[%c0_13, %c0_14] : memref<1x512xf32, #tpu.memory_space<vmem>>, vector<1x512xf32>
    %26 = arith.mulf %12, %24 : vector<1x512xf32>
    %27 = arith.subf %25, %26 : vector<1x512xf32>
    %28 = vector.broadcast %24 : vector<1x512xf32> to vector<64x512xf32>
    %29 = arith.mulf %8, %28 : vector<64x512xf32>
    %30 = vector.broadcast %27 : vector<1x512xf32> to vector<64x512xf32>
    %31 = arith.addf %29, %30 : vector<64x512xf32>
    %32 = arith.truncf %31 : vector<64x512xf32> to vector<64x512xbf16>
    %c0_15 = arith.constant 0 : index
    %c0_16 = arith.constant 0 : index
    %33 = vector.load %arg6[%c0_15, %c0_16] : memref<512x256xbf16, #tpu.memory_space<vmem>>, vector<512x256xbf16>
    %cst_17 = arith.constant dense<0.000000e+00> : vector<64x256xf32>
    %34 = tpu.matmul %32, %33, %cst_17 {dimension_numbers = #tpu.dot_dimension_numbers<[1], [0], [0], [1], [0, 0, 1, 1], [], []>} : vector<64x512xbf16>, vector<512x256xbf16>, vector<64x256xf32> -> vector<64x256xf32>
    %c0_18 = arith.constant 0 : index
    %c0_19 = arith.constant 0 : index
    %35 = vector.load %arg7[%c0_18, %c0_19] : memref<1x256xf32, #tpu.memory_space<vmem>>, vector<1x256xf32>
    %36 = vector.broadcast %35 : vector<1x256xf32> to vector<64x256xf32>
    %37 = arith.addf %34, %36 : vector<64x256xf32>
    %cst_20 = arith.constant 0.000000e+00 : f32
    %38 = vector.broadcast %cst_20 : f32 to vector<64x256xf32>
    %39 = arith.maximumf %37, %38 : vector<64x256xf32>
    %cst_21 = arith.constant dense<0.000000e+00> : vector<256xf32>
    %40 = vector.multi_reduction <add>, %39, %cst_21 [0] : vector<64x256xf32> to vector<256xf32>
    %41 = vector.shape_cast %40 : vector<256xf32> to vector<1x256xf32>
    %cst_22 = arith.constant 6.400000e+01 : f32
    %42 = vector.broadcast %cst_22 : f32 to vector<1x256xf32>
    %43 = arith.divf %41, %42 : vector<1x256xf32>
    %44 = vector.broadcast %43 : vector<1x256xf32> to vector<64x256xf32>
    %45 = arith.subf %39, %44 : vector<64x256xf32>
    %46 = arith.mulf %45, %45 : vector<64x256xf32>
    %cst_23 = arith.constant dense<0.000000e+00> : vector<256xf32>
    %47 = vector.multi_reduction <add>, %46, %cst_23 [0] : vector<64x256xf32> to vector<256xf32>
    %48 = vector.shape_cast %47 : vector<256xf32> to vector<1x256xf32>
    %cst_24 = arith.constant 6.400000e+01 : f32
    %49 = vector.broadcast %cst_24 : f32 to vector<1x256xf32>
    %50 = arith.divf %48, %49 : vector<1x256xf32>
    %c0_25 = arith.constant 0 : index
    %c0_26 = arith.constant 0 : index
    %51 = vector.load %arg8[%c0_25, %c0_26] : memref<1x256xf32, #tpu.memory_space<vmem>>, vector<1x256xf32>
    %cst_27 = arith.constant 9.99999974E-6 : f32
    %52 = vector.broadcast %cst_27 : f32 to vector<1x256xf32>
    %53 = arith.addf %50, %52 : vector<1x256xf32>
    %54 = math.rsqrt %53 : vector<1x256xf32>
    %55 = arith.mulf %51, %54 : vector<1x256xf32>
    %c0_28 = arith.constant 0 : index
    %c0_29 = arith.constant 0 : index
    %56 = vector.load %arg9[%c0_28, %c0_29] : memref<1x256xf32, #tpu.memory_space<vmem>>, vector<1x256xf32>
    %57 = arith.mulf %43, %55 : vector<1x256xf32>
    %58 = arith.subf %56, %57 : vector<1x256xf32>
    %59 = vector.broadcast %55 : vector<1x256xf32> to vector<64x256xf32>
    %60 = arith.mulf %39, %59 : vector<64x256xf32>
    %61 = vector.broadcast %58 : vector<1x256xf32> to vector<64x256xf32>
    %62 = arith.addf %60, %61 : vector<64x256xf32>
    %63 = arith.truncf %62 : vector<64x256xf32> to vector<64x256xbf16>
    %c0_30 = arith.constant 0 : index
    %c0_31 = arith.constant 0 : index
    %64 = vector.load %arg10[%c0_30, %c0_31] : memref<256x128xbf16, #tpu.memory_space<vmem>>, vector<256x128xbf16>
    %cst_32 = arith.constant dense<0.000000e+00> : vector<64x128xf32>
    %65 = tpu.matmul %63, %64, %cst_32 {dimension_numbers = #tpu.dot_dimension_numbers<[1], [0], [0], [1], [0, 0, 1, 1], [], []>} : vector<64x256xbf16>, vector<256x128xbf16>, vector<64x128xf32> -> vector<64x128xf32>
    %c0_33 = arith.constant 0 : index
    %c0_34 = arith.constant 0 : index
    %66 = vector.load %arg11[%c0_33, %c0_34] : memref<1x128xf32, #tpu.memory_space<vmem>>, vector<1x128xf32>
    %67 = vector.broadcast %66 : vector<1x128xf32> to vector<64x128xf32>
    %68 = arith.addf %65, %67 : vector<64x128xf32>
    %c0_35 = arith.constant 0 : index
    %c0_36 = arith.constant 0 : index
    %69 = vector.load %arg12[%c0_35, %c0_36] : memref<64x128xf32, #tpu.memory_space<vmem>>, vector<64x128xf32>
    tpu.vector_store %arg12[%c0_35, %c0_36], %68 {strides = array<i32>} : memref<64x128xf32, #tpu.memory_space<vmem>>, vector<64x128xf32>,
    return
  }
  func.func @transform_0(%arg0: i32) -> (i32, i32) {
    %c0_i32 = arith.constant 0 : i32
    %c0_i32_0 = arith.constant 0 : i32
    %c0_i32_1 = arith.constant 0 : i32
    return %c0_i32, %c0_i32_0 : i32, i32
  }
  func.func @transform_1(%arg0: i32) -> (i32, i32) {
    %c0_i32 = arith.constant 0 : i32
    %c0_i32_0 = arith.constant 0 : i32
    %c0_i32_1 = arith.constant 0 : i32
    return %c0_i32, %c0_i32_0 : i32, i32
  }
  func.func @transform_2(%arg0: i32) -> (i32, i32) {
    %c0_i32 = arith.constant 0 : i32
    %c0_i32_0 = arith.constant 0 : i32
    %c0_i32_1 = arith.constant 0 : i32
    return %c0_i32, %c0_i32_0 : i32, i32
  }
  func.func @transform_3(%arg0: i32) -> (i32, i32) {
    %c0_i32 = arith.constant 0 : i32
    %c0_i32_0 = arith.constant 0 : i32
    %c0_i32_1 = arith.constant 0 : i32
    return %c0_i32, %c0_i32_0 : i32, i32
  }
  func.func @transform_4(%arg0: i32) -> (i32, i32) {
    %c0_i32 = arith.constant 0 : i32
    %c0_i32_0 = arith.constant 0 : i32
    %c0_i32_1 = arith.constant 0 : i32
    return %c0_i32, %c0_i32_0 : i32, i32
  }
  func.func @transform_5(%arg0: i32) -> (i32, i32) {
    %c0_i32 = arith.constant 0 : i32
    %c0_i32_0 = arith.constant 0 : i32
    %c0_i32_1 = arith.constant 0 : i32
    return %c0_i32, %c0_i32_0 : i32, i32
  }
  func.func @transform_6(%arg0: i32) -> (i32, i32) {
    %c0_i32 = arith.constant 0 : i32
    %c0_i32_0 = arith.constant 0 : i32
    %c0_i32_1 = arith.constant 0 : i32
    return %c0_i32, %c0_i32_0 : i32, i32
  }
  func.func @transform_7(%arg0: i32) -> (i32, i32) {
    %c0_i32 = arith.constant 0 : i32
    %c0_i32_0 = arith.constant 0 : i32
    %c0_i32_1 = arith.constant 0 : i32
    return %c0_i32, %c0_i32_0 : i32, i32
  }
  func.func @transform_8(%arg0: i32) -> (i32, i32) {
    %c0_i32 = arith.constant 0 : i32
    %c0_i32_0 = arith.constant 0 : i32
    %c0_i32_1 = arith.constant 0 : i32
    return %c0_i32, %c0_i32_0 : i32, i32
  }
  func.func @transform_9(%arg0: i32) -> (i32, i32) {
    %c0_i32 = arith.constant 0 : i32
    %c0_i32_0 = arith.constant 0 : i32
    %c0_i32_1 = arith.constant 0 : i32
    return %c0_i32, %c0_i32_0 : i32, i32
  }
  func.func @transform_10(%arg0: i32) -> (i32, i32) {
    %c0_i32 = arith.constant 0 : i32
    %c0_i32_0 = arith.constant 0 : i32
    %c0_i32_1 = arith.constant 0 : i32
    return %c0_i32, %c0_i32_0 : i32, i32
  }
  func.func @transform_11(%arg0: i32) -> (i32, i32) {
    %c0_i32 = arith.constant 0 : i32
    %c0_i32_0 = arith.constant 0 : i32
    %c0_i32_1 = arith.constant 0 : i32
    return %c0_i32, %c0_i32_0 : i32, i32
  }
}

</mosaic_0001>

<bundles_post_ra>
// kernel: tpu_custom_call.1
= control target key start
LH: loop header
LB: loop body
LE: loop exit
PB: predicated region body
PF: predicated region fallthrough
CT: control target
= control target key end

     0   :  { %16 = vsyncpa [#allocation3], 0  ;;  %s5740_s0 = inlined_call_operand.hbm [shape: f32[64,1024], index: 0, kind: input, shape index: {}]   ;;  %s5741_s1 = inlined_call_operand.hbm [shape: bf16[1024,512], index: 1, kind: input, shape index: {}]   ;;  %s5742_s2 = inlined_call_operand.hbm [shape: f32[1,512], index: 2, kind: input, shape index: {}]   ;;  %s5743_s3 = inlined_call_operand.vmem [shape: f32[1,512], index: 3, kind: input, shape index: {}]   ;;  %s5744_s4 = inlined_call_operand.hbm [shape: f32[1,512], index: 4, kind: input, shape index: {}]   ;;  %s5745_s5 = inlined_call_operand.hbm [shape: bf16[512,256], index: 5, kind: input, shape index: {}]   ;;  %s5746_s6 = inlined_call_operand.vmem [shape: f32[1,256], index: 6, kind: input, shape index: {}]   ;;  %s5747_s7 = inlined_call_operand.vmem [shape: f32[1,256], index: 7, kind: input, shape index: {}]   ;;  %s5748_s8 = inlined_call_operand.vmem [shape: f32[1,256], index: 8, kind: input, shape index: {}]   ;;  %s5749_s9 = inlined_call_operand.hbm [shape: bf16[256,128], index: 9, kind: input, shape index: {}]   ;;  %s5750_s10 = inlined_call_operand.vmem [shape: f32[1,128], index: 10, kind: input, shape index: {}]   ;;  %s5751_s11 = inlined_call_operand.hbm [shape: f32[64,128], index: 11, kind: output, shape index: {}]  }
   0x1   :  { %17 = vsyncpa [#allocation6], 0 }
   0x2   :  { %18 = vsyncpa [#allocation9], 0 }
   0x3   :  { %19 = vsyncpa [#allocation12], 0 }
   0x4   :  { %20 = vsyncpa [#allocation4], 0  ;;  %s4809_s17 = smov [#allocation5]  }
   0x5   :  { %s38_s18 = sshll.u32 %s4809_s17, 4  ;;  %s39_s18 = int_to_ptr.vmem [resolvable:$true] %s38_s18 }
   0x6   :  { %s4667_s19 = scalar_lea.vmem %s39_s18, 32768  ;;  %p4672_p1 = scmp.lt.s32.totalorder %s39_s18, %s39_s18 }
   0x7   :  { %p4668_p0 = scmp.ne.s32.totalorder %s39_s18, %s4667_s19  ;;  %p4673_p2 = scmp.lt.s32.totalorder %s4667_s19, %s4667_s19 }
   0x9   :  { %p4674_p3 = por %p4673_p2, %p4672_p1 }
   0xb   :  { %p4675_p4 = pnand %p4674_p3, %p4668_p0 }
   0xd   :  { %4678 = shalt.err (!%p4675_p4)
}
   0xe   :  { %s4810_s20 = smov 256   ;;  %s4811_s21 = smov 16  }
   0xf   :  { %44 = dma.hbm_to_vmem [thread:$0]  %s5741_s1, 32768, %s39_s18, [#allocation6], %s4810_s20, %s4810_s20, %s4811_s21  }
  0x10   :  { %s4812_s24 = smov [#allocation8]   ;;  %s4813_s26 = smov [#allocation2]  }
  0x11   :  { %s63_s25 = sshll.u32 %s4812_s24, 4  ;;  %s26_s27 = sshll.u32 %s4813_s26, 4  ;;  %s64_s25 = int_to_ptr.vmem [resolvable:$true] %s63_s25  ;;  %s27_s27 = int_to_ptr.vmem [resolvable:$true] %s26_s27 }
  0x12   :  { %s4687_s28 = scalar_lea.vmem %s64_s25, 64  ;;  %p4692_p6 = scmp.lt.s32.totalorder %s64_s25, %s64_s25 }
  0x13   :  { %p4688_p5 = scmp.ne.s32.totalorder %s64_s25, %s4687_s28  ;;  %p4693_p7 = scmp.lt.s32.totalorder %s4687_s28, %s4687_s28 }
  0x15   :  { %p4694_p8 = por %p4693_p7, %p4692_p6 }
  0x17   :  { %p4695_p9 = pnand %p4694_p8, %p4688_p5 }
  0x19   :  { %4698 = shalt.err (!%p4695_p9)
}
  0x1a   :  { %66 = dma.hbm_to_vmem [thread:$0]  %s5744_s4, 64, %s64_s25, [#allocation9]  }
  0x1b   :  { %s4707_s12 = scalar_lea.vmem %s27_s27, 8192  ;;  %p4712_p11 = scmp.lt.s32.totalorder %s27_s27, %s27_s27 }
  0x1c   :  { %p4708_p10 = scmp.ne.s32.totalorder %s27_s27, %s4707_s12  ;;  %p4713_p12 = scmp.lt.s32.totalorder %s4707_s12, %s4707_s12 }
  0x1e   :  { %p4714_p13 = por %p4713_p12, %p4712_p11 }
  0x20   :  { %p4715_p0 = pnand %p4714_p13, %p4708_p10 }
  0x22   :  { %4718 = shalt.err (!%p4715_p0)
}
  0x23   :  { %s4814_s1 = smov 1024   ;;  %s4815_s13 = smov 64  }
  0x24   :  { %32 = dma.hbm_to_vmem [thread:$0]  %s5740_s0, 8192, %s27_s27, [#allocation3], %s4814_s1, %s4814_s1, %s4815_s13  }
  0x25   :  { %s4816_s16 = smov [#allocation7]   ;;  %s4817_s18 = smov [#allocation10]  }
  0x26   :  { %s51_s17 = sshll.u32 %s4816_s16, 4  ;;  %s72_s4 = sshll.u32 %s4817_s18, 4  ;;  %s52_s17 = int_to_ptr.vmem [resolvable:$true] %s51_s17  ;;  %s73_s4 = int_to_ptr.vmem [resolvable:$true] %s72_s4 }
  0x27   :  { %s4727_s19 = scalar_lea.vmem %s52_s17, 64  ;;  %p4732_p2 = scmp.lt.s32.totalorder %s52_s17, %s52_s17 }
  0x28   :  { %p4728_p1 = scmp.ne.s32.totalorder %s52_s17, %s4727_s19  ;;  %p4733_p3 = scmp.lt.s32.totalorder %s4727_s19, %s4727_s19 }
  0x2a   :  { %p4734_p4 = por %p4733_p3, %p4732_p2 }
  0x2c   :  { %p4735_p5 = pnand %p4734_p4, %p4728_p1 }
  0x2e   :  { %4738 = shalt.err (!%p4735_p5)
}
  0x2f   :  { %54 = dma.hbm_to_vmem [thread:$0]  %s5742_s2, 64, %s52_s17, [#allocation6]  }
  0x30   :  { %s4747_s22 = scalar_lea.vmem %s73_s4, 8192  ;;  %p4752_p7 = scmp.lt.s32.totalorder %s73_s4, %s73_s4 }
  0x31   :  { %p4748_p6 = scmp.ne.s32.totalorder %s73_s4, %s4747_s22  ;;  %p4753_p8 = scmp.lt.s32.totalorder %s4747_s22, %s4747_s22 }
  0x33   :  { %p4754_p9 = por %p4753_p8, %p4752_p7 }
  0x35   :  { %p4755_p10 = pnand %p4754_p9, %p4748_p6 }
  0x37   :  { %4758 = shalt.err (!%p4755_p10)
}
  0x38   :  { %s4818_s0 = smov 128   ;;  %s4819_s23 = smov 8  }
  0x39   :  { %78 = dma.hbm_to_vmem [thread:$0]  %s5745_s5, 8192, %s73_s4, [#allocation9], %s4818_s0, %s4818_s0, %s4819_s23  }
  0x3a   :  { %s4820_s26 = smov [#allocation11]  }
  0x3b   :  { %s90_s27 = sshll.u32 %s4820_s26, 4  ;;  %s91_s27 = int_to_ptr.vmem [resolvable:$true] %s90_s27 }
  0x3c   :  { %s4767_s2 = scalar_lea.vmem %s91_s27, 2048  ;;  %p4772_p12 = scmp.lt.s32.totalorder %s91_s27, %s91_s27 }
  0x3d   :  { %p4768_p11 = scmp.ne.s32.totalorder %s91_s27, %s4767_s2  ;;  %p4773_p13 = scmp.lt.s32.totalorder %s4767_s2, %s4767_s2 }
  0x3f   :  { %p4774_p0 = por %p4773_p13, %p4772_p12 }
  0x41   :  { %p4775_p1 = pnand %p4774_p0, %p4768_p11 }
  0x43   :  { %4778 = shalt.err (!%p4775_p1)
}
  0x44   :  { %s4821_s28 = smov 4  }
  0x45   :  { %96 = dma.hbm_to_vmem [thread:$0]  %s5749_s9, 2048, %s91_s27, [#allocation12], %s4815_s13, %s4815_s13, %s4821_s28  }
  0x46   :  { %4799 = dma.done.wait [#allocation3], 8192  }
  0x47   :  { %4800 = vsyncadd [#allocation3], 4294959104 }
  0x48   :  { %4801 = dma.done.wait [#allocation6], 32832  }
  0x49   :  { %4802 = vsyncadd [#allocation6], 4294934464 }
  0x4a   :  { %4803 = dma.done.wait [#allocation9], 8256  }
  0x4b   :  { %4804 = vsyncadd [#allocation9], 4294959040 }
  0x4c   :  { %4805 = dma.done.wait [#allocation12], 2048  }
  0x4d   :  { %4806 = vsyncadd [#allocation12], 4294965248  ;;  %v4151_v0 = vld [vmem:[#allocation5 + $0xe4] ss:$16 sps:$4 sm:$0xff]   ;;  %v4155_v2 = vld [vmem:[#allocation5 + $0xe0] ss:$16 sps:$4 sm:$0xff]  }
  0x4e   :  { %v4153_v1 = vld [vmem:[#allocation5 + $0x2e4] ss:$16 sps:$4 sm:$0xff]   ;;  %1772 = vmatprep.subr.bf16.mxu0 %v4151_v0  ;;  %v4156_v3 = vld [vmem:[#allocation5 + $0x2e0] ss:$16 sps:$4 sm:$0xff]   ;;  %v119_v46 = vld [vmem:[#allocation2 + $0x8] sm:$0xff] }
  0x4f   :  { %1845 = vmatprep.subr.bf16.mxu1 %v4153_v1  ;;  %v4157_v4 = vld [vmem:[#allocation5 + $0xc4] ss:$16 sps:$4 sm:$0xff]   ;;  %1773 = vmatpush1.bf16.msra.mxu0 %v4155_v2  ;;  %v4161_v6 = vld [vmem:[#allocation5 + $0xc0] ss:$16 sps:$4 sm:$0xff]   ;;  %v127_v47 = vld [vmem:[#allocation2 + $0x48] sm:$0xff] }
  0x50   :  { %1846 = vmatpush1.bf16.msra.mxu1 %v4156_v3  ;;  %v4159_v5 = vld [vmem:[#allocation5 + $0x2c4] ss:$16 sps:$4 sm:$0xff]   ;;  %1774 = vmatprep.subr.bf16.mxu0 %v4157_v4  ;;  %v4162_v7 = vld [vmem:[#allocation5 + $0x2c0] ss:$16 sps:$4 sm:$0xff]   ;;  %v121_v48 = vld [vmem:[#allocation2 + $0x18] sm:$0xff]  ;;  %v4908_v53 = vpack.c.bf16 %v127_v47, %v119_v46 }
  0x51   :  { %1847 = vmatprep.subr.bf16.mxu1 %v4159_v5  ;;  %v4163_v8 = vld [vmem:[#allocation5 + $0xa4] ss:$16 sps:$4 sm:$0xff]   ;;  %v4167_v10 = vld [vmem:[#allocation5 + $0xa0] ss:$16 sps:$4 sm:$0xff]   ;;  %v129_v49 = vld [vmem:[#allocation2 + $0x58] sm:$0xff] }
  0x52   :  { %v4165_v9 = vld [vmem:[#allocation5 + $0x2a4] ss:$16 sps:$4 sm:$0xff]   ;;  %v4168_v11 = vld [vmem:[#allocation5 + $0x2a0] ss:$16 sps:$4 sm:$0xff]   ;;  %v4910_v54 = vpack.c.bf16 %v129_v49, %v121_v48  ;;  %1804 = vmatprep.mubr.bf16.mxu0 %v4908_v53  ;;  %v153_v47 = vld [vmem:[#allocation2 + $0x118] sm:$0xff] }
  0x53   :  { %1775 = vmatpush1.bf16.msra.mxu0 %v4161_v6  ;;  %v4169_v12 = vld [vmem:[#allocation5 + $0x84] ss:$16 sps:$4 sm:$0xff]   ;;  %v4173_v14 = vld [vmem:[#allocation5 + $0x80] ss:$16 sps:$4 sm:$0xff]   ;;  %v161_v49 = vld [vmem:[#allocation2 + $0x158] sm:$0xff] }
  0x54   :  { %1848 = vmatpush1.bf16.msra.mxu1 %v4162_v7  ;;  %1776 = vmatprep.subr.bf16.mxu0 %v4163_v8  ;;  %v4171_v13 = vld [vmem:[#allocation5 + $0x284] ss:$16 sps:$4 sm:$0xff]   ;;  %v4174_v15 = vld [vmem:[#allocation5 + $0x280] ss:$16 sps:$4 sm:$0xff]  }
  0x55   :  { %1849 = vmatprep.subr.bf16.mxu1 %v4165_v9  ;;  %v4175_v16 = vld [vmem:[#allocation5 + $0x64] ss:$16 sps:$4 sm:$0xff]   ;;  %v4179_v18 = vld [vmem:[#allocation5 + $0x60] ss:$16 sps:$4 sm:$0xff]   ;;  %1877 = vmatprep.mubr.bf16.mxu1 %v4910_v54 }
  0x56   :  { %v4177_v17 = vld [vmem:[#allocation5 + $0x264] ss:$16 sps:$4 sm:$0xff]   ;;  %v4180_v19 = vld [vmem:[#allocation5 + $0x260] ss:$16 sps:$4 sm:$0xff]  }
  0x57   :  { %1777 = vmatpush1.bf16.msra.mxu0 %v4167_v10  ;;  %v4181_v20 = vld [vmem:[#allocation5 + $0x44] ss:$16 sps:$4 sm:$0xff]   ;;  %v4185_v22 = vld [vmem:[#allocation5 + $0x40] ss:$16 sps:$4 sm:$0xff]  }
  0x58   :  { %1850 = vmatpush1.bf16.msra.mxu1 %v4168_v11  ;;  %1778 = vmatprep.subr.bf16.mxu0 %v4169_v12  ;;  %v4183_v21 = vld [vmem:[#allocation5 + $0x244] ss:$16 sps:$4 sm:$0xff]   ;;  %v4186_v23 = vld [vmem:[#allocation5 + $0x240] ss:$16 sps:$4 sm:$0xff]  }
  0x59   :  { %1851 = vmatprep.subr.bf16.mxu1 %v4171_v13  ;;  %v4187_v24 = vld [vmem:[#allocation5 + $0x24] ss:$16 sps:$4 sm:$0xff]   ;;  %v4191_v26 = vld [vmem:[#allocation5 + $0x20] ss:$16 sps:$4 sm:$0xff]  }
  0x5a   :  { %v4189_v25 = vld [vmem:[#allocation5 + $0x224] ss:$16 sps:$4 sm:$0xff]   ;;  %v4192_v27 = vld [vmem:[#allocation5 + $0x220] ss:$16 sps:$4 sm:$0xff]  }
  0x5b   :  { %1779 = vmatpush1.bf16.msra.mxu0 %v4173_v14  ;;  %v4193_v28 = vld [vmem:[#allocation5 + $0x4] ss:$16 sps:$4 sm:$0xff]   ;;  %v4197_v30 = vld [vmem:[#allocation5] ss:$16 sps:$4 sm:$0xff]  }
  0x5c   :  { %1852 = vmatpush1.bf16.msra.mxu1 %v4174_v15  ;;  %1780 = vmatprep.subr.bf16.mxu0 %v4175_v16  ;;  %v4195_v29 = vld [vmem:[#allocation5 + $0x204] ss:$16 sps:$4 sm:$0xff]   ;;  %v4198_v31 = vld [vmem:[#allocation5 + $0x200] ss:$16 sps:$4 sm:$0xff]  }
  0x5d   :  { %1853 = vmatprep.subr.bf16.mxu1 %v4177_v17  ;;  %v4199_v32 = vld [vmem:[#allocation5 + $0x1e4] ss:$16 sps:$4 sm:$0xff]   ;;  %v4203_v34 = vld [vmem:[#allocation5 + $0x1e0] ss:$16 sps:$4 sm:$0xff]  }
  0x5e   :  { %v4201_v33 = vld [vmem:[#allocation5 + $0x3e4] ss:$16 sps:$4 sm:$0xff]   ;;  %v4204_v35 = vld [vmem:[#allocation5 + $0x3e0] ss:$16 sps:$4 sm:$0xff]  }
  0x5f   :  { %1781 = vmatpush1.bf16.msra.mxu0 %v4179_v18  ;;  %v4205_v36 = vld [vmem:[#allocation5 + $0x1c4] ss:$16 sps:$4 sm:$0xff]   ;;  %v4209_v38 = vld [vmem:[#allocation5 + $0x1c0] ss:$16 sps:$4 sm:$0xff]  }
  0x60   :  { %1854 = vmatpush1.bf16.msra.mxu1 %v4180_v19  ;;  %1782 = vmatprep.subr.bf16.mxu0 %v4181_v20  ;;  %v4207_v37 = vld [vmem:[#allocation5 + $0x3c4] ss:$16 sps:$4 sm:$0xff]   ;;  %v4210_v39 = vld [vmem:[#allocation5 + $0x3c0] ss:$16 sps:$4 sm:$0xff]  }
  0x61   :  { %1855 = vmatprep.subr.bf16.mxu1 %v4183_v21  ;;  %v4211_v40 = vld [vmem:[#allocation5 + $0x1a4] ss:$16 sps:$4 sm:$0xff]   ;;  %v4215_v42 = vld [vmem:[#allocation5 + $0x1a0] ss:$16 sps:$4 sm:$0xff]  }
  0x62   :  { %v4213_v41 = vld [vmem:[#allocation5 + $0x3a4] ss:$16 sps:$4 sm:$0xff]   ;;  %v4216_v43 = vld [vmem:[#allocation5 + $0x3a0] ss:$16 sps:$4 sm:$0xff]  }
  0x63   :  { %1783 = vmatpush1.bf16.msra.mxu0 %v4185_v22  ;;  %v4217_v44 = vld [vmem:[#allocation5 + $0x184] ss:$16 sps:$4 sm:$0xff]   ;;  %v4221_v50 = vld [vmem:[#allocation5 + $0x180] ss:$16 sps:$4 sm:$0xff]   ;;  %v135_v22 = vld [vmem:[#allocation2 + $0x88] sm:$0xff] }
  0x64   :  { %1856 = vmatpush1.bf16.msra.mxu1 %v4186_v23  ;;  %1784 = vmatprep.subr.bf16.mxu0 %v4187_v24  ;;  %v4219_v45 = vld [vmem:[#allocation5 + $0x384] ss:$16 sps:$4 sm:$0xff]   ;;  %v4222_v51 = vld [vmem:[#allocation5 + $0x380] ss:$16 sps:$4 sm:$0xff]   ;;  %v143_v23 = vld [vmem:[#allocation2 + $0xc8] sm:$0xff] }
  0x65   :  { %1857 = vmatprep.subr.bf16.mxu1 %v4189_v25  ;;  %v4223_v52 = vld [vmem:[#allocation5 + $0x164] ss:$16 sps:$4 sm:$0xff]   ;;  %v4227_v56 = vld [vmem:[#allocation5 + $0x160] ss:$16 sps:$4 sm:$0xff]   ;;  %v4920_v24 = vpack.c.bf16 %v143_v23, %v135_v22 }
  0x66   :  { %v4225_v55 = vld [vmem:[#allocation5 + $0x364] ss:$16 sps:$4 sm:$0xff]   ;;  %v4228_v57 = vld [vmem:[#allocation5 + $0x360] ss:$16 sps:$4 sm:$0xff]  }
  0x67   :  { %1785 = vmatpush1.bf16.msra.mxu0 %v4191_v26  ;;  %v4229_v58 = vld [vmem:[#allocation5 + $0x144] ss:$16 sps:$4 sm:$0xff]   ;;  %v4233_v60 = vld [vmem:[#allocation5 + $0x140] ss:$16 sps:$4 sm:$0xff]  }
  0x68   :  { %1858 = vmatpush1.bf16.msra.mxu1 %v4192_v27  ;;  %1786 = vmatprep.subr.bf16.mxu0 %v4193_v28  ;;  %v4231_v59 = vld [vmem:[#allocation5 + $0x344] ss:$16 sps:$4 sm:$0xff]   ;;  %v4234_v61 = vld [vmem:[#allocation5 + $0x340] ss:$16 sps:$4 sm:$0xff]   ;;  %v137_v27 = vld [vmem:[#allocation2 + $0x98] sm:$0xff] }
  0x69   :  { %1859 = vmatprep.subr.bf16.mxu1 %v4195_v29  ;;  %v4235_v62 = vld [vmem:[#allocation5 + $0x124] ss:$16 sps:$4 sm:$0xff]   ;;  %v4239_v0 = vld [vmem:[#allocation5 + $0x120] ss:$16 sps:$4 sm:$0xff]   ;;  %v145_v29 = vld [vmem:[#allocation2 + $0xd8] sm:$0xff] }
  0x6a   :  { %v4237_v63 = vld [vmem:[#allocation5 + $0x324] ss:$16 sps:$4 sm:$0xff]   ;;  %v4240_v1 = vld [vmem:[#allocation5 + $0x320] ss:$16 sps:$4 sm:$0xff]  }
  0x6b   :  { %1787 = vmatpush1.bf16.msra.mxu0 %v4197_v30  ;;  %v4241_v2 = vld [vmem:[#allocation5 + $0x104] ss:$16 sps:$4 sm:$0xff]   ;;  %v4245_v4 = vld [vmem:[#allocation5 + $0x100] ss:$16 sps:$4 sm:$0xff]  }
  0x6c   :  { %1860 = vmatpush1.bf16.msra.mxu1 %v4198_v31  ;;  %1788 = vmatprep.subr.bf16.mxu0 %v4199_v32  ;;  %v4243_v3 = vld [vmem:[#allocation5 + $0x304] ss:$16 sps:$4 sm:$0xff]   ;;  %v4246_v5 = vld [vmem:[#allocation5 + $0x300] ss:$16 sps:$4 sm:$0xff]   ;;  %v4924_v32 = vpack.c.bf16 %v145_v29, %v137_v27  ;;  %v125_v27 = vld [vmem:[#allocation2 + $0x38] sm:$0xff] }
  0x6d   :  { %1861 = vmatprep.subr.bf16.mxu1 %v4201_v33  ;;  %v118_v6 = vld [vmem:[#allocation2] sm:$0xff]  ;;  %v120_v8 = vld [vmem:[#allocation2 + $0x10] sm:$0xff] }
  0x6e   :  { %v126_v7 = vld [vmem:[#allocation2 + $0x40] sm:$0xff]  ;;  %v128_v9 = vld [vmem:[#allocation2 + $0x50] sm:$0xff] }
  0x6f   :  { %1789 = vmatpush2.bf16.msra.mxu0 %v4203_v34  ;;  %v4249_v10 = vld [vmem:[#allocation5 + $0x4e4] ss:$16 sps:$4 sm:$0xff]   ;;  %v4914_v12 = vpack.c.bf16 %v126_v7, %v118_v6  ;;  %v4916_v13 = vpack.c.bf16 %v128_v9, %v120_v8  ;;  %v4247_v14 = vld [vmem:[#allocation5 + $0x4e0] ss:$16 sps:$4 sm:$0xff]   ;;  %v177_v7 = vld [vmem:[#allocation2 + $0x1d8] sm:$0xff] }
  0x70   :  { %1862 = vmatpush2.bf16.msra.mxu1 %v4204_v35  ;;  %1790 = vmatprep.subr.bf16.mxu0 %v4205_v36  ;;  %v4252_v11 = vld [vmem:[#allocation5 + $0x6e4] ss:$16 sps:$4 sm:$0xff]   ;;  %v4250_v15 = vld [vmem:[#allocation5 + $0x6e0] ss:$16 sps:$4 sm:$0xff]  }
  0x71   :  { %1863 = vmatprep.subr.bf16.mxu1 %v4207_v37  ;;  %v4255_v16 = vld [vmem:[#allocation5 + $0x4c4] ss:$16 sps:$4 sm:$0xff]   ;;  %v4253_v18 = vld [vmem:[#allocation5 + $0x4c0] ss:$16 sps:$4 sm:$0xff]  }
  0x72   :  { %v4258_v17 = vld [vmem:[#allocation5 + $0x6c4] ss:$16 sps:$4 sm:$0xff]   ;;  %v4256_v19 = vld [vmem:[#allocation5 + $0x6c0] ss:$16 sps:$4 sm:$0xff]  }
  0x73   :  { %1791 = vmatpush2.bf16.msra.mxu0 %v4209_v38  ;;  %v4261_v20 = vld [vmem:[#allocation5 + $0x4a4] ss:$16 sps:$4 sm:$0xff]   ;;  %v4259_v30 = vld [vmem:[#allocation5 + $0x4a0] ss:$16 sps:$4 sm:$0xff]  }
  0x74   :  { %1864 = vmatpush2.bf16.msra.mxu1 %v4210_v39  ;;  %1792 = vmatprep.subr.bf16.mxu0 %v4211_v40  ;;  %v4264_v21 = vld [vmem:[#allocation5 + $0x6a4] ss:$16 sps:$4 sm:$0xff]   ;;  %v4262_v31 = vld [vmem:[#allocation5 + $0x6a0] ss:$16 sps:$4 sm:$0xff]  }
  0x75   :  { %1865 = vmatprep.subr.bf16.mxu1 %v4213_v41  ;;  %v134_v25 = vld [vmem:[#allocation2 + $0x80] sm:$0xff]  ;;  %v136_v35 = vld [vmem:[#allocation2 + $0x90] sm:$0xff] }
  0x76   :  { %v142_v26 = vld [vmem:[#allocation2 + $0xc0] sm:$0xff]  ;;  %v144_v36 = vld [vmem:[#allocation2 + $0xd0] sm:$0xff] }
  0x77   :  { %1793 = vmatpush2.bf16.msra.mxu0 %v4215_v42  ;;  %v4922_v28 = vpack.c.bf16 %v142_v26, %v134_v25  ;;  %v4267_v33 = vld [vmem:[#allocation5 + $0x484] ss:$16 sps:$4 sm:$0xff]   ;;  %v4265_v37 = vld [vmem:[#allocation5 + $0x480] ss:$16 sps:$4 sm:$0xff]   ;;  %v4929_v39 = vpack.c.bf16 %v144_v36, %v136_v35  ;;  %v151_v42 = vld [vmem:[#allocation2 + $0x108] sm:$0xff] }
  0x78   :  { %1866 = vmatpush2.bf16.msra.mxu1 %v4216_v43  ;;  %1794 = vmatprep.subr.bf16.mxu0 %v4217_v44  ;;  %v4270_v34 = vld [vmem:[#allocation5 + $0x684] ss:$16 sps:$4 sm:$0xff]   ;;  %v4268_v38 = vld [vmem:[#allocation5 + $0x680] ss:$16 sps:$4 sm:$0xff]   ;;  %v159_v43 = vld [vmem:[#allocation2 + $0x148] sm:$0xff] }
  0x79   :  { %1867 = vmatprep.subr.bf16.mxu1 %v4219_v45  ;;  %v4273_v40 = vld [vmem:[#allocation5 + $0x464] ss:$16 sps:$4 sm:$0xff]   ;;  %v4932_v44 = vpack.c.bf16 %v159_v43, %v151_v42  ;;  %v4283_v8 = vld [vmem:[#allocation5 + $0x420] ss:$16 sps:$4 sm:$0xff]   ;;  %v123_v25 = vld [vmem:[#allocation2 + $0x28] sm:$0xff] }
  0x7a   :  { %v4276_v41 = vld [vmem:[#allocation5 + $0x664] ss:$16 sps:$4 sm:$0xff]   ;;  %v4286_v9 = vld [vmem:[#allocation5 + $0x620] ss:$16 sps:$4 sm:$0xff]   ;;  %v131_v26 = vld [vmem:[#allocation2 + $0x68] sm:$0xff] }
  0x7b   :  { %1795 = vmatpush2.bf16.msra.mxu0 %v4221_v50  ;;  %v150_v45 = vld [vmem:[#allocation2 + $0x100] sm:$0xff] }
  0x7c   :  { %1868 = vmatpush2.bf16.msra.mxu1 %v4222_v51  ;;  %1796 = vmatprep.subr.bf16.mxu0 %v4223_v52  ;;  %v158_v46 = vld [vmem:[#allocation2 + $0x140] sm:$0xff]  ;;  %v4936_v52 = vpack.c.bf16 %v161_v49, %v153_v47 }
  0x7d   :  { %1869 = vmatprep.subr.bf16.mxu1 %v4225_v55  ;;  %v4934_v48 = vpack.c.bf16 %v158_v46, %v150_v45  ;;  %v4271_v50 = vld [vmem:[#allocation5 + $0x460] ss:$16 sps:$4 sm:$0xff]   ;;  %v4279_v55 = vld [vmem:[#allocation5 + $0x444] ss:$16 sps:$4 sm:$0xff]  }
  0x7e   :  { %v4274_v51 = vld [vmem:[#allocation5 + $0x660] ss:$16 sps:$4 sm:$0xff]   ;;  %v4303_v29 = vld [vmem:[#allocation5 + $0x5c4] ss:$16 sps:$4 sm:$0xff]  }
  0x7f   :  { %1797 = vmatpush2.bf16.msra.mxu0 %v4227_v56  ;;  %v4282_v56 = vld [vmem:[#allocation5 + $0x644] ss:$16 sps:$4 sm:$0xff]   ;;  %v4295_v22 = vld [vmem:[#allocation5 + $0x5e0] ss:$16 sps:$4 sm:$0xff]  }
  0x80   :  { %1870 = vmatpush2.bf16.msra.mxu1 %v4228_v57  ;;  %1798 = vmatprep.subr.bf16.mxu0 %v4229_v58  ;;  %v152_v57 = vld [vmem:[#allocation2 + $0x110] sm:$0xff] }
  0x81   :  { %1871 = vmatprep.subr.bf16.mxu1 %v4231_v59  ;;  %v160_v58 = vld [vmem:[#allocation2 + $0x150] sm:$0xff] }
  0x82   :  { %v4277_v59 = vld [vmem:[#allocation5 + $0x440] ss:$16 sps:$4 sm:$0xff]   ;;  %v4315_v42 = vld [vmem:[#allocation5 + $0x584] ss:$16 sps:$4 sm:$0xff]  }
  0x83   :  { %1799 = vmatpush2.bf16.msra.mxu0 %v4233_v60  ;;  %v4280_v60 = vld [vmem:[#allocation5 + $0x640] ss:$16 sps:$4 sm:$0xff]   ;;  %v4318_v43 = vld [vmem:[#allocation5 + $0x784] ss:$16 sps:$4 sm:$0xff]  }
  0x84   :  { %1872 = vmatpush2.bf16.msra.mxu1 %v4234_v61  ;;  %1800 = vmatprep.subr.bf16.mxu0 %v4235_v62  ;;  %v4941_v61 = vpack.c.bf16 %v160_v58, %v152_v57  ;;  %v4285_v62 = vld [vmem:[#allocation5 + $0x424] ss:$16 sps:$4 sm:$0xff]   ;;  %v4298_v23 = vld [vmem:[#allocation5 + $0x7e0] ss:$16 sps:$4 sm:$0xff]  }
  0x85   :  { %1873 = vmatprep.subr.bf16.mxu1 %v4237_v63  ;;  %v4288_v63 = vld [vmem:[#allocation5 + $0x624] ss:$16 sps:$4 sm:$0xff]   ;;  %v4301_v35 = vld [vmem:[#allocation5 + $0x5c0] ss:$16 sps:$4 sm:$0xff]  }
  0x86   :  { %v4304_v36 = vld [vmem:[#allocation5 + $0x7c0] ss:$16 sps:$4 sm:$0xff]   ;;  %v4321_v47 = vld [vmem:[#allocation5 + $0x564] ss:$16 sps:$4 sm:$0xff]  }
  0x87   :  { %1801 = vmatpush2.bf16.msra.mxu0 %v4239_v0  ;;  %v167_v0 = vld [vmem:[#allocation2 + $0x188] sm:$0xff]  ;;  %v4313_v45 = vld [vmem:[#allocation5 + $0x580] ss:$16 sps:$4 sm:$0xff]   ;;  %v4324_v49 = vld [vmem:[#allocation5 + $0x764] ss:$16 sps:$4 sm:$0xff]  }
  0x88   :  { %1874 = vmatpush2.bf16.msra.mxu1 %v4240_v1  ;;  %1802 = vmatprep.subr.bf16.mxu0 %v4241_v2  ;;  %v175_v1 = vld [vmem:[#allocation2 + $0x1c8] sm:$0xff]  ;;  %v4316_v46 = vld [vmem:[#allocation5 + $0x780] ss:$16 sps:$4 sm:$0xff]  }
  0x89   :  { %1875 = vmatprep.subr.bf16.mxu1 %v4243_v3  ;;  %v4944_v2 = vpack.c.bf16 %v175_v1, %v167_v0  ;;  %v166_v3 = vld [vmem:[#allocation2 + $0x180] sm:$0xff] }
  0x8a   :  { %v4325_v57 = vld [vmem:[#allocation5 + $0x540] ss:$16 sps:$4 sm:$0xff]   ;;  %v4339_v0 = vld [vmem:[#allocation5 + $0x504] ss:$16 sps:$4 sm:$0xff]  }
  0x8b   :  { %1803 = vmatpush2.bf16.msra.mxu0 %v4245_v4  ;;  %v174_v4 = vld [vmem:[#allocation2 + $0x1c0] sm:$0xff] }
  0x8c   :  { %1876 = vmatpush2.bf16.msra.mxu1 %v4246_v5  ;;  %1918 = vmatprep.subr.bf16.mxu0 %v4249_v10  ;;  %v169_v5 = vld [vmem:[#allocation2 + $0x198] sm:$0xff]  ;;  %v4946_v6 = vpack.c.bf16 %v174_v4, %v166_v3  ;;  %v4328_v58 = vld [vmem:[#allocation5 + $0x740] ss:$16 sps:$4 sm:$0xff]   ;;  %v4342_v1 = vld [vmem:[#allocation5 + $0x704] ss:$16 sps:$4 sm:$0xff]  }
  0x8d   :  { %1991 = vmatprep.subr.bf16.mxu1 %v4252_v11  ;;  %v4948_v10 = vpack.c.bf16 %v177_v7, %v169_v5  ;;  %v4291_v11 = vld [vmem:[#allocation5 + $0x404] ss:$16 sps:$4 sm:$0xff]   ;;  %v4337_v3 = vld [vmem:[#allocation5 + $0x500] ss:$16 sps:$4 sm:$0xff]  }
  0x8e   :  { %1805 = vmatmul.mubr.bf16.vlgmr.msra.gmra.mxu0 %v4914_v12  ;;  %v4340_v4 = vld [vmem:[#allocation5 + $0x700] ss:$16 sps:$4 sm:$0xff]  }
  0x8f   :  { %1878 = vmatmul.mubr.bf16.vlgmr.msra.gmra.mxu1 %v4916_v13  ;;  %1919 = vmatpush1.bf16.msra.mxu0 %v4247_v14  ;;  %v4294_v14 = vld [vmem:[#allocation5 + $0x604] ss:$16 sps:$4 sm:$0xff]  }
  0x90   :  { %1992 = vmatpush1.bf16.msra.mxu1 %v4250_v15  ;;  %1920 = vmatprep.subr.bf16.mxu0 %v4255_v16  ;;  %v168_v15 = vld [vmem:[#allocation2 + $0x190] sm:$0xff]  ;;  %v122_v5 = vld [vmem:[#allocation2 + $0x20] sm:$0xff] }
  0x91   :  { %1993 = vmatprep.subr.bf16.mxu1 %v4258_v17  ;;  %1814 = vmatprep.mubr.bf16.mxu0 %v4920_v24  ;;  %v176_v16 = vld [vmem:[#allocation2 + $0x1d0] sm:$0xff]  ;;  %v130_v7 = vld [vmem:[#allocation2 + $0x60] sm:$0xff] }
  0x92   :  { %1887 = vmatprep.mubr.bf16.mxu1 %v4924_v32  ;;  %v4289_v17 = vld [vmem:[#allocation5 + $0x400] ss:$16 sps:$4 sm:$0xff]  }
  0x93   :  { %1921 = vmatpush1.bf16.msra.mxu0 %v4253_v18  ;;  %v4292_v18 = vld [vmem:[#allocation5 + $0x600] ss:$16 sps:$4 sm:$0xff]  }
  0x94   :  { %1994 = vmatpush1.bf16.msra.mxu1 %v4256_v19  ;;  %1922 = vmatprep.subr.bf16.mxu0 %v4261_v20  ;;  %v4953_v19 = vpack.c.bf16 %v176_v16, %v168_v15  ;;  %v4297_v20 = vld [vmem:[#allocation5 + $0x5e4] ss:$16 sps:$4 sm:$0xff]   ;;  %v4343_v15 = vld [vmem:[#allocation5 + $0xe8] ss:$16 sps:$4 sm:$0xff]  }
  0x95   :  { %1995 = vmatprep.subr.bf16.mxu1 %v4264_v21  ;;  %v4300_v21 = vld [vmem:[#allocation5 + $0x7e4] ss:$16 sps:$4 sm:$0xff]   ;;  %v4346_v16 = vld [vmem:[#allocation5 + $0x2e8] ss:$16 sps:$4 sm:$0xff]  }
  0x96   :  { %1815 = vmatmul.mubr.bf16.gmra.mxu0 %v4922_v28 }
  0x97   :  { %1923 = vmatpush1.bf16.msra.mxu0 %v4259_v30  ;;  %1888 = vmatmul.mubr.bf16.gmra.mxu1 %v4929_v39  ;;  %v4306_v30 = vld [vmem:[#allocation5 + $0x7c4] ss:$16 sps:$4 sm:$0xff]  }
  0x98   :  { %1996 = vmatpush1.bf16.msra.mxu1 %v4262_v31  ;;  %1924 = vmatprep.subr.bf16.mxu0 %v4267_v33  ;;  %v4956_v31 = vpack.c.bf16 %v131_v26, %v123_v25  ;;  %v133_v33 = vld [vmem:[#allocation2 + $0x78] sm:$0xff] }
  0x99   :  { %1997 = vmatprep.subr.bf16.mxu1 %v4270_v34  ;;  %1824 = vmatprep.mubr.bf16.mxu0 %v4932_v44  ;;  %v4958_v34 = vpack.c.bf16 %v133_v33, %v125_v27  ;;  %v4351_v25 = vld [vmem:[#allocation5 + $0xcc] ss:$16 sps:$4 sm:$0xff]   ;;  %v4349_v27 = vld [vmem:[#allocation5 + $0xc8] ss:$16 sps:$4 sm:$0xff]   ;;  %v138_v33 = vld [vmem:[#allocation2 + $0xa0] sm:$0xff] }
  0x9a   :  { %1897 = vmatprep.mubr.bf16.mxu1 %v4936_v52  ;;  %v4354_v26 = vld [vmem:[#allocation5 + $0x2cc] ss:$16 sps:$4 sm:$0xff]  }
  0x9b   :  { %1925 = vmatpush1.bf16.msra.mxu0 %v4265_v37  ;;  %v4309_v37 = vld [vmem:[#allocation5 + $0x5a4] ss:$16 sps:$4 sm:$0xff]  }
  0x9c   :  { %1998 = vmatpush1.bf16.msra.mxu1 %v4268_v38  ;;  %1926 = vmatprep.subr.bf16.mxu0 %v4273_v40  ;;  %v4312_v38 = vld [vmem:[#allocation5 + $0x7a4] ss:$16 sps:$4 sm:$0xff]   ;;  %v4307_v40 = vld [vmem:[#allocation5 + $0x5a0] ss:$16 sps:$4 sm:$0xff]  }
  0x9d   :  { %1999 = vmatprep.subr.bf16.mxu1 %v4276_v41  ;;  %v4310_v41 = vld [vmem:[#allocation5 + $0x7a0] ss:$16 sps:$4 sm:$0xff]  }
  0x9e   :  { %1825 = vmatmul.mubr.bf16.gmra.mxu0 %v4934_v48 }
  0x9f   :  { %1927 = vmatpush1.bf16.msra.mxu0 %v4271_v50  ;;  %1898 = vmatmul.mubr.bf16.gmra.mxu1 %v4941_v61  ;;  %v4319_v50 = vld [vmem:[#allocation5 + $0x560] ss:$16 sps:$4 sm:$0xff]  }
  0xa0   :  { %2000 = vmatpush1.bf16.msra.mxu1 %v4274_v51  ;;  %1928 = vmatprep.subr.bf16.mxu0 %v4279_v55  ;;  %v4322_v51 = vld [vmem:[#allocation5 + $0x760] ss:$16 sps:$4 sm:$0xff]   ;;  %v4327_v55 = vld [vmem:[#allocation5 + $0x544] ss:$16 sps:$4 sm:$0xff]  }
  0xa1   :  { %2001 = vmatprep.subr.bf16.mxu1 %v4282_v56  ;;  %1834 = vmatprep.mubr.bf16.mxu0 %v4944_v2  ;;  %v4330_v56 = vld [vmem:[#allocation5 + $0x744] ss:$16 sps:$4 sm:$0xff]  }
  0xa2   :  { %1907 = vmatprep.mubr.bf16.mxu1 %v4948_v10 }
  0xa3   :  { %1929 = vmatpush1.bf16.msra.mxu0 %v4277_v59  ;;  %v4333_v59 = vld [vmem:[#allocation5 + $0x524] ss:$16 sps:$4 sm:$0xff]  }
  0xa4   :  { %2002 = vmatpush1.bf16.msra.mxu1 %v4280_v60  ;;  %1930 = vmatprep.subr.bf16.mxu0 %v4285_v62  ;;  %v4336_v60 = vld [vmem:[#allocation5 + $0x724] ss:$16 sps:$4 sm:$0xff]   ;;  %v4331_v62 = vld [vmem:[#allocation5 + $0x520] ss:$16 sps:$4 sm:$0xff]  }
  0xa5   :  { %2003 = vmatprep.subr.bf16.mxu1 %v4288_v63  ;;  %v4334_v63 = vld [vmem:[#allocation5 + $0x720] ss:$16 sps:$4 sm:$0xff]  }
  0xa6   :  { %1835 = vmatmul.mubr.bf16.gmra.mxu0 %v4946_v6 }
  0xa7   :  { %1931 = vmatpush1.bf16.msra.mxu0 %v4283_v8  ;;  %1908 = vmatmul.mubr.bf16.gmra.mxu1 %v4953_v19  ;;  %v124_v8 = vld [vmem:[#allocation2 + $0x30] sm:$0xff] }
  0xa8   :  { %2004 = vmatpush1.bf16.msra.mxu1 %v4286_v9  ;;  %1932 = vmatprep.subr.bf16.mxu0 %v4291_v11  ;;  %v132_v9 = vld [vmem:[#allocation2 + $0x70] sm:$0xff]  ;;  %v4345_v11 = vld [vmem:[#allocation5 + $0xec] ss:$16 sps:$4 sm:$0xff]  }
  0xa9   :  { %2005 = vmatprep.subr.bf16.mxu1 %v4294_v14  ;;  %1950 = vmatprep.mubr.bf16.mxu0 %v4956_v31  ;;  %v4348_v14 = vld [vmem:[#allocation5 + $0x2ec] ss:$16 sps:$4 sm:$0xff]  }
  0xaa   :  { %2023 = vmatprep.mubr.bf16.mxu1 %v4958_v34 }
  0xab   :  { %1933 = vmatpush1.bf16.msra.mxu0 %v4289_v17  ;;  %v139_v17 = vld [vmem:[#allocation2 + $0xa8] sm:$0xff] }
  0xac   :  { %2006 = vmatpush1.bf16.msra.mxu1 %v4292_v18  ;;  %1934 = vmatprep.subr.bf16.mxu0 %v4297_v20  ;;  %v147_v18 = vld [vmem:[#allocation2 + $0xe8] sm:$0xff]  ;;  %v4962_v20 = vpack.c.bf16 %v130_v7, %v122_v5 }
  0xad   :  { %2007 = vmatprep.subr.bf16.mxu1 %v4300_v21  ;;  %v4964_v21 = vpack.c.bf16 %v132_v9, %v124_v8  ;;  %v4367_v5 = vld [vmem:[#allocation5 + $0x68] ss:$16 sps:$4 sm:$0xff]  }
  0xae   :  { %v4370_v7 = vld [vmem:[#allocation5 + $0x268] ss:$16 sps:$4 sm:$0xff]  }
  0xaf   :  { %1935 = vmatpush2.bf16.msra.mxu0 %v4295_v22  ;;  %v141_v22 = vld [vmem:[#allocation2 + $0xb8] sm:$0xff]  ;;  %v171_v8 = vld [vmem:[#allocation2 + $0x1a8] sm:$0xff] }
  0xb0   :  { %2008 = vmatpush2.bf16.msra.mxu1 %v4298_v23  ;;  %1936 = vmatprep.subr.bf16.mxu0 %v4303_v29  ;;  %v149_v23 = vld [vmem:[#allocation2 + $0xf8] sm:$0xff]  ;;  %v179_v9 = vld [vmem:[#allocation2 + $0x1e8] sm:$0xff] }
  0xb1   :  { %2009 = vmatprep.subr.bf16.mxu1 %v4306_v30  ;;  %v4352_v29 = vld [vmem:[#allocation5 + $0x2c8] ss:$16 sps:$4 sm:$0xff]   ;;  %v4966_v30 = vpack.c.bf16 %v147_v18, %v139_v17  ;;  %v4375_v17 = vld [vmem:[#allocation5 + $0x4c] ss:$16 sps:$4 sm:$0xff]  }
  0xb2   :  { %v4378_v18 = vld [vmem:[#allocation5 + $0x24c] ss:$16 sps:$4 sm:$0xff]  }
  0xb3   :  { %1937 = vmatpush2.bf16.msra.mxu0 %v4301_v35  ;;  %v146_v35 = vld [vmem:[#allocation2 + $0xe0] sm:$0xff] }
  0xb4   :  { %2010 = vmatpush2.bf16.msra.mxu1 %v4304_v36  ;;  %1938 = vmatprep.subr.bf16.mxu0 %v4309_v37  ;;  %v4968_v36 = vpack.c.bf16 %v149_v23, %v141_v22  ;;  %v4357_v37 = vld [vmem:[#allocation5 + $0xac] ss:$16 sps:$4 sm:$0xff]   ;;  %v4373_v22 = vld [vmem:[#allocation5 + $0x48] ss:$16 sps:$4 sm:$0xff]  }
  0xb5   :  { %2011 = vmatprep.subr.bf16.mxu1 %v4312_v38  ;;  %v140_v38 = vld [vmem:[#allocation2 + $0xb0] sm:$0xff]  ;;  %v4376_v23 = vld [vmem:[#allocation5 + $0x248] ss:$16 sps:$4 sm:$0xff]  }
  0xb7   :  { %1939 = vmatpush2.bf16.msra.mxu0 %v4307_v40  ;;  %v148_v40 = vld [vmem:[#allocation2 + $0xf0] sm:$0xff] }
  0xb8   :  { %2012 = vmatpush2.bf16.msra.mxu1 %v4310_v41  ;;  %1940 = vmatprep.subr.bf16.mxu0 %v4315_v42  ;;  %v4360_v41 = vld [vmem:[#allocation5 + $0x2ac] ss:$16 sps:$4 sm:$0xff]   ;;  %v4355_v42 = vld [vmem:[#allocation5 + $0xa8] ss:$16 sps:$4 sm:$0xff]  }
  0xb9   :  { %2013 = vmatprep.subr.bf16.mxu1 %v4318_v43  ;;  %v4358_v43 = vld [vmem:[#allocation5 + $0x2a8] ss:$16 sps:$4 sm:$0xff]  }
  0xbb   :  { %1941 = vmatpush2.bf16.msra.mxu0 %v4313_v45  ;;  %v155_v45 = vld [vmem:[#allocation2 + $0x128] sm:$0xff] }
  0xbc   :  { %2014 = vmatpush2.bf16.msra.mxu1 %v4316_v46  ;;  %1942 = vmatprep.subr.bf16.mxu0 %v4321_v47  ;;  %v163_v46 = vld [vmem:[#allocation2 + $0x168] sm:$0xff]  ;;  %v4974_v47 = vpack.c.bf16 %v146_v35, %v138_v33  ;;  %v172_v35 = vld [vmem:[#allocation2 + $0x1b0] sm:$0xff] }
  0xbd   :  { %2015 = vmatprep.subr.bf16.mxu1 %v4324_v49  ;;  %v4976_v49 = vpack.c.bf16 %v148_v40, %v140_v38  ;;  %v4381_v33 = vld [vmem:[#allocation5 + $0x2c] ss:$16 sps:$4 sm:$0xff]  }
  0xbe   :  { %v4384_v38 = vld [vmem:[#allocation5 + $0x22c] ss:$16 sps:$4 sm:$0xff]  }
  0xbf   :  { %1943 = vmatpush2.bf16.msra.mxu0 %v4319_v50  ;;  %v157_v50 = vld [vmem:[#allocation2 + $0x138] sm:$0xff] }
  0xc0   :  { %2016 = vmatpush2.bf16.msra.mxu1 %v4322_v51  ;;  %1944 = vmatprep.subr.bf16.mxu0 %v4327_v55  ;;  %v165_v51 = vld [vmem:[#allocation2 + $0x178] sm:$0xff] }
  0xc1   :  { %2017 = vmatprep.subr.bf16.mxu1 %v4330_v56  ;;  %v4363_v55 = vld [vmem:[#allocation5 + $0x8c] ss:$16 sps:$4 sm:$0xff]  }
  0xc2   :  { %v4366_v56 = vld [vmem:[#allocation5 + $0x28c] ss:$16 sps:$4 sm:$0xff]  }
  0xc3   :  { %1945 = vmatpush2.bf16.msra.mxu0 %v4325_v57  ;;  %v4361_v57 = vld [vmem:[#allocation5 + $0x88] ss:$16 sps:$4 sm:$0xff]  }
  0xc4   :  { %2018 = vmatpush2.bf16.msra.mxu1 %v4328_v58  ;;  %1946 = vmatprep.subr.bf16.mxu0 %v4333_v59  ;;  %v4364_v58 = vld [vmem:[#allocation5 + $0x288] ss:$16 sps:$4 sm:$0xff]   ;;  %v4978_v59 = vpack.c.bf16 %v163_v46, %v155_v45  ;;  %v4387_v45 = vld [vmem:[#allocation5 + $0xc] ss:$16 sps:$4 sm:$0xff]  }
  0xc5   :  { %2019 = vmatprep.subr.bf16.mxu1 %v4336_v60  ;;  %v154_v60 = vld [vmem:[#allocation2 + $0x120] sm:$0xff]  ;;  %v4390_v46 = vld [vmem:[#allocation5 + $0x20c] ss:$16 sps:$4 sm:$0xff]  }
  0xc7   :  { %1947 = vmatpush2.bf16.msra.mxu0 %v4331_v62  ;;  %v162_v62 = vld [vmem:[#allocation2 + $0x160] sm:$0xff] }
  0xc8   :  { %2020 = vmatpush2.bf16.msra.mxu1 %v4334_v63  ;;  %1948 = vmatprep.subr.bf16.mxu0 %v4339_v0  ;;  %v4980_v63 = vpack.c.bf16 %v165_v51, %v157_v50  ;;  %v4369_v0 = vld [vmem:[#allocation5 + $0x6c] ss:$16 sps:$4 sm:$0xff]   ;;  %v4385_v50 = vld [vmem:[#allocation5 + $0x8] ss:$16 sps:$4 sm:$0xff]  }
  0xc9   :  { %2021 = vmatprep.subr.bf16.mxu1 %v4342_v1  ;;  %v156_v1 = vld [vmem:[#allocation2 + $0x130] sm:$0xff]  ;;  %v4388_v51 = vld [vmem:[#allocation5 + $0x208] ss:$16 sps:$4 sm:$0xff]  }
  0xcb   :  { %1949 = vmatpush2.bf16.msra.mxu0 %v4337_v3  ;;  %v164_v3 = vld [vmem:[#allocation2 + $0x170] sm:$0xff] }
  0xcc   :  { %2022 = vmatpush2.bf16.msra.mxu1 %v4340_v4  ;;  %2064 = vmatprep.subr.bf16.mxu0 %v4345_v11  ;;  %v4372_v4 = vld [vmem:[#allocation5 + $0x26c] ss:$16 sps:$4 sm:$0xff]   ;;  %v4986_v11 = vpack.c.bf16 %v162_v62, %v154_v60 }
  0xcd   :  { %2137 = vmatprep.subr.bf16.mxu1 %v4348_v14  ;;  %v4988_v14 = vpack.c.bf16 %v164_v3, %v156_v1  ;;  %v4399_v60 = vld [vmem:[#allocation5 + $0x1cc] ss:$16 sps:$4 sm:$0xff]   ;;  %v4400_v1 = vld [vmem:[#allocation5 + $0x3c8] ss:$16 sps:$4 sm:$0xff]  }
  0xce   :  { %1951 = vmatmul.mubr.bf16.vlgmr.msra.gmra.mxu0 %v4962_v20  ;;  %v4402_v62 = vld [vmem:[#allocation5 + $0x3cc] ss:$16 sps:$4 sm:$0xff]  }
  0xcf   :  { %2024 = vmatmul.mubr.bf16.vlgmr.msra.gmra.mxu1 %v4964_v21  ;;  %2065 = vmatpush1.bf16.msra.mxu0 %v4343_v15  ;;  %v173_v15 = vld [vmem:[#allocation2 + $0x1b8] sm:$0xff] }
  0xd0   :  { %2138 = vmatpush1.bf16.msra.mxu1 %v4346_v16  ;;  %2066 = vmatprep.subr.bf16.mxu0 %v4351_v25  ;;  %v181_v16 = vld [vmem:[#allocation2 + $0x1f8] sm:$0xff]  ;;  %v4990_v25 = vpack.c.bf16 %v179_v9, %v171_v8 }
  0xd1   :  { %2139 = vmatprep.subr.bf16.mxu1 %v4354_v26  ;;  %1960 = vmatprep.mubr.bf16.mxu0 %v4966_v30  ;;  %v170_v26 = vld [vmem:[#allocation2 + $0x1a0] sm:$0xff]  ;;  %v4405_v3 = vld [vmem:[#allocation5 + $0x1ac] ss:$16 sps:$4 sm:$0xff]   ;;  %v4409_v8 = vld [vmem:[#allocation5 + $0x188] ss:$16 sps:$4 sm:$0xff]  }
  0xd2   :  { %2033 = vmatprep.mubr.bf16.mxu1 %v4968_v36  ;;  %v4412_v9 = vld [vmem:[#allocation5 + $0x388] ss:$16 sps:$4 sm:$0xff]  }
  0xd3   :  { %2067 = vmatpush1.bf16.msra.mxu0 %v4349_v27  ;;  %v178_v27 = vld [vmem:[#allocation2 + $0x1e0] sm:$0xff] }
  0xd4   :  { %2140 = vmatpush1.bf16.msra.mxu1 %v4352_v29  ;;  %2068 = vmatprep.subr.bf16.mxu0 %v4357_v37  ;;  %v4992_v29 = vpack.c.bf16 %v181_v16, %v173_v15  ;;  %v180_v37 = vld [vmem:[#allocation2 + $0x1f0] sm:$0xff]  ;;  %v4998_v40 = vpack.c.bf16 %v178_v27, %v170_v26  ;;  %v4417_v15 = vld [vmem:[#allocation5 + $0x16c] ss:$16 sps:$4 sm:$0xff]   ;;  %v4421_v26 = vld [vmem:[#allocation5 + $0x148] ss:$16 sps:$4 sm:$0xff]  }
  0xd5   :  { %2141 = vmatprep.subr.bf16.mxu1 %v4360_v41  ;;  %v4379_v41 = vld [vmem:[#allocation5 + $0x28] ss:$16 sps:$4 sm:$0xff]   ;;  %v4420_v16 = vld [vmem:[#allocation5 + $0x36c] ss:$16 sps:$4 sm:$0xff]  }
  0xd6   :  { %1961 = vmatmul.mubr.bf16.gmra.mxu0 %v4974_v47  ;;  %v4424_v27 = vld [vmem:[#allocation5 + $0x348] ss:$16 sps:$4 sm:$0xff]  }
  0xd7   :  { %2034 = vmatmul.mubr.bf16.gmra.mxu1 %v4976_v49  ;;  %2069 = vmatpush1.bf16.msra.mxu0 %v4355_v42  ;;  %v4382_v42 = vld [vmem:[#allocation5 + $0x228] ss:$16 sps:$4 sm:$0xff]  }
  0xd8   :  { %2142 = vmatpush1.bf16.msra.mxu1 %v4358_v43  ;;  %2070 = vmatprep.subr.bf16.mxu0 %v4363_v55  ;;  %v5000_v43 = vpack.c.bf16 %v180_v37, %v172_v35  ;;  %v4393_v55 = vld [vmem:[#allocation5 + $0x1ec] ss:$16 sps:$4 sm:$0xff]   ;;  %v4427_v37 = vld [vmem:[#allocation5 + $0x128] ss:$16 sps:$4 sm:$0xff]  }
  0xd9   :  { %2143 = vmatprep.subr.bf16.mxu1 %v4366_v56  ;;  %1970 = vmatprep.mubr.bf16.mxu0 %v4978_v59  ;;  %v4396_v56 = vld [vmem:[#allocation5 + $0x3ec] ss:$16 sps:$4 sm:$0xff]  }
  0xda   :  { %2043 = vmatprep.mubr.bf16.mxu1 %v4980_v63  ;;  %v4432_v35 = vld [vmem:[#allocation5 + $0x32c] ss:$16 sps:$4 sm:$0xff]  }
  0xdb   :  { %2071 = vmatpush1.bf16.msra.mxu0 %v4361_v57  ;;  %v4391_v57 = vld [vmem:[#allocation5 + $0x1e8] ss:$16 sps:$4 sm:$0xff]  }
  0xdc   :  { %2144 = vmatpush1.bf16.msra.mxu1 %v4364_v58  ;;  %2072 = vmatprep.subr.bf16.mxu0 %v4369_v0  ;;  %v4394_v58 = vld [vmem:[#allocation5 + $0x3e8] ss:$16 sps:$4 sm:$0xff]  }
  0xdd   :  { %2145 = vmatprep.subr.bf16.mxu1 %v4372_v4  ;;  %v4397_v0 = vld [vmem:[#allocation5 + $0x1c8] ss:$16 sps:$4 sm:$0xff]   ;;  %v4408_v4 = vld [vmem:[#allocation5 + $0x3ac] ss:$16 sps:$4 sm:$0xff]  }
  0xde   :  { %1971 = vmatmul.mubr.bf16.gmra.mxu0 %v4986_v11 }
  0xdf   :  { %2044 = vmatmul.mubr.bf16.gmra.mxu1 %v4988_v14  ;;  %2073 = vmatpush1.bf16.msra.mxu0 %v4367_v5  ;;  %v4403_v5 = vld [vmem:[#allocation5 + $0x1a8] ss:$16 sps:$4 sm:$0xff]  }
  0xe0   :  { %2146 = vmatpush1.bf16.msra.mxu1 %v4370_v7  ;;  %2074 = vmatprep.subr.bf16.mxu0 %v4375_v17  ;;  %v4414_v7 = vld [vmem:[#allocation5 + $0x38c] ss:$16 sps:$4 sm:$0xff]   ;;  %v4415_v17 = vld [vmem:[#allocation5 + $0x168] ss:$16 sps:$4 sm:$0xff]  }
  0xe1   :  { %2147 = vmatprep.subr.bf16.mxu1 %v4378_v18  ;;  %1980 = vmatprep.mubr.bf16.mxu0 %v4990_v25  ;;  %v4418_v18 = vld [vmem:[#allocation5 + $0x368] ss:$16 sps:$4 sm:$0xff]  }
  0xe2   :  { %2053 = vmatprep.mubr.bf16.mxu1 %v4992_v29 }
  0xe3   :  { %2075 = vmatpush1.bf16.msra.mxu0 %v4373_v22  ;;  %v4423_v22 = vld [vmem:[#allocation5 + $0x14c] ss:$16 sps:$4 sm:$0xff]  }
  0xe4   :  { %2148 = vmatpush1.bf16.msra.mxu1 %v4376_v23  ;;  %2076 = vmatprep.subr.bf16.mxu0 %v4381_v33  ;;  %v4426_v23 = vld [vmem:[#allocation5 + $0x34c] ss:$16 sps:$4 sm:$0xff]  }
  0xe5   :  { %2149 = vmatprep.subr.bf16.mxu1 %v4384_v38  ;;  %v4429_v33 = vld [vmem:[#allocation5 + $0x12c] ss:$16 sps:$4 sm:$0xff]   ;;  %v4430_v38 = vld [vmem:[#allocation5 + $0x328] ss:$16 sps:$4 sm:$0xff]  }
  0xe6   :  { %1981 = vmatmul.mubr.bf16.gmra.mxu0 %v4998_v40 }
  0xe7   :  { %2054 = vmatmul.mubr.bf16.gmra.mxu1 %v5000_v43  ;;  %2077 = vmatpush1.bf16.msra.mxu0 %v4379_v41  ;;  %v4435_v41 = vld [vmem:[#allocation5 + $0x10c] ss:$16 sps:$4 sm:$0xff]  }
  0xe8   :  { %2150 = vmatpush1.bf16.msra.mxu1 %v4382_v42  ;;  %2078 = vmatprep.subr.bf16.mxu0 %v4387_v45  ;;  %v4438_v42 = vld [vmem:[#allocation5 + $0x30c] ss:$16 sps:$4 sm:$0xff]   ;;  %v4433_v45 = vld [vmem:[#allocation5 + $0x108] ss:$16 sps:$4 sm:$0xff]  }
  0xe9   :  { %2151 = vmatprep.subr.bf16.mxu1 %v4390_v46  ;;  %2096 = vmatprep.mubr.bf16.mxu0 %v4908_v53  ;;  %v4406_v53 = vld [vmem:[#allocation5 + $0x3a8] ss:$16 sps:$4 sm:$0xff]  }
  0xea   :  { %2169 = vmatprep.mubr.bf16.mxu1 %v4910_v54  ;;  %v4411_v54 = vld [vmem:[#allocation5 + $0x18c] ss:$16 sps:$4 sm:$0xff]   ;;  %v4436_v46 = vld [vmem:[#allocation5 + $0x308] ss:$16 sps:$4 sm:$0xff]  }
  0xeb   :  { %2079 = vmatpush1.bf16.msra.mxu0 %v4385_v50  ;;  %v4441_v50 = vld [vmem:[#allocation5 + $0x4ec] ss:$16 sps:$4 sm:$0xff]  }
  0xec   :  { %2152 = vmatpush1.bf16.msra.mxu1 %v4388_v51  ;;  %2080 = vmatprep.subr.bf16.mxu0 %v4393_v55  ;;  %v4444_v51 = vld [vmem:[#allocation5 + $0x6ec] ss:$16 sps:$4 sm:$0xff]   ;;  %v4439_v55 = vld [vmem:[#allocation5 + $0x4e8] ss:$16 sps:$4 sm:$0xff]  }
  0xed   :  { %2153 = vmatprep.subr.bf16.mxu1 %v4396_v56  ;;  %v4442_v56 = vld [vmem:[#allocation5 + $0x6e8] ss:$16 sps:$4 sm:$0xff]  }
  0xef   :  { %2081 = vmatpush2.bf16.msra.mxu0 %v4391_v57  ;;  %v4447_v57 = vld [vmem:[#allocation5 + $0x4cc] ss:$16 sps:$4 sm:$0xff]  }
  0xf0   :  { %2154 = vmatpush2.bf16.msra.mxu1 %v4394_v58  ;;  %2082 = vmatprep.subr.bf16.mxu0 %v4399_v60  ;;  %v4450_v58 = vld [vmem:[#allocation5 + $0x6cc] ss:$16 sps:$4 sm:$0xff]   ;;  %v4445_v60 = vld [vmem:[#allocation5 + $0x4c8] ss:$16 sps:$4 sm:$0xff]  }
  0xf1   :  { %2155 = vmatprep.subr.bf16.mxu1 %v4402_v62  ;;  %v4448_v62 = vld [vmem:[#allocation5 + $0x6c8] ss:$16 sps:$4 sm:$0xff]  }
  0xf3   :  { %2083 = vmatpush2.bf16.msra.mxu0 %v4397_v0  ;;  %v4453_v0 = vld [vmem:[#allocation5 + $0x4ac] ss:$16 sps:$4 sm:$0xff]  }
  0xf4   :  { %2156 = vmatpush2.bf16.msra.mxu1 %v4400_v1  ;;  %2084 = vmatprep.subr.bf16.mxu0 %v4405_v3  ;;  %v4456_v1 = vld [vmem:[#allocation5 + $0x6ac] ss:$16 sps:$4 sm:$0xff]   ;;  %v4451_v3 = vld [vmem:[#allocation5 + $0x4a8] ss:$16 sps:$4 sm:$0xff]  }
  0xf5   :  { %2157 = vmatprep.subr.bf16.mxu1 %v4408_v4  ;;  %v4454_v4 = vld [vmem:[#allocation5 + $0x6a8] ss:$16 sps:$4 sm:$0xff]  }
  0xf7   :  { %2085 = vmatpush2.bf16.msra.mxu0 %v4403_v5  ;;  %v4459_v5 = vld [vmem:[#allocation5 + $0x48c] ss:$16 sps:$4 sm:$0xff]  }
  0xf8   :  { %2158 = vmatpush2.bf16.msra.mxu1 %v4406_v53  ;;  %2086 = vmatprep.subr.bf16.mxu0 %v4411_v54  ;;  %v4462_v53 = vld [vmem:[#allocation5 + $0x68c] ss:$16 sps:$4 sm:$0xff]  }
  0xf9   :  { %2159 = vmatprep.subr.bf16.mxu1 %v4414_v7  ;;  %v4465_v54 = vld [vmem:[#allocation5 + $0x46c] ss:$16 sps:$4 sm:$0xff]  }
  0xfa   :  { %v4468_v7 = vld [vmem:[#allocation5 + $0x66c] ss:$16 sps:$4 sm:$0xff]  }
  0xfb   :  { %2087 = vmatpush2.bf16.msra.mxu0 %v4409_v8  ;;  %v4471_v8 = vld [vmem:[#allocation5 + $0x44c] ss:$16 sps:$4 sm:$0xff]  }
  0xfc   :  { %2160 = vmatpush2.bf16.msra.mxu1 %v4412_v9  ;;  %2088 = vmatprep.subr.bf16.mxu0 %v4417_v15  ;;  %v4474_v9 = vld [vmem:[#allocation5 + $0x64c] ss:$16 sps:$4 sm:$0xff]   ;;  %v4469_v15 = vld [vmem:[#allocation5 + $0x448] ss:$16 sps:$4 sm:$0xff]  }
  0xfd   :  { %2161 = vmatprep.subr.bf16.mxu1 %v4420_v16  ;;  %v4477_v16 = vld [vmem:[#allocation5 + $0x42c] ss:$16 sps:$4 sm:$0xff]  }
  0xff   :  { %2089 = vmatpush2.bf16.msra.mxu0 %v4415_v17  ;;  %v4483_v17 = vld [vmem:[#allocation5 + $0x40c] ss:$16 sps:$4 sm:$0xff]  }
 0x100   :  { %2162 = vmatpush2.bf16.msra.mxu1 %v4418_v18  ;;  %2090 = vmatprep.subr.bf16.mxu0 %v4423_v22  ;;  %v4486_v18 = vld [vmem:[#allocation5 + $0x60c] ss:$16 sps:$4 sm:$0xff]   ;;  %v4481_v22 = vld [vmem:[#allocation5 + $0x408] ss:$16 sps:$4 sm:$0xff]  }
 0x101   :  { %2163 = vmatprep.subr.bf16.mxu1 %v4426_v23  ;;  %v4489_v23 = vld [vmem:[#allocation5 + $0x5ec] ss:$16 sps:$4 sm:$0xff]  }
 0x103   :  { %2091 = vmatpush2.bf16.msra.mxu0 %v4421_v26  ;;  %v4495_v26 = vld [vmem:[#allocation5 + $0x5cc] ss:$16 sps:$4 sm:$0xff]  }
 0x104   :  { %2164 = vmatpush2.bf16.msra.mxu1 %v4424_v27  ;;  %2092 = vmatprep.subr.bf16.mxu0 %v4429_v33  ;;  %v4498_v27 = vld [vmem:[#allocation5 + $0x7cc] ss:$16 sps:$4 sm:$0xff]  }
 0x105   :  { %2165 = vmatprep.subr.bf16.mxu1 %v4432_v35  ;;  %v4501_v33 = vld [vmem:[#allocation5 + $0x5ac] ss:$16 sps:$4 sm:$0xff]  }
 0x106   :  { %v4504_v35 = vld [vmem:[#allocation5 + $0x7ac] ss:$16 sps:$4 sm:$0xff]  }
 0x107   :  { %2093 = vmatpush2.bf16.msra.mxu0 %v4427_v37  ;;  %v4507_v37 = vld [vmem:[#allocation5 + $0x58c] ss:$16 sps:$4 sm:$0xff]  }
 0x108   :  { %2166 = vmatpush2.bf16.msra.mxu1 %v4430_v38  ;;  %2094 = vmatprep.subr.bf16.mxu0 %v4435_v41  ;;  %v4510_v38 = vld [vmem:[#allocation5 + $0x78c] ss:$16 sps:$4 sm:$0xff]   ;;  %v4505_v41 = vld [vmem:[#allocation5 + $0x588] ss:$16 sps:$4 sm:$0xff]  }
 0x109   :  { %2167 = vmatprep.subr.bf16.mxu1 %v4438_v42  ;;  %v4508_v42 = vld [vmem:[#allocation5 + $0x788] ss:$16 sps:$4 sm:$0xff]  }
 0x10b   :  { %2095 = vmatpush2.bf16.msra.mxu0 %v4433_v45  ;;  %v4513_v45 = vld [vmem:[#allocation5 + $0x56c] ss:$16 sps:$4 sm:$0xff]  }
 0x10c   :  { %2168 = vmatpush2.bf16.msra.mxu1 %v4436_v46  ;;  %2210 = vmatprep.subr.bf16.mxu0 %v4441_v50  ;;  %v4516_v46 = vld [vmem:[#allocation5 + $0x76c] ss:$16 sps:$4 sm:$0xff]   ;;  %v4511_v50 = vld [vmem:[#allocation5 + $0x568] ss:$16 sps:$4 sm:$0xff]  }
 0x10d   :  { %2283 = vmatprep.subr.bf16.mxu1 %v4444_v51  ;;  %v4514_v51 = vld [vmem:[#allocation5 + $0x768] ss:$16 sps:$4 sm:$0xff]  }
 0x10e   :  { %2097 = vmatmul.mubr.bf16.vlgmr.msra.gmra.mxu0 %v4914_v12  ;;  %v4457_v12 = vld [vmem:[#allocation5 + $0x488] ss:$16 sps:$4 sm:$0xff]  }
 0x10f   :  { %2170 = vmatmul.mubr.bf16.vlgmr.msra.gmra.mxu1 %v4916_v13  ;;  %2211 = vmatpush1.bf16.msra.mxu0 %v4439_v55  ;;  %v4460_v13 = vld [vmem:[#allocation5 + $0x688] ss:$16 sps:$4 sm:$0xff]   ;;  %v4519_v55 = vld [vmem:[#allocation5 + $0x54c] ss:$16 sps:$4 sm:$0xff]  }
 0x110   :  { %2284 = vmatpush1.bf16.msra.mxu1 %v4442_v56  ;;  %2212 = vmatprep.subr.bf16.mxu0 %v4447_v57  ;;  %v4522_v56 = vld [vmem:[#allocation5 + $0x74c] ss:$16 sps:$4 sm:$0xff]   ;;  %v4517_v57 = vld [vmem:[#allocation5 + $0x548] ss:$16 sps:$4 sm:$0xff]  }
 0x111   :  { %2285 = vmatprep.subr.bf16.mxu1 %v4450_v58  ;;  %2106 = vmatprep.mubr.bf16.mxu0 %v4920_v24  ;;  %v4463_v24 = vld [vmem:[#allocation5 + $0x468] ss:$16 sps:$4 sm:$0xff]  }
 0x112   :  { %2179 = vmatprep.mubr.bf16.mxu1 %v4924_v32  ;;  %v4466_v32 = vld [vmem:[#allocation5 + $0x668] ss:$16 sps:$4 sm:$0xff]  }
 0x113   :  { %2213 = vmatpush1.bf16.msra.mxu0 %v4445_v60  ;;  %v4520_v58 = vld [vmem:[#allocation5 + $0x748] ss:$16 sps:$4 sm:$0xff]   ;;  %v472_v60 = vlaneseq }
 0x114   :  { %2286 = vmatpush1.bf16.msra.mxu1 %v4448_v62  ;;  %2214 = vmatprep.subr.bf16.mxu0 %v4453_v0  ;;  %v4525_v62 = vld [vmem:[#allocation5 + $0x52c] ss:$16 sps:$4 sm:$0xff]  }
 0x115   :  { %2287 = vmatprep.subr.bf16.mxu1 %v4456_v1  ;;  %v4528_v0 = vld [vmem:[#allocation5 + $0x72c] ss:$16 sps:$4 sm:$0xff]   ;;  %v4523_v1 = vld [vmem:[#allocation5 + $0x528] ss:$16 sps:$4 sm:$0xff]  }
 0x116   :  { %2107 = vmatmul.mubr.bf16.gmra.mxu0 %v4922_v28  ;;  %v4472_v28 = vld [vmem:[#allocation5 + $0x648] ss:$16 sps:$4 sm:$0xff]  }
 0x117   :  { %2180 = vmatmul.mubr.bf16.gmra.mxu1 %v4929_v39  ;;  %2215 = vmatpush1.bf16.msra.mxu0 %v4451_v3  ;;  %v4480_v39 = vld [vmem:[#allocation5 + $0x62c] ss:$16 sps:$4 sm:$0xff]   ;;  %v4526_v3 = vld [vmem:[#allocation5 + $0x728] ss:$16 sps:$4 sm:$0xff]  }
 0x118   :  { %2288 = vmatpush1.bf16.msra.mxu1 %v4454_v4  ;;  %2216 = vmatprep.subr.bf16.mxu0 %v4459_v5  ;;  %v5022_v4 = vshrl.u32 %v472_v60, 7  ;;  %v4531_v5 = vld [vmem:[#allocation5 + $0x50c] ss:$16 sps:$4 sm:$0xff]  }
 0x119   :  { %2289 = vmatprep.subr.bf16.mxu1 %v4462_v53  ;;  %2116 = vmatprep.mubr.bf16.mxu0 %v4932_v44  ;;  %v4475_v44 = vld [vmem:[#allocation5 + $0x428] ss:$16 sps:$4 sm:$0xff]   ;;  %v4534_v53 = vld [vmem:[#allocation5 + $0x70c] ss:$16 sps:$4 sm:$0xff]  }
 0x11a   :  { %2189 = vmatprep.mubr.bf16.mxu1 %v4936_v52  ;;  %v4478_v52 = vld [vmem:[#allocation5 + $0x628] ss:$16 sps:$4 sm:$0xff]   ;;  %5778 = vst [vmem:[#allocation19_spill] sm:$0xff] %v5022_v4 }
 0x11b   :  { %2217 = vmatpush1.bf16.msra.mxu0 %v4457_v12  ;;  %v4529_v12 = vld [vmem:[#allocation5 + $0x508] ss:$16 sps:$4 sm:$0xff]  }
 0x11c   :  { %2290 = vmatpush1.bf16.msra.mxu1 %v4460_v13  ;;  %2218 = vmatprep.subr.bf16.mxu0 %v4465_v54  ;;  %v4532_v13 = vld [vmem:[#allocation5 + $0x708] ss:$16 sps:$4 sm:$0xff]   ;;  %v5025_v54 = vsub.s32 0, %v5022_v4 }
 0x11d   :  { %2291 = vmatprep.subr.bf16.mxu1 %v4468_v7  ;;  %v5027_v7 = vld [vmem:[#allocation7] sm:$0xf] }
 0x11e   :  { %2117 = vmatmul.mubr.bf16.gmra.mxu0 %v4934_v48  ;;  %v4484_v48 = vld [vmem:[#allocation5 + $0x608] ss:$16 sps:$4 sm:$0xff]   ;;  %5779 = vst [vmem:[#allocation20_spill] sm:$0xff] %v5025_v54 }
 0x11f   :  { %2190 = vmatmul.mubr.bf16.gmra.mxu1 %v4941_v61  ;;  %2219 = vmatpush1.bf16.msra.mxu0 %v4463_v24  ;;  %v4492_v61 = vld [vmem:[#allocation5 + $0x7ec] ss:$16 sps:$4 sm:$0xff]   ;;  %v5030_v24 = vsub.s32 1, %v5022_v4 }
 0x120   :  { %2292 = vmatpush1.bf16.msra.mxu1 %v4466_v32  ;;  %2220 = vmatprep.subr.bf16.mxu0 %v4471_v8  ;;  %v5034_v32 = vrot.slane %v5027_v7, %v5025_v54 }
 0x121   :  { %2293 = vmatprep.subr.bf16.mxu1 %v4474_v9  ;;  %2126 = vmatprep.mubr.bf16.mxu0 %v4944_v2  ;;  %v4487_v2 = vld [vmem:[#allocation5 + $0x5e8] ss:$16 sps:$4 sm:$0xff]   ;;  %5780 = vst [vmem:[#allocation21_spill] sm:$0xff] %v5030_v24  ;;  %v5038_v8 = vrot.slane %v5027_v7, %v5030_v24 }
 0x122   :  { %2199 = vmatprep.mubr.bf16.mxu1 %v4948_v10  ;;  %v4490_v10 = vld [vmem:[#allocation5 + $0x7e8] ss:$16 sps:$4 sm:$0xff]  }
 0x123   :  { %2221 = vmatpush1.bf16.msra.mxu0 %v4469_v15 }
 0x124   :  { %2294 = vmatpush1.bf16.msra.mxu1 %v4472_v28  ;;  %2222 = vmatprep.subr.bf16.mxu0 %v4477_v16 }
 0x125   :  { %2295 = vmatprep.subr.bf16.mxu1 %v4480_v39 }
 0x126   :  { %2127 = vmatmul.mubr.bf16.gmra.mxu0 %v4946_v6  ;;  %v4493_v6 = vld [vmem:[#allocation5 + $0x5c8] ss:$16 sps:$4 sm:$0xff]  }
 0x127   :  { %2200 = vmatmul.mubr.bf16.gmra.mxu1 %v4953_v19  ;;  %2223 = vmatpush1.bf16.msra.mxu0 %v4475_v44  ;;  %v4496_v19 = vld [vmem:[#allocation5 + $0x7c8] ss:$16 sps:$4 sm:$0xff]  }
 0x128   :  { %2296 = vmatpush1.bf16.msra.mxu1 %v4478_v52  ;;  %2224 = vmatprep.subr.bf16.mxu0 %v4483_v17 }
 0x129   :  { %2297 = vmatprep.subr.bf16.mxu1 %v4486_v18  ;;  %2242 = vmatprep.mubr.bf16.mxu0 %v4956_v31  ;;  %v4499_v31 = vld [vmem:[#allocation5 + $0x5a8] ss:$16 sps:$4 sm:$0xff]  }
 0x12a   :  { %2315 = vmatprep.mubr.bf16.mxu1 %v4958_v34  ;;  %v4502_v34 = vld [vmem:[#allocation5 + $0x7a8] ss:$16 sps:$4 sm:$0xff]  }
 0x12b   :  { %2225 = vmatpush1.bf16.msra.mxu0 %v4481_v22 }
 0x12c   :  { %2298 = vmatpush1.bf16.msra.mxu1 %v4484_v48  ;;  %2226 = vmatprep.subr.bf16.mxu0 %v4489_v23 }
 0x12d   :  { %2299 = vmatprep.subr.bf16.mxu1 %v4492_v61 }
 0x12f   :  { %2227 = vmatpush2.bf16.msra.mxu0 %v4487_v2 }
 0x130   :  { %2300 = vmatpush2.bf16.msra.mxu1 %v4490_v10  ;;  %2228 = vmatprep.subr.bf16.mxu0 %v4495_v26 }
 0x131   :  { %2301 = vmatprep.subr.bf16.mxu1 %v4498_v27 }
 0x133   :  { %2229 = vmatpush2.bf16.msra.mxu0 %v4493_v6 }
 0x134   :  { %2302 = vmatpush2.bf16.msra.mxu1 %v4496_v19  ;;  %2230 = vmatprep.subr.bf16.mxu0 %v4501_v33 }
 0x135   :  { %2303 = vmatprep.subr.bf16.mxu1 %v4504_v35 }
 0x137   :  { %2231 = vmatpush2.bf16.msra.mxu0 %v4499_v31 }
 0x138   :  { %2304 = vmatpush2.bf16.msra.mxu1 %v4502_v34  ;;  %2232 = vmatprep.subr.bf16.mxu0 %v4507_v37 }
 0x139   :  { %2305 = vmatprep.subr.bf16.mxu1 %v4510_v38 }
 0x13b   :  { %2233 = vmatpush2.bf16.msra.mxu0 %v4505_v41 }
 0x13c   :  { %2306 = vmatpush2.bf16.msra.mxu1 %v4508_v42  ;;  %2234 = vmatprep.subr.bf16.mxu0 %v4513_v45 }
 0x13d   :  { %2307 = vmatprep.subr.bf16.mxu1 %v4516_v46 }
 0x13f   :  { %2235 = vmatpush2.bf16.msra.mxu0 %v4511_v50 }
 0x140   :  { %2308 = vmatpush2.bf16.msra.mxu1 %v4514_v51  ;;  %2236 = vmatprep.subr.bf16.mxu0 %v4519_v55 }
 0x141   :  { %2309 = vmatprep.subr.bf16.mxu1 %v4522_v56 }
 0x143   :  { %2237 = vmatpush2.bf16.msra.mxu0 %v4517_v57 }
 0x144   :  { %2310 = vmatpush2.bf16.msra.mxu1 %v4520_v58  ;;  %2238 = vmatprep.subr.bf16.mxu0 %v4525_v62 }
 0x145   :  { %2311 = vmatprep.subr.bf16.mxu1 %v4528_v0 }
 0x147   :  { %2239 = vmatpush2.bf16.msra.mxu0 %v4523_v1 }
 0x148   :  { %2312 = vmatpush2.bf16.msra.mxu1 %v4526_v3  ;;  %2240 = vmatprep.subr.bf16.mxu0 %v4531_v5 }
 0x149   :  { %2313 = vmatprep.subr.bf16.mxu1 %v4534_v53 }
 0x14b   :  { %2241 = vmatpush2.bf16.msra.mxu0 %v4529_v12 }
 0x14c   :  { %2314 = vmatpush2.bf16.msra.mxu1 %v4532_v13 }
 0x14e   :  { %v1806_v9 = vpop.f32.mrf.mxu0  ;;  %2243 = vmatmul.mubr.bf16.vlgmr.msra.gmra.mxu0 %v4962_v20 }
 0x14f   :  { %v1879_v15 = vpop.f32.mrf.mxu1  ;;  %2316 = vmatmul.mubr.bf16.vlgmr.msra.gmra.mxu1 %v4964_v21  ;;  %v1807_v28 = vadd.f32 %v1806_v9, %v5034_v32  ;;  %2252 = vmatprep.mubr.bf16.mxu0 %v4966_v30 }
 0x150   :  { %2325 = vmatprep.mubr.bf16.mxu1 %v4968_v36  ;;  %v1808_v16 = vpop.f32.mrf.mxu0 }
 0x151   :  { %v1881_v39 = vpop.f32.mrf.mxu1  ;;  %v5045_v44 = vadd.f32 %v1879_v15, %v1807_v28  ;;  %v1809_v52 = vadd.f32 %v1808_v16, %v5038_v8 }
 0x152   :  { %v1810_v17 = vpop.f32.mrf.mxu0 }
 0x153   :  { %v1883_v18 = vpop.f32.mrf.mxu1  ;;  %v5048_v22 = vadd.f32 %v1881_v39, %v1809_v52  ;;  %v1811_v20 = vadd.f32 %v1810_v17, %v5034_v32 }
 0x154   :  { %v1812_v48 = vpop.f32.mrf.mxu0 }
 0x155   :  { %v5051_v21 = vadd.f32 %v1883_v18, %v1811_v20  ;;  %v1813_v23 = vadd.f32 %v1812_v48, %v5038_v8  ;;  %v1885_v30 = vpop.f32.mrf.mxu1 }
 0x156   :  { %2253 = vmatmul.mubr.bf16.gmra.mxu0 %v4974_v47  ;;  %v1816_v36 = vpop.f32.mrf.mxu0 }
 0x157   :  { %2326 = vmatmul.mubr.bf16.gmra.mxu1 %v4976_v49  ;;  %v5056_v61 = vadd.f32 %v1885_v30, %v1813_v23  ;;  %2262 = vmatprep.mubr.bf16.mxu0 %v4978_v59  ;;  %v1817_v2 = vadd.f32 %v1816_v36, %v5034_v32  ;;  %v1889_v27 = vpop.f32.mrf.mxu1 }
 0x158   :  { %2335 = vmatprep.mubr.bf16.mxu1 %v4980_v63  ;;  %v1818_v10 = vpop.f32.mrf.mxu0 }
 0x159   :  { %v1819_v26 = vadd.f32 %v1818_v10, %v5038_v8  ;;  %v5062_v6 = vadd.f32 %v1889_v27, %v1817_v2  ;;  %v1891_v33 = vpop.f32.mrf.mxu1 }
 0x15a   :  { %v1820_v19 = vpop.f32.mrf.mxu0 }
 0x15b   :  { %v1821_v47 = vadd.f32 %v1820_v19, %v5034_v32  ;;  %v5065_v49 = vadd.f32 %v1891_v33, %v1819_v26  ;;  %v1893_v59 = vpop.f32.mrf.mxu1 }
 0x15c   :  { %v1822_v35 = vpop.f32.mrf.mxu0 }
 0x15d   :  { %v1823_v31 = vadd.f32 %v1822_v35, %v5038_v8  ;;  %v5070_v63 = vadd.f32 %v1893_v59, %v1821_v47  ;;  %v1895_v38 = vpop.f32.mrf.mxu1 }
 0x15e   :  { %2263 = vmatmul.mubr.bf16.gmra.mxu0 %v4986_v11  ;;  %v1826_v34 = vpop.f32.mrf.mxu0 }
 0x15f   :  { %2336 = vmatmul.mubr.bf16.gmra.mxu1 %v4988_v14  ;;  %2272 = vmatprep.mubr.bf16.mxu0 %v4990_v25  ;;  %v1827_v37 = vadd.f32 %v1826_v34, %v5034_v32  ;;  %v1896_v41 = vadd.f32 %v1895_v38, %v1823_v31  ;;  %v1899_v46 = vpop.f32.mrf.mxu1 }
 0x160   :  { %2345 = vmatprep.mubr.bf16.mxu1 %v4992_v29  ;;  %v1828_v42 = vpop.f32.mrf.mxu0 }
 0x161   :  { %v1829_v45 = vadd.f32 %v1828_v42, %v5038_v8  ;;  %v1900_v50 = vadd.f32 %v1899_v46, %v1827_v37  ;;  %v1901_v14 = vpop.f32.mrf.mxu1 }
 0x162   :  { %v1830_v51 = vpop.f32.mrf.mxu0 }
 0x163   :  { %v1831_v11 = vadd.f32 %v1830_v51, %v5034_v32  ;;  %v1902_v55 = vadd.f32 %v1901_v14, %v1829_v45  ;;  %v1903_v25 = vpop.f32.mrf.mxu1 }
 0x164   :  { %v1832_v56 = vpop.f32.mrf.mxu0 }
 0x165   :  { %v1833_v57 = vadd.f32 %v1832_v56, %v5038_v8  ;;  %v1904_v29 = vadd.f32 %v1903_v25, %v1831_v11  ;;  %v1905_v62 = vpop.f32.mrf.mxu1 }
 0x166   :  { %2273 = vmatmul.mubr.bf16.gmra.mxu0 %v4998_v40  ;;  %v1836_v58 = vpop.f32.mrf.mxu0 }
 0x167   :  { %2346 = vmatmul.mubr.bf16.gmra.mxu1 %v5000_v43  ;;  %v1837_v60 = vadd.f32 %v1836_v58, %v5034_v32  ;;  %v1906_v0 = vadd.f32 %v1905_v62, %v1833_v57  ;;  %v1909_v5 = vpop.f32.mrf.mxu1 }
 0x168   :  { %v1838_v1 = vpop.f32.mrf.mxu0 }
 0x169   :  { %v1839_v3 = vadd.f32 %v1838_v1, %v5038_v8  ;;  %v1910_v53 = vadd.f32 %v1909_v5, %v1837_v60  ;;  %v1911_v9 = vpop.f32.mrf.mxu1 }
 0x16a   :  { %v1840_v12 = vpop.f32.mrf.mxu0 }
 0x16b   :  { %v1841_v13 = vadd.f32 %v1840_v12, %v5034_v32  ;;  %v1912_v15 = vadd.f32 %v1911_v9, %v1839_v3  ;;  %v1913_v43 = vpop.f32.mrf.mxu1 }
 0x16c   :  { %v1842_v28 = vpop.f32.mrf.mxu0 }
 0x16d   :  { %v1843_v40 = vadd.f32 %v1842_v28, %v5038_v8  ;;  %v1914_v16 = vadd.f32 %v1913_v43, %v1841_v13  ;;  %v1915_v39 = vpop.f32.mrf.mxu1 }
 0x16f   :  { %v1916_v52 = vadd.f32 %v1915_v39, %v1843_v40 }
 0x18e   :  { %v1952_v17 = vpop.f32.mrf.mxu0 }
 0x18f   :  { %v2025_v18 = vpop.f32.mrf.mxu1  ;;  %v1953_v20 = vadd.f32 %v1952_v17, %v5045_v44 }
 0x190   :  { %v1954_v48 = vpop.f32.mrf.mxu0 }
 0x191   :  { %v2027_v23 = vpop.f32.mrf.mxu1  ;;  %v5085_v30 = vadd.f32 %v2025_v18, %v1953_v20  ;;  %v1955_v36 = vadd.f32 %v1954_v48, %v5048_v22 }
 0x192   :  { %v1956_v32 = vpop.f32.mrf.mxu0 }
 0x193   :  { %v2029_v2 = vpop.f32.mrf.mxu1  ;;  %v5088_v10 = vadd.f32 %v2027_v23, %v1955_v36  ;;  %v1957_v8 = vadd.f32 %v1956_v32, %v5051_v21 }
 0x194   :  { %v1958_v26 = vpop.f32.mrf.mxu0 }
 0x195   :  { %v2031_v27 = vpop.f32.mrf.mxu1  ;;  %v5091_v19 = vadd.f32 %v2029_v2, %v1957_v8  ;;  %v1959_v47 = vadd.f32 %v1958_v26, %v5056_v61 }
 0x196   :  { %v1962_v33 = vpop.f32.mrf.mxu0 }
 0x197   :  { %v2035_v44 = vpop.f32.mrf.mxu1  ;;  %v5094_v35 = vadd.f32 %v2031_v27, %v1959_v47  ;;  %v1963_v31 = vadd.f32 %v1962_v33, %v5062_v6  ;;  %v4537_v27 = vld [vmem:[#allocation10 + $0x74] ss:$8 sps:$4 sm:$0xff]   ;;  %v4538_v33 = vld [vmem:[#allocation10 + $0x170] ss:$8 sps:$4 sm:$0xff]  }
 0x198   :  { %v1964_v59 = vpop.f32.mrf.mxu0  ;;  %v4540_v47 = vld [vmem:[#allocation10 + $0x174] ss:$8 sps:$4 sm:$0xff]   ;;  %3157 = vmatprep.subr.bf16.mxu0 %v4537_v27 }
 0x199   :  { %v2037_v22 = vpop.f32.mrf.mxu1  ;;  %v1965_v34 = vadd.f32 %v1964_v59, %v5065_v49  ;;  %v5098_v37 = vadd.f32 %v2035_v44, %v1963_v31  ;;  %3230 = vmatprep.subr.bf16.mxu1 %v4540_v47  ;;  %v4543_v31 = vld [vmem:[#allocation10 + $0x64] ss:$8 sps:$4 sm:$0xff]   ;;  %v4565_v47 = vld [vmem:[#allocation10 + $0x20] ss:$8 sps:$4 sm:$0xff]  }
 0x19a   :  { %v1966_v38 = vpop.f32.mrf.mxu0  ;;  %3231 = vmatpush1.bf16.msra.mxu1 %v4538_v33  ;;  %v4546_v59 = vld [vmem:[#allocation10 + $0x164] ss:$8 sps:$4 sm:$0xff]  }
 0x19b   :  { %v2039_v21 = vpop.f32.mrf.mxu1  ;;  %v1967_v42 = vadd.f32 %v1966_v38, %v5070_v63  ;;  %v5101_v45 = vadd.f32 %v2037_v22, %v1965_v34  ;;  %v4541_v22 = vld [vmem:[#allocation10 + $0x60] ss:$8 sps:$4 sm:$0xff]   ;;  %3232 = vmatprep.subr.bf16.mxu1 %v4546_v59  ;;  %v4576_v59 = vld [vmem:[#allocation10 + $0x114] ss:$8 sps:$4 sm:$0xff]  }
 0x19c   :  { %v1968_v46 = vpop.f32.mrf.mxu0  ;;  %v4544_v34 = vld [vmem:[#allocation10 + $0x160] ss:$8 sps:$4 sm:$0xff]  }
 0x19d   :  { %v2041_v61 = vpop.f32.mrf.mxu1  ;;  %v1969_v51 = vadd.f32 %v1968_v46, %v1896_v41  ;;  %v5103_v11 = vadd.f32 %v2039_v21, %v1967_v42  ;;  %v4549_v42 = vld [vmem:[#allocation10 + $0x54] ss:$8 sps:$4 sm:$0xff]  }
 0x19e   :  { %v1972_v14 = vpop.f32.mrf.mxu0  ;;  %3233 = vmatpush1.bf16.msra.mxu1 %v4544_v34  ;;  %v4552_v46 = vld [vmem:[#allocation10 + $0x154] ss:$8 sps:$4 sm:$0xff]  }
 0x19f   :  { %v2045_v56 = vpop.f32.mrf.mxu1  ;;  %v1973_v6 = vadd.f32 %v1972_v14, %v1900_v50  ;;  %v5105_v57 = vadd.f32 %v2041_v61, %v1969_v51  ;;  %v5140_v61 = vmax.f32 %v5091_v19, 0.0  ;;  %v4547_v51 = vld [vmem:[#allocation10 + $0x50] ss:$8 sps:$4 sm:$0xff]   ;;  %3234 = vmatprep.subr.bf16.mxu1 %v4552_v46 }
 0x1a0   :  { %v1974_v25 = vpop.f32.mrf.mxu0  ;;  %v4550_v14 = vld [vmem:[#allocation10 + $0x150] ss:$8 sps:$4 sm:$0xff]  }
 0x1a1   :  { %v2047_v49 = vpop.f32.mrf.mxu1  ;;  %v1975_v58 = vadd.f32 %v1974_v25, %v1902_v55  ;;  %v5107_v60 = vadd.f32 %v2045_v56, %v1973_v6  ;;  %5781 = vst [vmem:[#allocation22_spill] sm:$0xff] %v5140_v61  ;;  %v5147_v25 = vmax.f32 %v5085_v30, 0.0  ;;  %v4571_v46 = vld [vmem:[#allocation10 + $0x10] ss:$8 sps:$4 sm:$0xff]  }
 0x1a2   :  { %v1976_v62 = vpop.f32.mrf.mxu0  ;;  %3235 = vmatpush1.bf16.msra.mxu1 %v4550_v14 }
 0x1a3   :  { %v2049_v1 = vpop.f32.mrf.mxu1  ;;  %v1977_v63 = vadd.f32 %v1976_v62, %v1904_v29  ;;  %v5109_v3 = vadd.f32 %v2047_v49, %v1975_v58  ;;  %5782 = vst [vmem:[#allocation23_spill] sm:$0xff] %v5147_v25  ;;  %v5150_v49 = vmax.f32 %v5098_v37, 0.0  ;;  %v4555_v58 = vld [vmem:[#allocation10 + $0x44] ss:$8 sps:$4 sm:$0xff]   ;;  %v2388_v19 = vadd.f32 %v5140_v61, %v5147_v25 }
 0x1a4   :  { %v1978_v5 = vpop.f32.mrf.mxu0  ;;  %v4558_v62 = vld [vmem:[#allocation10 + $0x144] ss:$8 sps:$4 sm:$0xff]   ;;  %v5163_v37 = vmax.f32 %v5107_v60, 0.0  ;;  %v5174_v60 = vmax.f32 %v5094_v35, 0.0 }
 0x1a5   :  { %v2051_v12 = vpop.f32.mrf.mxu1  ;;  %v1979_v41 = vadd.f32 %v1978_v5, %v1906_v0  ;;  %v5111_v13 = vadd.f32 %v2049_v1, %v1977_v63  ;;  %5783 = vst [vmem:[#allocation24_spill] sm:$0xff] %v5150_v49  ;;  %v5155_v1 = vmax.f32 %v5103_v11, 0.0  ;;  %v4553_v63 = vld [vmem:[#allocation10 + $0x40] ss:$8 sps:$4 sm:$0xff]   ;;  %3236 = vmatprep.subr.bf16.mxu1 %v4558_v62  ;;  %v2389_v30 = vadd.f32 %v2388_v19, %v5150_v49  ;;  %v4579_v19 = vld [vmem:[#allocation10 + $0x4] ss:$8 sps:$4 sm:$0xff]  }
 0x1a6   :  { %v1982_v9 = vpop.f32.mrf.mxu0  ;;  %v4556_v5 = vld [vmem:[#allocation10 + $0x140] ss:$8 sps:$4 sm:$0xff]   ;;  %5784 = vst [vmem:[#allocation25_spill] sm:$0xff] %v5163_v37  ;;  %v5202_v34 = vmax.f32 %v5109_v3, 0.0  ;;  %v4582_v3 = vld [vmem:[#allocation10 + $0x104] ss:$8 sps:$4 sm:$0xff]  }
 0x1a7   :  { %v2055_v28 = vpop.f32.mrf.mxu1  ;;  %v1983_v50 = vadd.f32 %v1982_v9, %v1910_v53  ;;  %v5113_v40 = vadd.f32 %v2051_v12, %v1979_v41  ;;  %3237 = vmatpush1.bf16.msra.mxu1 %v4556_v5  ;;  %v4561_v9 = vld [vmem:[#allocation10 + $0x34] ss:$8 sps:$4 sm:$0xff]   ;;  %v2390_v11 = vadd.f32 %v2389_v30, %v5155_v1 }
 0x1a8   :  { %v1984_v43 = vpop.f32.mrf.mxu0 }
 0x1a9   :  { %v2057_v39 = vpop.f32.mrf.mxu1  ;;  %v1985_v55 = vadd.f32 %v1984_v43, %v1912_v15  ;;  %v5115_v17 = vadd.f32 %v2055_v28, %v1983_v50  ;;  %v4564_v28 = vld [vmem:[#allocation10 + $0x134] ss:$8 sps:$4 sm:$0xff]   ;;  %v5167_v50 = vmax.f32 %v5111_v13, 0.0  ;;  %v4559_v43 = vld [vmem:[#allocation10 + $0x30] ss:$8 sps:$4 sm:$0xff]   ;;  %v5181_v13 = vmax.f32 %v5088_v10, 0.0 }
 0x1aa   :  { %v1986_v18 = vpop.f32.mrf.mxu0  ;;  %3238 = vmatprep.subr.bf16.mxu1 %v4564_v28  ;;  %v5211_v62 = vmax.f32 %v5113_v40, 0.0  ;;  %v4580_v28 = vld [vmem:[#allocation10 + $0x100] ss:$8 sps:$4 sm:$0xff]  }
 0x1ab   :  { %v2059_v20 = vpop.f32.mrf.mxu1  ;;  %v1987_v29 = vadd.f32 %v1986_v18, %v1914_v16  ;;  %v5117_v48 = vadd.f32 %v2057_v39, %v1985_v55  ;;  %v4535_v16 = vld [vmem:[#allocation10 + $0x70] ss:$8 sps:$4 sm:$0xff]   ;;  %5785 = vst [vmem:[#allocation26_spill] sm:$0xff] %v5167_v50  ;;  %v2401_v10 = vadd.f32 %v5174_v60, %v5181_v13 }
 0x1ac   :  { %v1988_v23 = vpop.f32.mrf.mxu0  ;;  %3158 = vmatpush1.bf16.msra.mxu0 %v4535_v16  ;;  %v4562_v39 = vld [vmem:[#allocation10 + $0x130] ss:$8 sps:$4 sm:$0xff]   ;;  %v4568_v16 = vld [vmem:[#allocation10 + $0x120] ss:$8 sps:$4 sm:$0xff]   ;;  %5788 = vst [vmem:[#allocation29_spill] sm:$0xff] %v5211_v62 }
 0x1ad   :  { %v2061_v36 = vpop.f32.mrf.mxu1  ;;  %v1989_v0 = vadd.f32 %v1988_v23, %v1916_v52  ;;  %v5119_v32 = vadd.f32 %v2059_v20, %v1987_v29  ;;  %3159 = vmatprep.subr.bf16.mxu0 %v4543_v31  ;;  %v2391_v20 = vadd.f32 %v2390_v11, %v5163_v37  ;;  %v5178_v29 = vmax.f32 %v5115_v17, 0.0  ;;  %3239 = vmatpush1.bf16.msra.mxu1 %v4562_v39  ;;  %v4567_v23 = vld [vmem:[#allocation10 + $0x24] ss:$8 sps:$4 sm:$0xff]  }
 0x1ae   :  { %v5197_v31 = vmax.f32 %v5105_v57, 0.0  ;;  %v5215_v5 = vmax.f32 %v5117_v48, 0.0 }
 0x1af   :  { %v5121_v2 = vadd.f32 %v2061_v36, %v1989_v0  ;;  %5786 = vst [vmem:[#allocation27_spill] sm:$0xff] %v5178_v29  ;;  %v4570_v36 = vld [vmem:[#allocation10 + $0x124] ss:$8 sps:$4 sm:$0xff]   ;;  %v5184_v0 = vmax.f32 %v5101_v45, 0.0  ;;  %v2392_v27 = vadd.f32 %v2391_v20, %v5167_v50  ;;  %v5188_v35 = vmax.f32 %v5119_v32, 0.0 }
 0x1b0   :  { %3160 = vmatpush1.bf16.msra.mxu0 %v4541_v22  ;;  %3240 = vmatprep.subr.bf16.mxu1 %v4570_v36  ;;  %v4573_v32 = vld [vmem:[#allocation10 + $0x14] ss:$8 sps:$4 sm:$0xff]   ;;  %5789 = vst [vmem:[#allocation30_spill] sm:$0xff] %v5215_v5  ;;  %v4628_v50 = vld [vmem:[#allocation10 + $0x180] ss:$8 sps:$4 sm:$0xff]  }
 0x1b1   :  { %3161 = vmatprep.subr.bf16.mxu0 %v4549_v42  ;;  %5787 = vst [vmem:[#allocation28_spill] sm:$0xff] %v5188_v35  ;;  %v2393_v45 = vadd.f32 %v2392_v27, %v5178_v29  ;;  %3241 = vmatpush1.bf16.msra.mxu1 %v4568_v16  ;;  %v2402_v22 = vadd.f32 %v2401_v10, %v5184_v0  ;;  %v5223_v39 = vmax.f32 %v5121_v2, 0.0  ;;  %v4585_v20 = vld [vmem:[#allocation10 + $0xf4] ss:$8 sps:$4 sm:$0xff]   ;;  %v4583_v27 = vld [vmem:[#allocation10 + $0xf0] ss:$8 sps:$4 sm:$0xff]  }
 0x1b2   :  { %3242 = vmatprep.subr.bf16.mxu1 %v4576_v59  ;;  %v4591_v2 = vld [vmem:[#allocation10 + $0xe4] ss:$8 sps:$4 sm:$0xff]  }
 0x1b3   :  { %v2394_v42 = vadd.f32 %v2393_v45, %v5188_v35  ;;  %v2403_v57 = vadd.f32 %v2402_v22, %v5197_v31  ;;  %5790 = vst [vmem:[#allocation31_spill] sm:$0xff] %v5223_v39  ;;  %v4589_v22 = vld [vmem:[#allocation10 + $0xe0] ss:$8 sps:$4 sm:$0xff]  }
 0x1b4   :  { %3162 = vmatpush1.bf16.msra.mxu0 %v4547_v51  ;;  %v4574_v51 = vld [vmem:[#allocation10 + $0x110] ss:$8 sps:$4 sm:$0xff]  }
 0x1b5   :  { %3163 = vmatprep.subr.bf16.mxu0 %v4555_v58  ;;  %3243 = vmatpush1.bf16.msra.mxu1 %v4574_v51  ;;  %v2395_v30 = vrot.slane %v2394_v42, 4 }
 0x1b6   :  { %3244 = vmatprep.subr.bf16.mxu1 %v4582_v3  ;;  %v4600_v3 = vld [vmem:[#allocation10 + $0x1d4] ss:$8 sps:$4 sm:$0xff]  }
 0x1b7   :  { %v2396_v36 = vadd.f32 %v2395_v30, %v2394_v42  ;;  %v4595_v30 = vld [vmem:[#allocation10 + $0xd0] ss:$8 sps:$4 sm:$0xff]  }
 0x1b8   :  { %3164 = vmatpush1.bf16.msra.mxu0 %v4553_v63  ;;  %v2404_v63 = vadd.f32 %v2403_v57, %v5202_v34 }
 0x1b9   :  { %3165 = vmatprep.subr.bf16.mxu0 %v4561_v9  ;;  %v4577_v9 = vld [vmem:[#allocation10] ss:$8 sps:$4 sm:$0xff]   ;;  %3245 = vmatpush1.bf16.msra.mxu1 %v4580_v28  ;;  %v2397_v59 = vrot.slane %v2396_v36, 2 }
 0x1ba   :  { %v2405_v40 = vadd.f32 %v2404_v63, %v5211_v62 }
 0x1bb   :  { %v2398_v63 = vadd.f32 %v2397_v59, %v2396_v36  ;;  %v4609_v36 = vld [vmem:[#allocation10 + $0xb4] ss:$8 sps:$4 sm:$0xff]  }
 0x1bc   :  { %3166 = vmatpush1.bf16.msra.mxu0 %v4559_v43  ;;  %v2406_v48 = vadd.f32 %v2405_v40, %v5215_v5  ;;  %v4612_v59 = vld [vmem:[#allocation10 + $0x1b4] ss:$8 sps:$4 sm:$0xff]  }
 0x1bd   :  { %3167 = vmatprep.subr.bf16.mxu0 %v4567_v23  ;;  %v4588_v23 = vld [vmem:[#allocation10 + $0x1f4] ss:$8 sps:$4 sm:$0xff]  }
 0x1be   :  { %3246 = vmatprep.subr.bf16.mxu1 %v4588_v23  ;;  %v2407_v45 = vadd.f32 %v2406_v48, %v5223_v39  ;;  %v4603_v23 = vld [vmem:[#allocation10 + $0xc4] ss:$8 sps:$4 sm:$0xff]  }
 0x1bf   :  { %v4606_v48 = vld [vmem:[#allocation10 + $0x1c4] ss:$8 sps:$4 sm:$0xff]  }
 0x1c0   :  { %3168 = vmatpush1.bf16.msra.mxu0 %v4565_v47  ;;  %v4586_v47 = vld [vmem:[#allocation10 + $0x1f0] ss:$8 sps:$4 sm:$0xff]   ;;  %v2408_v57 = vrot.slane %v2407_v45, 4 }
 0x1c1   :  { %3169 = vmatprep.subr.bf16.mxu0 %v4573_v32  ;;  %3247 = vmatpush2.bf16.msra.mxu1 %v4586_v47  ;;  %v4594_v32 = vld [vmem:[#allocation10 + $0x1e4] ss:$8 sps:$4 sm:$0xff]   ;;  %v4601_v47 = vld [vmem:[#allocation10 + $0xc0] ss:$8 sps:$4 sm:$0xff]  }
 0x1c2   :  { %3248 = vmatprep.subr.bf16.mxu1 %v4594_v32 }
 0x1c4   :  { %3170 = vmatpush1.bf16.msra.mxu0 %v4571_v46  ;;  %v4592_v46 = vld [vmem:[#allocation10 + $0x1e0] ss:$8 sps:$4 sm:$0xff]  }
 0x1c5   :  { %3171 = vmatprep.subr.bf16.mxu0 %v4579_v19  ;;  %3249 = vmatpush2.bf16.msra.mxu1 %v4592_v46  ;;  %v4597_v19 = vld [vmem:[#allocation10 + $0xd4] ss:$8 sps:$4 sm:$0xff]  }
 0x1c6   :  { %3250 = vmatprep.subr.bf16.mxu1 %v4600_v3  ;;  %v4618_v3 = vld [vmem:[#allocation10 + $0x1a4] ss:$8 sps:$4 sm:$0xff]  }
 0x1c8   :  { %3172 = vmatpush1.bf16.msra.mxu0 %v4577_v9  ;;  %v4598_v9 = vld [vmem:[#allocation10 + $0x1d0] ss:$8 sps:$4 sm:$0xff]  }
 0x1c9   :  { %3173 = vmatprep.subr.bf16.mxu0 %v4585_v20  ;;  %v2409_v20 = vadd.f32 %v2408_v57, %v2407_v45  ;;  %3251 = vmatpush2.bf16.msra.mxu1 %v4598_v9  ;;  %v4610_v45 = vld [vmem:[#allocation10 + $0x1b0] ss:$8 sps:$4 sm:$0xff]   ;;  %v4615_v57 = vld [vmem:[#allocation10 + $0xa4] ss:$8 sps:$4 sm:$0xff]  }
 0x1ca   :  { %3252 = vmatprep.subr.bf16.mxu1 %v4606_v48  ;;  %v4616_v48 = vld [vmem:[#allocation10 + $0x1a0] ss:$8 sps:$4 sm:$0xff]  }
 0x1cb   :  { %v2410_v46 = vrot.slane %v2409_v20, 2 }
 0x1cc   :  { %3174 = vmatpush2.bf16.msra.mxu0 %v4583_v27  ;;  %v2399_v27 = vrot.slane %v2398_v63, 1 }
 0x1cd   :  { %3175 = vmatprep.subr.bf16.mxu0 %v4591_v2  ;;  %v4604_v2 = vld [vmem:[#allocation10 + $0x1c0] ss:$8 sps:$4 sm:$0xff]   ;;  %v2411_v54 = vadd.f32 %v2410_v46, %v2409_v20  ;;  %v5257_v20 = vsub.s32 3, %v5022_v4  ;;  %v4619_v46 = vld [vmem:[#allocation10 + $0x90] ss:$8 sps:$4 sm:$0xff]  }
 0x1ce   :  { %v5123_v53 = vpop.f32.mrf.mxu0  ;;  %3253 = vmatpush2.bf16.msra.mxu1 %v4604_v2  ;;  %v4624_v2 = vld [vmem:[#allocation10 + $0x194] ss:$8 sps:$4 sm:$0xff]  }
 0x1cf   :  { %v5125_v8 = vpop.f32.mrf.mxu1  ;;  %3254 = vmatprep.subr.bf16.mxu1 %v4612_v59  ;;  %5792 = vst [vmem:[#allocation33_spill] sm:$0xff] %v5257_v20 }
 0x1d0   :  { %v5127_v26 = vpop.f32.mrf.mxu0  ;;  %3176 = vmatpush2.bf16.msra.mxu0 %v4589_v22 }
 0x1d1   :  { %v5129_v15 = vpop.f32.mrf.mxu1  ;;  %3177 = vmatprep.subr.bf16.mxu0 %v4597_v19  ;;  %v4607_v19 = vld [vmem:[#allocation10 + $0xb0] ss:$8 sps:$4 sm:$0xff]  }
 0x1d2   :  { %v5131_v52 = vpop.f32.mrf.mxu0  ;;  %3255 = vmatpush2.bf16.msra.mxu1 %v4610_v45 }
 0x1d3   :  { %v5133_v44 = vpop.f32.mrf.mxu1  ;;  %3256 = vmatprep.subr.bf16.mxu1 %v4618_v3  ;;  %v4627_v3 = vld [vmem:[#allocation10 + $0x84] ss:$8 sps:$4 sm:$0xff]  }
 0x1d4   :  { %v5135_v38 = vpop.f32.mrf.mxu0  ;;  %3178 = vmatpush2.bf16.msra.mxu0 %v4595_v30  ;;  %v2400_v30 = vadd.f32 %v2399_v27, %v2398_v63  ;;  %v2412_v27 = vrot.slane %v2411_v54, 1 }
 0x1d5   :  { %v5137_v21 = vpop.f32.mrf.mxu1  ;;  %3179 = vmatprep.subr.bf16.mxu0 %v4603_v23  ;;  %v4613_v23 = vld [vmem:[#allocation10 + $0xa0] ss:$8 sps:$4 sm:$0xff]  }
 0x1d6   :  { %v5142_v56 = vpop.f32.mrf.mxu0  ;;  %v5247_v35 = vmul.f32 0.015625, %v2400_v30  ;;  %3257 = vmatpush2.bf16.msra.mxu1 %v4616_v48  ;;  %v4630_v30 = vld [vmem:[#allocation10 + $0x184] ss:$8 sps:$4 sm:$0xff]   ;;  %v2413_v5 = vadd.f32 %v2412_v27, %v2411_v54 }
 0x1d7   :  { %v5144_v6 = vpop.f32.mrf.mxu1  ;;  %3258 = vmatprep.subr.bf16.mxu1 %v4624_v2  ;;  %v4625_v2 = vld [vmem:[#allocation10 + $0x80] ss:$8 sps:$4 sm:$0xff]  }
 0x1d8   :  { %v5157_v12 = vpop.f32.mrf.mxu0  ;;  %3180 = vmatpush2.bf16.msra.mxu0 %v4601_v47  ;;  %v4621_v47 = vld [vmem:[#allocation10 + $0x94] ss:$8 sps:$4 sm:$0xff]   ;;  %v2445_v39 = vsub.f32 %v5147_v25, %v5247_v35  ;;  %v2449_v29 = vsub.f32 %v5140_v61, %v5247_v35 }
 0x1d9   :  { %v5159_v41 = vpop.f32.mrf.mxu1  ;;  %3181 = vmatprep.subr.bf16.mxu0 %v4609_v36  ;;  %v5250_v36 = vsub.s32 2, %v5022_v4 }
 0x1da   :  { %v5169_v55 = vpop.f32.mrf.mxu0  ;;  %v2481_v37 = vmul.f32 %v2449_v29, %v2449_v29 }
 0x1db   :  { %v5171_v18 = vpop.f32.mrf.mxu1  ;;  %5791 = vst [vmem:[#allocation32_spill] sm:$0xff] %v5250_v36  ;;  %v5267_v4 = vrot.slane %v5027_v7, %v5250_v36  ;;  %v2477_v36 = vmul.f32 %v2445_v39, %v2445_v39 }
 0x1dc   :  { %v5190_v33 = vpop.f32.mrf.mxu0  ;;  %3182 = vmatpush2.bf16.msra.mxu0 %v4607_v19  ;;  %v4622_v19 = vld [vmem:[#allocation10 + $0x190] ss:$8 sps:$4 sm:$0xff]  }
 0x1dd   :  { %v5192_v17 = vpop.f32.mrf.mxu1  ;;  %3183 = vmatprep.subr.bf16.mxu0 %v4615_v57  ;;  %3259 = vmatpush2.bf16.msra.mxu1 %v4622_v19  ;;  %v2103_v25 = vadd.f32 %v5131_v52, %v5267_v4  ;;  %v2099_v54 = vadd.f32 %v5123_v53, %v5267_v4  ;;  %v2109_v27 = vadd.f32 %v5142_v56, %v5267_v4 }
 0x1de   :  { %v5205_v14 = vpop.f32.mrf.mxu0  ;;  %3260 = vmatprep.subr.bf16.mxu1 %v4630_v30  ;;  %v5294_v56 = vsub.f32 %v5150_v49, %v5247_v35 }
 0x1df   :  { %v5207_v58 = vpop.f32.mrf.mxu1  ;;  %v2176_v29 = vadd.f32 %v5133_v44, %v2103_v25  ;;  %v2182_v44 = vadd.f32 %v5144_v6, %v2109_v27 }
 0x1e0   :  { %v5217_v11 = vpop.f32.mrf.mxu0  ;;  %3184 = vmatpush2.bf16.msra.mxu0 %v4613_v23 }
 0x1e1   :  { %v5219_v43 = vpop.f32.mrf.mxu1  ;;  %3185 = vmatprep.subr.bf16.mxu0 %v4621_v47  ;;  %v5273_v47 = vrot.slane %v5027_v7, %v5257_v20  ;;  %v5283_v20 = vmul.f32 0.015625, %v2413_v5  ;;  %3261 = vmatpush2.bf16.msra.mxu1 %v4628_v50  ;;  %v5296_v5 = vadd.f32 %v2481_v37, %v2477_v36  ;;  %v2119_v37 = vadd.f32 %v5205_v14, %v5267_v4 }
 0x1e2   :  { %v5226_v16 = vpop.f32.mrf.mxu0 }
 0x1e3   :  { %v5228_v10 = vpop.f32.mrf.mxu1  ;;  %v2105_v7 = vadd.f32 %v5135_v38, %v5273_v47  ;;  %v2101_v52 = vadd.f32 %v5127_v26, %v5273_v47  ;;  %v2111_v53 = vadd.f32 %v5157_v12, %v5273_v47  ;;  %v2113_v38 = vadd.f32 %v5169_v55, %v5267_v4 }
 0x1e4   :  { %v5231_v51 = vpop.f32.mrf.mxu0  ;;  %3186 = vmatpush2.bf16.msra.mxu0 %v4619_v46  ;;  %v2172_v26 = vadd.f32 %v5125_v8, %v2099_v54  ;;  %v2115_v25 = vadd.f32 %v5190_v33, %v5273_v47  ;;  %v5314_v27 = vsub.f32 %v5184_v0, %v5283_v20 }
 0x1e5   :  { %v5233_v42 = vpop.f32.mrf.mxu1  ;;  %3187 = vmatprep.subr.bf16.mxu0 %v4627_v3  ;;  %v2178_v50 = vadd.f32 %v5137_v21, %v2105_v7  ;;  %v2174_v49 = vadd.f32 %v5129_v15, %v2101_v52  ;;  %v2184_v8 = vadd.f32 %v5159_v41, %v2111_v53  ;;  %v2186_v21 = vadd.f32 %v5171_v18, %v2113_v38 }
 0x1e6   :  { %v5235_v28 = vpop.f32.mrf.mxu0  ;;  %v2121_v15 = vadd.f32 %v5217_v11, %v5273_v47  ;;  %v2192_v53 = vadd.f32 %v5207_v58, %v2119_v37  ;;  %v2123_v38 = vadd.f32 %v5226_v16, %v5267_v4 }
 0x1e7   :  { %v5237_v40 = vpop.f32.mrf.mxu1 }
 0x1e8   :  { %v5239_v32 = vpop.f32.mrf.mxu0  ;;  %3188 = vmatpush2.bf16.msra.mxu0 %v4625_v2  ;;  %v2446_v2 = vsub.f32 %v5181_v13, %v5283_v20 }
 0x1e9   :  { %v5241_v22 = vpop.f32.mrf.mxu1 }
 0x1ea   :  { %v5243_v9 = vpop.f32.mrf.mxu0 }
 0x1eb   :  { %v5245_v24 = vpop.f32.mrf.mxu1 }
 0x1ec   :  { %v5252_v59 = vpop.f32.mrf.mxu0 }
 0x1ed   :  { %v5254_v63 = vpop.f32.mrf.mxu1 }
 0x20e   :  { %v2244_v45 = vpop.f32.mrf.mxu0 }
 0x20f   :  { %v5259_v57 = vpop.f32.mrf.mxu1  ;;  %v2245_v36 = vadd.f32 %v2244_v45, %v2172_v26  ;;  %v2188_v45 = vadd.f32 %v5192_v17, %v2115_v25  ;;  %v2129_v25 = vadd.f32 %v5235_v28, %v5267_v4 }
 0x210   :  { %v2246_v23 = vpop.f32.mrf.mxu0 }
 0x211   :  { %v5269_v48 = vpop.f32.mrf.mxu1  ;;  %v2247_v14 = vadd.f32 %v2246_v23, %v2174_v49  ;;  %v2318_v26 = vadd.f32 %v5259_v57, %v2245_v36 }
 0x212   :  { %v2248_v61 = vpop.f32.mrf.mxu0 }
 0x213   :  { %v2321_v62 = vpop.f32.mrf.mxu1  ;;  %v2249_v12 = vadd.f32 %v2248_v61, %v2176_v29  ;;  %v2450_v61 = vsub.f32 %v5174_v60, %v5283_v20  ;;  %v2320_v58 = vadd.f32 %v5269_v48, %v2247_v14  ;;  %v5333_v36 = vmax.f32 %v2318_v26, 0.0 }
 0x214   :  { %v2250_v46 = vpop.f32.mrf.mxu0 }
 0x215   :  { %v2323_v19 = vpop.f32.mrf.mxu1  ;;  %v2251_v6 = vadd.f32 %v2250_v46, %v2178_v50  ;;  %v2322_v41 = vadd.f32 %v2321_v62, %v2249_v12  ;;  %v2478_v50 = vmul.f32 %v2446_v2, %v2446_v2  ;;  %v2482_v16 = vmul.f32 %v2450_v61, %v2450_v61 }
 0x216   :  { %v2254_v39 = vpop.f32.mrf.mxu0 }
 0x217   :  { %v2327_v3 = vpop.f32.mrf.mxu1  ;;  %v2255_v54 = vadd.f32 %v2254_v39, %v2182_v44  ;;  %v2125_v39 = vadd.f32 %v5231_v51, %v5273_v47  ;;  %v2324_v11 = vadd.f32 %v2323_v19, %v2251_v6  ;;  %v2194_v44 = vadd.f32 %v5219_v43, %v2121_v15 }
 0x218   :  { %v2256_v30 = vpop.f32.mrf.mxu0  ;;  %v2196_v19 = vadd.f32 %v5228_v10, %v2123_v38 }
 0x219   :  { %v2329_v55 = vpop.f32.mrf.mxu1  ;;  %v2257_v52 = vadd.f32 %v2256_v30, %v2184_v8  ;;  %v2328_v49 = vadd.f32 %v2327_v3, %v2255_v54  ;;  %v5329_v30 = vmax.f32 %v2322_v41, 0.0  ;;  %v2198_v3 = vadd.f32 %v5233_v42, %v2125_v39 }
 0x21a   :  { %v2258_v7 = vpop.f32.mrf.mxu0  ;;  %v5335_v8 = vmax.f32 %v2324_v11, 0.0  ;;  %v2458_v11 = vsub.f32 %v5197_v31, %v5283_v20 }
 0x21b   :  { %v2331_v33 = vpop.f32.mrf.mxu1  ;;  %v2259_v18 = vadd.f32 %v2258_v7, %v2186_v21  ;;  %v2330_v51 = vadd.f32 %v2329_v55, %v2257_v52  ;;  %v5337_v28 = vmax.f32 %v2328_v49, 0.0  ;;  %v2131_v55 = vadd.f32 %v5239_v32, %v5273_v47 }
 0x21c   :  { %v2260_v46 = vpop.f32.mrf.mxu0  ;;  %v2202_v7 = vadd.f32 %v5237_v40, %v2129_v25  ;;  %v2414_v42 = vadd.f32 %v5329_v30, %v5333_v36  ;;  %v2133_v52 = vadd.f32 %v5243_v9, %v5267_v4  ;;  %v2135_v32 = vadd.f32 %v5252_v59, %v5273_v47 }
 0x21d   :  { %v2333_v29 = vpop.f32.mrf.mxu1  ;;  %v2261_v23 = vadd.f32 %v2260_v46, %v2188_v45  ;;  %v2332_v37 = vadd.f32 %v2331_v33, %v2259_v18  ;;  %v5342_v33 = vmax.f32 %v2320_v58, 0.0  ;;  %v5346_v61 = vmax.f32 %v2330_v51, 0.0 }
 0x21e   :  { %v2264_v17 = vpop.f32.mrf.mxu0  ;;  %v2204_v4 = vadd.f32 %v5241_v22, %v2131_v55  ;;  %v2522_v47 = vadd.f32 %v2482_v16, %v2478_v50  ;;  %v2206_v25 = vadd.f32 %v5245_v24, %v2133_v52  ;;  %v2486_v22 = vmul.f32 %v5314_v27, %v5314_v27 }
 0x21f   :  { %v2337_v62 = vpop.f32.mrf.mxu1  ;;  %v2265_v12 = vadd.f32 %v2264_v17, %v2192_v53  ;;  %v2334_v48 = vadd.f32 %v2333_v29, %v2261_v23  ;;  %v5348_v15 = vmax.f32 %v2332_v37, 0.0  ;;  %v2427_v46 = vadd.f32 %v5335_v8, %v5342_v33 }
 0x220   :  { %v2266_v57 = vpop.f32.mrf.mxu0  ;;  %v2415_v29 = vadd.f32 %v2414_v42, %v5337_v28  ;;  %v2208_v37 = vadd.f32 %v5254_v63, %v2135_v32  ;;  %v2485_v27 = vmul.f32 %v5294_v56, %v5294_v56 }
 0x221   :  { %v2339_v2 = vpop.f32.mrf.mxu1  ;;  %v2267_v43 = vadd.f32 %v2266_v57, %v2194_v44  ;;  %v2338_v21 = vadd.f32 %v2337_v62, %v2265_v12  ;;  %v5357_v53 = vmax.f32 %v2334_v48, 0.0  ;;  %v2428_v49 = vadd.f32 %v2427_v46, %v5346_v61 }
 0x222   :  { %v2268_v6 = vpop.f32.mrf.mxu0  ;;  %v2416_v23 = vadd.f32 %v2415_v29, %v5348_v15  ;;  %v2457_v48 = vsub.f32 %v5155_v1, %v5247_v35  ;;  %v2510_v42 = vadd.f32 %v5296_v5, %v2485_v27 }
 0x223   :  { %v2341_v54 = vpop.f32.mrf.mxu1  ;;  %v2269_v10 = vadd.f32 %v2268_v6, %v2196_v19  ;;  %v2340_v14 = vadd.f32 %v2339_v2, %v2267_v43  ;;  %v5359_v38 = vmax.f32 %v2338_v21, 0.0  ;;  %v2429_v50 = vadd.f32 %v2428_v49, %v5357_v53 }
 0x224   :  { %v2270_v45 = vpop.f32.mrf.mxu0  ;;  %v2523_v21 = vadd.f32 %v2522_v47, %v2486_v22  ;;  %v2489_v29 = vmul.f32 %v2457_v48, %v2457_v48 }
 0x225   :  { %v2343_v41 = vpop.f32.mrf.mxu1  ;;  %v2342_v40 = vadd.f32 %v2341_v54, %v2269_v10  ;;  %v2271_v18 = vadd.f32 %v2270_v45, %v2198_v3  ;;  %v5366_v17 = vmax.f32 %v2340_v14, 0.0  ;;  %v2417_v16 = vadd.f32 %v2416_v23, %v5359_v38 }
 0x226   :  { %v2274_v39 = vpop.f32.mrf.mxu0  ;;  %v2462_v14 = vsub.f32 %v5202_v34, %v5283_v20  ;;  %v2490_v45 = vmul.f32 %v2458_v11, %v2458_v11  ;;  %v2511_v11 = vadd.f32 %v2510_v42, %v2489_v29 }
 0x227   :  { %v2347_v26 = vpop.f32.mrf.mxu1  ;;  %v2344_v9 = vadd.f32 %v2343_v41, %v2271_v18  ;;  %v2275_v59 = vadd.f32 %v2274_v39, %v2202_v7  ;;  %v5369_v58 = vmax.f32 %v2342_v40, 0.0  ;;  %v2430_v63 = vadd.f32 %v2429_v50, %v5366_v17  ;;  %v5793_v18 = vld [vmem:[#allocation25_spill] sm:$0xff]  ;;  %v5796_v50 = vld [vmem:[#allocation30_spill] sm:$0xff] }
 0x228   :  { %v2276_v62 = vpop.f32.mrf.mxu0  ;;  %v2461_v46 = vsub.f32 %v5793_v18, %v5247_v35  ;;  %v2524_v39 = vadd.f32 %v2523_v21, %v2490_v45  ;;  %v2494_v47 = vmul.f32 %v2462_v14, %v2462_v14 }
 0x229   :  { %v2349_v44 = vpop.f32.mrf.mxu1  ;;  %v2348_v12 = vadd.f32 %v2347_v26, %v2275_v59  ;;  %v2277_v51 = vadd.f32 %v2276_v62, %v2204_v4  ;;  %v5376_v19 = vmax.f32 %v2344_v9, 0.0  ;;  %v2418_v54 = vadd.f32 %v2417_v16, %v5369_v58  ;;  %v5794_v9 = vld [vmem:[#allocation29_spill] sm:$0xff]  ;;  %v5795_v62 = vld [vmem:[#allocation26_spill] sm:$0xff] }
 0x22a   :  { %v2278_v57 = vpop.f32.mrf.mxu0  ;;  %v2466_v59 = vsub.f32 %v5794_v9, %v5283_v20  ;;  %v2470_v16 = vsub.f32 %v5796_v50, %v5283_v20 }
 0x22b   :  { %v2351_v2 = vpop.f32.mrf.mxu1  ;;  %v5378_v3 = vmax.f32 %v2348_v12, 0.0  ;;  %v2350_v24 = vadd.f32 %v2349_v44, %v2277_v51  ;;  %v2279_v43 = vadd.f32 %v2278_v57, %v2206_v25  ;;  %v2431_v52 = vadd.f32 %v2430_v63, %v5376_v19 }
 0x22c   :  { %v2280_v6 = vpop.f32.mrf.mxu0  ;;  %v2465_v44 = vsub.f32 %v5795_v62, %v5247_v35  ;;  %v2493_v25 = vmul.f32 %v2461_v46, %v2461_v46  ;;  %v2525_v12 = vadd.f32 %v2524_v39, %v2494_v47  ;;  %v2498_v57 = vmul.f32 %v2466_v59, %v2466_v59 }
 0x22d   :  { %v5386_v55 = vmax.f32 %v2350_v24, 0.0  ;;  %v2352_v7 = vadd.f32 %v2351_v2, %v2279_v43  ;;  %v2281_v10 = vadd.f32 %v2280_v6, %v2208_v37  ;;  %v2353_v41 = vpop.f32.mrf.mxu1  ;;  %v2419_v56 = vadd.f32 %v2418_v54, %v5378_v3  ;;  %v5797_v43 = vld [vmem:[#allocation27_spill] sm:$0xff] }
 0x22e   :  { %v2512_v37 = vadd.f32 %v2511_v11, %v2493_v25  ;;  %v2469_v48 = vsub.f32 %v5797_v43, %v5247_v35  ;;  %v2497_v27 = vmul.f32 %v2465_v44, %v2465_v44  ;;  %v2526_v21 = vadd.f32 %v2525_v12, %v2498_v57 }
 0x22f   :  { %v5393_v32 = vmax.f32 %v2352_v7, 0.0  ;;  %v2354_v40 = vadd.f32 %v2353_v41, %v2281_v10  ;;  %v2432_v26 = vadd.f32 %v2431_v52, %v5386_v55  ;;  %v5798_v7 = vld [vmem:[#allocation31_spill] sm:$0xff]  ;;  %v2502_v42 = vmul.f32 %v2470_v16, %v2470_v16  ;;  %v5799_v41 = vld [vmem:[#allocation28_spill] sm:$0xff] }
 0x230   :  { %v2513_v54 = vadd.f32 %v2512_v37, %v2497_v27  ;;  %v2474_v10 = vsub.f32 %v5798_v7, %v5283_v20  ;;  %v2473_v52 = vsub.f32 %v5799_v41, %v5247_v35 }
 0x231   :  { %v2420_v5 = vadd.f32 %v2419_v56, %v5393_v32  ;;  %v5399_v4 = vmax.f32 %v2354_v40, 0.0  ;;  %v2501_v56 = vmul.f32 %v2469_v48, %v2469_v48  ;;  %v2527_v40 = vadd.f32 %v2526_v21, %v2502_v42 }
 0x232   :  { %v2505_v11 = vmul.f32 %v2473_v52, %v2473_v52 }
 0x233   :  { %v2421_v49 = vrot.slane %v2420_v5, 4  ;;  %v2433_v23 = vadd.f32 %v2432_v26, %v5399_v4  ;;  %v2514_v39 = vadd.f32 %v2513_v54, %v2501_v56  ;;  %v2506_v26 = vmul.f32 %v2474_v10, %v2474_v10 }
 0x235   :  { %v2422_v51 = vadd.f32 %v2421_v49, %v2420_v5  ;;  %v2434_v22 = vrot.slane %v2433_v23, 4  ;;  %v2528_v59 = vadd.f32 %v2527_v40, %v2506_v26  ;;  %v2515_v25 = vadd.f32 %v2514_v39, %v2505_v11 }
 0x237   :  { %v2423_v2 = vrot.slane %v2422_v51, 2  ;;  %v2435_v24 = vadd.f32 %v2434_v22, %v2433_v23  ;;  %v2529_v37 = vrot.slane %v2528_v59, 4  ;;  %v2516_v48 = vrot.slane %v2515_v25, 4 }
 0x239   :  { %v2424_v63 = vadd.f32 %v2423_v2, %v2422_v51  ;;  %v2436_v6 = vrot.slane %v2435_v24, 2  ;;  %v2530_v42 = vadd.f32 %v2529_v37, %v2528_v59 }
 0x23b   :  { %v2425_v14 = vrot.slane %v2424_v63, 1  ;;  %v2437_v45 = vadd.f32 %v2436_v6, %v2435_v24 }
 0x23d   :  { %v2426_v46 = vadd.f32 %v2425_v14, %v2424_v63  ;;  %v2438_v29 = vrot.slane %v2437_v45, 1 }
 0x23f   :  { %v5414_v5 = vmul.f32 0.015625, %v2426_v46  ;;  %v2439_v44 = vadd.f32 %v2438_v29, %v2437_v45  ;;  %v2517_v29 = vadd.f32 %v2516_v48, %v2515_v25 }
 0x241   :  { %v2447_v47 = vsub.f32 %v5333_v36, %v5414_v5  ;;  %v2451_v49 = vsub.f32 %v5329_v30, %v5414_v5  ;;  %v2455_v23 = vsub.f32 %v5337_v28, %v5414_v5  ;;  %v2459_v12 = vsub.f32 %v5348_v15, %v5414_v5 }
 0x242   :  { %v2463_v16 = vsub.f32 %v5359_v38, %v5414_v5  ;;  %v5426_v24 = vmul.f32 0.015625, %v2439_v44  ;;  %v2467_v27 = vsub.f32 %v5369_v58, %v5414_v5  ;;  %v2471_v14 = vsub.f32 %v5378_v3, %v5414_v5 }
 0x243   :  { %v2479_v51 = vmul.f32 %v2447_v47, %v2447_v47  ;;  %v2483_v22 = vmul.f32 %v2451_v49, %v2451_v49  ;;  %v2487_v57 = vmul.f32 %v2455_v23, %v2455_v23  ;;  %v2491_v21 = vmul.f32 %v2459_v12, %v2459_v12 }
 0x244   :  { %v2448_v6 = vsub.f32 %v5342_v33, %v5426_v24  ;;  %v2452_v54 = vsub.f32 %v5335_v8, %v5426_v24  ;;  %v2456_v10 = vsub.f32 %v5346_v61, %v5426_v24  ;;  %v2495_v45 = vmul.f32 %v2463_v16, %v2463_v16 }
 0x245   :  { %v2535_v2 = vadd.f32 %v2483_v22, %v2479_v51  ;;  %v2460_v56 = vsub.f32 %v5357_v53, %v5426_v24  ;;  %v2475_v39 = vsub.f32 %v5393_v32, %v5414_v5  ;;  %v2499_v26 = vmul.f32 %v2467_v27, %v2467_v27 }
 0x246   :  { %v2480_v40 = vmul.f32 %v2448_v6, %v2448_v6  ;;  %v2484_v46 = vmul.f32 %v2452_v54, %v2452_v54  ;;  %v2464_v47 = vsub.f32 %v5366_v17, %v5426_v24  ;;  %v2488_v59 = vmul.f32 %v2456_v10, %v2456_v10 }
 0x247   :  { %v2536_v63 = vadd.f32 %v2535_v2, %v2487_v57  ;;  %v2531_v23 = vrot.slane %v2530_v42, 2  ;;  %v2503_v44 = vmul.f32 %v2471_v14, %v2471_v14  ;;  %v2468_v51 = vsub.f32 %v5376_v19, %v5426_v24 }
 0x248   :  { %v2548_v49 = vadd.f32 %v2484_v46, %v2480_v40  ;;  %v2492_v22 = vmul.f32 %v2460_v56, %v2460_v56  ;;  %v2518_v16 = vrot.slane %v2517_v29, 2  ;;  %v2507_v25 = vmul.f32 %v2475_v39, %v2475_v39 }
 0x249   :  { %v2537_v52 = vadd.f32 %v2536_v63, %v2491_v21  ;;  %v2472_v2 = vsub.f32 %v5386_v55, %v5426_v24  ;;  %v2496_v48 = vmul.f32 %v2464_v47, %v2464_v47  ;;  %v2532_v21 = vadd.f32 %v2531_v23, %v2530_v42 }
 0x24a   :  { %v2549_v37 = vadd.f32 %v2548_v49, %v2488_v59  ;;  %v2476_v6 = vsub.f32 %v5399_v4, %v5426_v24  ;;  %v2500_v54 = vmul.f32 %v2468_v51, %v2468_v51  ;;  %v2519_v14 = vadd.f32 %v2518_v16, %v2517_v29 }
 0x24b   :  { %v2538_v11 = vadd.f32 %v2537_v52, %v2495_v45  ;;  %v2504_v52 = vmul.f32 %v2472_v2, %v2472_v2  ;;  %v2533_v40 = vrot.slane %v2532_v21, 1 }
 0x24c   :  { %v2550_v27 = vadd.f32 %v2549_v37, %v2492_v22  ;;  %v2508_v39 = vmul.f32 %v2476_v6, %v2476_v6 }
 0x24d   :  { %v2539_v12 = vadd.f32 %v2538_v11, %v2499_v26  ;;  %v2520_v11 = vrot.slane %v2519_v14, 1  ;;  %v2534_v47 = vadd.f32 %v2533_v40, %v2532_v21 }
 0x24e   :  { %v2551_v10 = vadd.f32 %v2550_v27, %v2496_v48 }
 0x24f   :  { %v2540_v57 = vadd.f32 %v2539_v12, %v2503_v44  ;;  %v2521_v23 = vadd.f32 %v2520_v11, %v2519_v14  ;;  %v2562_v37 = vmul.f32 0.015625, %v2534_v47 }
 0x250   :  { %v2552_v56 = vadd.f32 %v2551_v10, %v2500_v54  ;;  %v4822_v10 = vmov 1966171168  }
 0x251   :  { %v2541_v63 = vadd.f32 %v2540_v57, %v2507_v25  ;;  %v2561_v29 = vmul.f32 0.015625, %v2521_v23  ;;  %v2567_v2 = vadd.f32 1e-05, %v2562_v37  ;;  %v2581_v14 = vunpack.c.l.s4 %v4822_v10 }
 0x252   :  { %v2553_v26 = vadd.f32 %v2552_v56, %v2504_v52 }
 0x253   :  { %v2542_v45 = vrot.slane %v2541_v63, 4  ;;  %v2566_v27 = vadd.f32 1e-05, %v2561_v29  ;;  %4647 = vrsqrt.f32 %v2567_v2  ;;  %v5803_v29 = vld [vmem:[#allocation32_spill] sm:$0xff] }
 0x254   :  { %v2554_v49 = vadd.f32 %v2553_v26, %v2508_v39  ;;  %v5800_v39 = vld [vmem:[#allocation19_spill] sm:$0xff] }
 0x255   :  { %v2543_v46 = vadd.f32 %v2542_v45, %v2541_v63  ;;  %4649 = vrsqrt.f32 %v2566_v27  ;;  %v2582_v45 = vunpack.c.0.s8 %v2581_v14 }
 0x256   :  { %v2555_v42 = vrot.slane %v2554_v49, 4 }
 0x257   :  { %v2544_v59 = vrot.slane %v2543_v46, 2  ;;  %v5451_v26 = vsub.s32 %v2582_v45, %v5800_v39 }
 0x258   :  { %v2556_v22 = vadd.f32 %v2555_v42, %v2554_v49  ;;  %v2565_v42 = vld [vmem:[%s5743_s3] sm:$0xf] }
 0x259   :  { %v2545_v44 = vadd.f32 %v2544_v59, %v2543_v46 }
 0x25a   :  { %v2557_v25 = vrot.slane %v2556_v22, 2 }
 0x25b   :  { %v2546_v12 = vrot.slane %v2545_v44, 1 }
 0x25c   :  { %v2558_v16 = vadd.f32 %v2557_v25, %v2556_v22  ;;  %v5801_v22 = vld [vmem:[#allocation20_spill] sm:$0xff] }
 0x25d   :  { %v2547_v51 = vadd.f32 %v2546_v12, %v2545_v44 }
 0x25e   :  { %v2559_v48 = vrot.slane %v2558_v16, 1 }
 0x25f   :  { %v2563_v57 = vmul.f32 0.015625, %v2547_v51  ;;  %v5802_v51 = vld [vmem:[#allocation21_spill] sm:$0xff] }
 0x260   :  { %v2560_v63 = vadd.f32 %v2559_v48, %v2558_v16  ;;  %v4648_v52 = vpop.eup %4647 }
 0x261   :  { %v2568_v6 = vadd.f32 1e-05, %v2563_v57  ;;  %v5804_v57 = vld [vmem:[#allocation33_spill] sm:$0xff] }
 0x262   :  { %v2564_v54 = vmul.f32 0.015625, %v2560_v63  ;;  %v4650_v56 = vpop.eup %4649 }
 0x263   :  { %4651 = vrsqrt.f32 %v2568_v6  ;;  %v2578_v46 = vcombine.low %v4650_v56, %v4648_v52  ;;  %v2604_v52 = vld [vmem:[#allocation8] sm:$0xf] }
 0x264   :  { %v2569_v21 = vadd.f32 1e-05, %v2564_v54 }
 0x265   :  { %v2586_v49 = vrot.slane %v2578_v46, %v5451_v26  ;;  %v5805_v46 = vld [vmem:[#allocation23_spill] sm:$0xff] }
 0x266   :  { %4653 = vrsqrt.f32 %v2569_v21 }
 0x270   :  { %v4652_v40 = vpop.eup %4651 }
 0x273   :  { %v4654_v11 = vpop.eup %4653 }
 0x274   :  { %v2579_v59 = vcombine.low %v4652_v40, %v4654_v11  ;;  %v5806_v11 = vld [vmem:[#allocation22_spill] sm:$0xff] }
 0x276   :  { %v2593_v47 = vrot.slane %v2579_v59, %v5451_v26 }
 0x278   :  { %v2594_v44 = vcombine.low %v2586_v49, %v2593_v47 }
 0x27a   :  { %v2601_v23 = vrot.slane %v2594_v44, %v5451_v26 }
 0x27c   :  { %v2603_v12 = vmul.f32 %v2601_v23, %v2565_v42 }
 0x27e   :  { %v5460_v37 = vrot.slane %v2603_v12, %v5801_v22  ;;  %v5463_v25 = vrot.slane %v2603_v12, %v5802_v51  ;;  %v5466_v16 = vrot.slane %v2603_v12, %v5803_v29  ;;  %v5469_v2 = vrot.slane %v2603_v12, %v5804_v57 }
 0x280   :  { %v2629_v48 = vmul.f32 %v5469_v2, %v5426_v24  ;;  %v2626_v27 = vmul.f32 %v5460_v37, %v5247_v35  ;;  %v2627_v63 = vmul.f32 %v5463_v25, %v5283_v20  ;;  %v2628_v6 = vmul.f32 %v5466_v16, %v5414_v5 }
 0x281   :  { %v2661_v24 = vmul.f32 %v5463_v25, %v5181_v13  ;;  %v2665_v20 = vmul.f32 %v5463_v25, %v5174_v60  ;;  %v2663_v5 = vmul.f32 %v5469_v2, %v5342_v33  ;;  %v2667_v40 = vmul.f32 %v5469_v2, %v5335_v8 }
 0x282   :  { %v2634_v54 = vcombine.low %v2626_v27, %v2627_v63  ;;  %v2635_v21 = vcombine.low %v2628_v6, %v2629_v48  ;;  %v2660_v39 = vmul.f32 %v5460_v37, %v5805_v46  ;;  %v2664_v59 = vmul.f32 %v5460_v37, %v5806_v11 }
 0x283   :  { %v2662_v49 = vmul.f32 %v5466_v16, %v5333_v36  ;;  %v2666_v13 = vmul.f32 %v5466_v16, %v5329_v30  ;;  %v2669_v44 = vmul.f32 %v5463_v25, %v5184_v0  ;;  %v2673_v36 = vmul.f32 %v5463_v25, %v5197_v31 }
 0x284   :  { %v2642_v10 = vrot.slane %v2634_v54, %v5451_v26  ;;  %v2649_v14 = vrot.slane %v2635_v21, %v5451_v26  ;;  %v2671_v30 = vmul.f32 %v5469_v2, %v5346_v61  ;;  %v2675_v42 = vmul.f32 %v5469_v2, %v5357_v53 }
 0x285   :  { %v2681_v46 = vmul.f32 %v5463_v25, %v5794_v9 }
 0x286   :  { %v2650_v45 = vcombine.low %v2642_v10, %v2649_v14 }
 0x288   :  { %v2657_v56 = vrot.slane %v2650_v45, %v5451_v26 }
 0x28a   :  { %v2659_v35 = vsub.f32 %v2604_v52, %v2657_v56  ;;  %v5807_v52 = vld [vmem:[#allocation24_spill] sm:$0xff] }
 0x28b   :  { %v2668_v56 = vmul.f32 %v5460_v37, %v5807_v52  ;;  %v4640_v52 = vld [vmem:[#allocation11 + $0x18] sm:$0xff]  }
 0x28c   :  { %v5499_v60 = vrot.slane %v2659_v35, %v5802_v51  ;;  %v5502_v33 = vrot.slane %v2659_v35, %v5804_v57  ;;  %v5505_v8 = vrot.slane %v2659_v35, %v5801_v22  ;;  %v5508_v47 = vrot.slane %v2659_v35, %v5803_v29 }
 0x28e   :  { %v2714_v23 = vadd.f32 %v5499_v60, %v2661_v24  ;;  %v2718_v12 = vadd.f32 %v5499_v60, %v2665_v20  ;;  %v2716_v57 = vadd.f32 %v5502_v33, %v2663_v5  ;;  %v2720_v29 = vadd.f32 %v5502_v33, %v2667_v40 }
 0x28f   :  { %v2713_v48 = vadd.f32 %v5505_v8, %v2660_v39  ;;  %v2717_v0 = vadd.f32 %v5505_v8, %v2664_v59  ;;  %v2715_v31 = vadd.f32 %v5508_v47, %v2662_v49  ;;  %v2719_v27 = vadd.f32 %v5508_v47, %v2666_v13 }
 0x290   :  { %v2746_v61 = vpack.c.bf16 %v2718_v12, %v2714_v23  ;;  %v2748_v63 = vpack.c.bf16 %v2720_v29, %v2716_v57  ;;  %v2722_v53 = vadd.f32 %v5499_v60, %v2669_v44  ;;  %v2726_v6 = vadd.f32 %v5499_v60, %v2673_v36 }
 0x291   :  { %v2745_v54 = vpack.c.bf16 %v2717_v0, %v2713_v48  ;;  %v2747_v21 = vpack.c.bf16 %v2719_v27, %v2715_v31  ;;  %v2724_v10 = vadd.f32 %v5502_v33, %v2671_v30  ;;  %v2728_v14 = vadd.f32 %v5502_v33, %v2675_v42 }
 0x292   :  { %3189 = vmatprep.mubr.bf16.mxu0 %v2746_v61  ;;  %3262 = vmatprep.mubr.bf16.mxu1 %v2748_v63  ;;  %v2750_v45 = vpack.c.bf16 %v2726_v6, %v2722_v53  ;;  %v2672_v24 = vmul.f32 %v5460_v37, %v5155_v1  ;;  %v2670_v20 = vmul.f32 %v5466_v16, %v5337_v28 }
 0x293   :  { %3190 = vmatmul.mubr.bf16.vlgmr.msra.gmra.mxu0 %v2745_v54  ;;  %3263 = vmatmul.mubr.bf16.vlgmr.msra.gmra.mxu1 %v2747_v21  ;;  %v2752_v35 = vpack.c.bf16 %v2728_v14, %v2724_v10  ;;  %v2674_v5 = vmul.f32 %v5466_v16, %v5348_v15  ;;  %v2677_v40 = vmul.f32 %v5463_v25, %v5202_v34  ;;  %v4638_v14 = vld [vmem:[#allocation11 + $0x20] sm:$0xff]  }
 0x294   :  { %3199 = vmatprep.mubr.bf16.mxu0 %v2750_v45  ;;  %v2679_v39 = vmul.f32 %v5469_v2, %v5366_v17  ;;  %v2683_v1 = vmul.f32 %v5469_v2, %v5376_v19  ;;  %v2721_v11 = vadd.f32 %v5505_v8, %v2668_v56  ;;  %v2725_v28 = vadd.f32 %v5505_v8, %v2672_v24  ;;  %v4639_v45 = vld [vmem:[#allocation11 + $0x58] sm:$0xff]   ;;  %v4641_v56 = vld [vmem:[#allocation11 + $0x50] sm:$0xff]  }
 0x295   :  { %3272 = vmatprep.mubr.bf16.mxu1 %v2752_v35  ;;  %v2723_v15 = vadd.f32 %v5508_v47, %v2670_v20  ;;  %v2727_v59 = vadd.f32 %v5508_v47, %v2674_v5  ;;  %v2730_v34 = vadd.f32 %v5499_v60, %v2677_v40  ;;  %v2734_v49 = vadd.f32 %v5499_v60, %v2681_v46  ;;  %v4642_v24 = vld [vmem:[#allocation11 + $0x10] sm:$0xff]   ;;  %v4643_v35 = vld [vmem:[#allocation11 + $0x48] sm:$0xff]   ;;  %v4645_v46 = vld [vmem:[#allocation11 + $0x40] sm:$0xff]  }
 0x296   :  { %v2732_v9 = vadd.f32 %v5502_v33, %v2679_v39  ;;  %v2736_v17 = vadd.f32 %v5502_v33, %v2683_v1  ;;  %v2749_v13 = vpack.c.bf16 %v2725_v28, %v2721_v11  ;;  %v2691_v19 = vmul.f32 %v5469_v2, %v5399_v4  ;;  %v4644_v40 = vld [vmem:[#allocation11 + $0x8] sm:$0xff]   ;;  %v2825_v11 = vld [vmem:[%s5746_s6] sm:$0x3] }
 0x297   :  { %v2751_v44 = vpack.c.bf16 %v2727_v59, %v2723_v15  ;;  %v2754_v36 = vpack.c.bf16 %v2734_v49, %v2730_v34  ;;  %v2676_v42 = vmul.f32 %v5460_v37, %v5793_v18  ;;  %v2680_v23 = vmul.f32 %v5460_v37, %v5795_v62  ;;  %v4646_v59 = vld [vmem:[#allocation11] sm:$0xff]  }
 0x298   :  { %v2756_v30 = vpack.c.bf16 %v2736_v17, %v2732_v9  ;;  %v2678_v12 = vmul.f32 %v5466_v16, %v5359_v38  ;;  %v2682_v57 = vmul.f32 %v5466_v16, %v5369_v58  ;;  %v2685_v4 = vmul.f32 %v5463_v25, %v5796_v50 }
 0x299   :  { %v2689_v29 = vmul.f32 %v5463_v25, %v5798_v7  ;;  %v2687_v18 = vmul.f32 %v5469_v2, %v5386_v55  ;;  %v2729_v48 = vadd.f32 %v5505_v8, %v2676_v42  ;;  %v2733_v62 = vadd.f32 %v5505_v8, %v2680_v23 }
 0x29a   :  { %v2731_v38 = vadd.f32 %v5508_v47, %v2678_v12  ;;  %v2735_v0 = vadd.f32 %v5508_v47, %v2682_v57  ;;  %v2738_v58 = vadd.f32 %v5499_v60, %v2685_v4  ;;  %v2744_v27 = vadd.f32 %v5502_v33, %v2691_v19 }
 0x29b   :  { %3200 = vmatmul.mubr.bf16.gmra.mxu0 %v2749_v13  ;;  %3273 = vmatmul.mubr.bf16.gmra.mxu1 %v2751_v44  ;;  %v2742_v31 = vadd.f32 %v5499_v60, %v2689_v29  ;;  %v2740_v50 = vadd.f32 %v5502_v33, %v2687_v18  ;;  %v2753_v7 = vpack.c.bf16 %v2733_v62, %v2729_v48 }
 0x29c   :  { %3209 = vmatprep.mubr.bf16.mxu0 %v2754_v36  ;;  %3282 = vmatprep.mubr.bf16.mxu1 %v2756_v30  ;;  %v2755_v25 = vpack.c.bf16 %v2735_v0, %v2731_v38  ;;  %v2684_v2 = vmul.f32 %v5460_v37, %v5797_v43  ;;  %v2688_v63 = vmul.f32 %v5460_v37, %v5799_v41  ;;  %v4631_v41 = vld [vmem:[#allocation11 + $0x78] sm:$0xff]  }
 0x29d   :  { %v2758_v61 = vpack.c.bf16 %v2742_v31, %v2738_v58  ;;  %v2760_v55 = vpack.c.bf16 %v2744_v27, %v2740_v50  ;;  %v2686_v53 = vmul.f32 %v5466_v16, %v5378_v3  ;;  %v2690_v60 = vmul.f32 %v5466_v16, %v5393_v32  ;;  %v4632_v37 = vld [vmem:[#allocation11 + $0x38] sm:$0xff]   ;;  %4080 = vmatprep.subr.bf16.mxu0 %v4631_v41  ;;  %v4633_v3 = vld [vmem:[#allocation11 + $0x70] sm:$0xff]   ;;  %v4635_v16 = vld [vmem:[#allocation11 + $0x68] sm:$0xff]  }
 0x29e   :  { %v2737_v33 = vadd.f32 %v5505_v8, %v2684_v2  ;;  %v2741_v6 = vadd.f32 %v5505_v8, %v2688_v63  ;;  %4120 = vmatprep.subr.bf16.mxu1 %v4631_v41  ;;  %4081 = vmatpush3.bf16.msra.mxu0 %v4632_v37  ;;  %v4634_v32 = vld [vmem:[#allocation11 + $0x30] sm:$0xff]   ;;  %v4636_v8 = vld [vmem:[#allocation11 + $0x28] sm:$0xff]   ;;  %v5594_v9 = vrot.slane %v2825_v11, %v5801_v22 }
 0x29f   :  { %v2739_v54 = vadd.f32 %v5508_v47, %v2686_v53  ;;  %v2743_v43 = vadd.f32 %v5508_v47, %v2690_v60  ;;  %4128 = vmatpush3.bf16.msra.mxu1 %v4632_v37  ;;  %4082 = vmatprep.subr.bf16.mxu0 %v4633_v3  ;;  %v4637_v47 = vld [vmem:[#allocation11 + $0x60] sm:$0xff]   ;;  %v5597_v44 = vrot.slane %v2825_v11, %v5802_v51 }
 0x2a0   :  { %v2757_v21 = vpack.c.bf16 %v2741_v6, %v2737_v33  ;;  %4121 = vmatprep.subr.bf16.mxu1 %v4633_v3 }
 0x2a1   :  { %v2759_v10 = vpack.c.bf16 %v2743_v43, %v2739_v54 }
 0x2a2   :  { %4083 = vmatpush3.bf16.msra.mxu0 %v4634_v32 }
 0x2a3   :  { %3210 = vmatmul.mubr.bf16.gmra.mxu0 %v2753_v7  ;;  %3283 = vmatmul.mubr.bf16.gmra.mxu1 %v2755_v25 }
 0x2a4   :  { %3219 = vmatprep.mubr.bf16.mxu0 %v2758_v61  ;;  %3292 = vmatprep.mubr.bf16.mxu1 %v2760_v55 }
 0x2a5   :  { %4129 = vmatpush3.bf16.msra.mxu1 %v4634_v32  ;;  %4084 = vmatprep.subr.bf16.mxu0 %v4635_v16 }
 0x2a6   :  { %4122 = vmatprep.subr.bf16.mxu1 %v4635_v16  ;;  %4085 = vmatpush3.bf16.msra.mxu0 %v4636_v8 }
 0x2a7   :  { %4086 = vmatprep.subr.bf16.mxu0 %v4637_v47 }
 0x2a9   :  { %4130 = vmatpush3.bf16.msra.mxu1 %v4636_v8 }
 0x2aa   :  { %4123 = vmatprep.subr.bf16.mxu1 %v4637_v47  ;;  %4087 = vmatpush3.bf16.msra.mxu0 %v4638_v14 }
 0x2ab   :  { %3220 = vmatmul.mubr.bf16.gmra.mxu0 %v2757_v21  ;;  %3293 = vmatmul.mubr.bf16.gmra.mxu1 %v2759_v10 }
 0x2ac   :  { %4088 = vmatprep.subr.bf16.mxu0 %v4639_v45 }
 0x2ad   :  { %4131 = vmatpush3.bf16.msra.mxu1 %v4638_v14 }
 0x2ae   :  { %4124 = vmatprep.subr.bf16.mxu1 %v4639_v45  ;;  %4089 = vmatpush3.bf16.msra.mxu0 %v4640_v52 }
 0x2af   :  { %4090 = vmatprep.subr.bf16.mxu0 %v4641_v56 }
 0x2b1   :  { %4132 = vmatpush3.bf16.msra.mxu1 %v4640_v52 }
 0x2b2   :  { %4125 = vmatprep.subr.bf16.mxu1 %v4641_v56  ;;  %4091 = vmatpush3.bf16.msra.mxu0 %v4642_v24 }
 0x2b3   :  { %4092 = vmatprep.subr.bf16.mxu0 %v4643_v35 }
 0x2b5   :  { %4133 = vmatpush3.bf16.msra.mxu1 %v4642_v24 }
 0x2b6   :  { %4126 = vmatprep.subr.bf16.mxu1 %v4643_v35  ;;  %4093 = vmatpush3.bf16.msra.mxu0 %v4644_v40 }
 0x2b7   :  { %4094 = vmatprep.subr.bf16.mxu0 %v4645_v46 }
 0x2b9   :  { %4134 = vmatpush3.bf16.msra.mxu1 %v4644_v40 }
 0x2ba   :  { %4127 = vmatprep.subr.bf16.mxu1 %v4645_v46  ;;  %4095 = vmatpush3.bf16.msra.mxu0 %v4646_v59 }
 0x2bd   :  { %4135 = vmatpush3.bf16.msra.mxu1 %v4646_v59 }
 0x353   :  { %v3191_v20 = vpop.f32.mrf.mxu0  ;;  %v3264_v5 = vpop.f32.mrf.mxu1 }
 0x354   :  { %v3192_v42 = vadd.f32 %v3191_v20, %v5594_v9 }
 0x355   :  { %v3193_v39 = vpop.f32.mrf.mxu0  ;;  %v3266_v1 = vpop.f32.mrf.mxu1 }
 0x356   :  { %v3194_v29 = vadd.f32 %v3193_v39, %v5597_v44  ;;  %v3265_v58 = vadd.f32 %v3264_v5, %v3192_v42 }
 0x357   :  { %v3195_v28 = vpop.f32.mrf.mxu0  ;;  %v3268_v15 = vpop.f32.mrf.mxu1 }
 0x358   :  { %v3196_v19 = vadd.f32 %v3195_v28, %v5594_v9  ;;  %v3267_v61 = vadd.f32 %v3266_v1, %v3194_v29  ;;  %v5610_v6 = vmax.f32 %v3265_v58, 0.0 }
 0x359   :  { %v3197_v34 = vpop.f32.mrf.mxu0  ;;  %v3270_v49 = vpop.f32.mrf.mxu1 }
 0x35a   :  { %v3198_v23 = vadd.f32 %v3197_v34, %v5597_v44  ;;  %v3269_v18 = vadd.f32 %v3268_v15, %v3196_v19  ;;  %v5617_v32 = vmax.f32 %v3267_v61, 0.0 }
 0x35b   :  { %v3201_v17 = vpop.f32.mrf.mxu0  ;;  %v3274_v13 = vpop.f32.mrf.mxu1 }
 0x35c   :  { %v3202_v12 = vadd.f32 %v3201_v17, %v5594_v9  ;;  %v3271_v31 = vadd.f32 %v3270_v49, %v3198_v23  ;;  %v5608_v2 = vmax.f32 %v3269_v18, 0.0 }
 0x35d   :  { %v3203_v36 = vpop.f32.mrf.mxu0  ;;  %v3276_v30 = vpop.f32.mrf.mxu1 }
 0x35e   :  { %v3204_v48 = vadd.f32 %v3203_v36, %v5597_v44  ;;  %v3275_v50 = vadd.f32 %v3274_v13, %v3202_v12  ;;  %v5613_v43 = vmax.f32 %v3271_v31, 0.0  ;;  %v3319_v8 = vadd.f32 %v5608_v2, %v5610_v6 }
 0x35f   :  { %v3205_v57 = vpop.f32.mrf.mxu0  ;;  %v3278_v4 = vpop.f32.mrf.mxu1 }
 0x360   :  { %v3206_v62 = vadd.f32 %v3205_v57, %v5594_v9  ;;  %v3277_v63 = vadd.f32 %v3276_v30, %v3204_v48  ;;  %v5615_v21 = vmax.f32 %v3275_v50, 0.0  ;;  %v3332_v20 = vadd.f32 %v5613_v43, %v5617_v32 }
 0x361   :  { %v3207_v38 = vpop.f32.mrf.mxu0  ;;  %v3280_v0 = vpop.f32.mrf.mxu1 }
 0x362   :  { %v3208_v27 = vadd.f32 %v3207_v38, %v5597_v44  ;;  %v3279_v53 = vadd.f32 %v3278_v4, %v3206_v62  ;;  %v5622_v47 = vmax.f32 %v3277_v63, 0.0  ;;  %v3320_v5 = vadd.f32 %v3319_v8, %v5615_v21 }
 0x363   :  { %v3211_v7 = vpop.f32.mrf.mxu0  ;;  %v3284_v25 = vpop.f32.mrf.mxu1 }
 0x364   :  { %v3212_v55 = vadd.f32 %v3211_v7, %v5594_v9  ;;  %v3281_v10 = vadd.f32 %v3280_v0, %v3208_v27  ;;  %v5624_v14 = vmax.f32 %v3279_v53, 0.0  ;;  %v3333_v15 = vadd.f32 %v3332_v20, %v5622_v47 }
 0x365   :  { %v3213_v60 = vpop.f32.mrf.mxu0  ;;  %v3286_v33 = vpop.f32.mrf.mxu1 }
 0x366   :  { %v3214_v54 = vadd.f32 %v3213_v60, %v5597_v44  ;;  %v3285_v41 = vadd.f32 %v3284_v25, %v3212_v55  ;;  %v5630_v40 = vmax.f32 %v3281_v10, 0.0  ;;  %v3321_v59 = vadd.f32 %v3320_v5, %v5624_v14 }
 0x367   :  { %v3215_v37 = vpop.f32.mrf.mxu0  ;;  %v3288_v3 = vpop.f32.mrf.mxu1 }
 0x368   :  { %v3216_v16 = vadd.f32 %v3215_v37, %v5594_v9  ;;  %v3287_v45 = vadd.f32 %v3286_v33, %v3214_v54  ;;  %v5632_v46 = vmax.f32 %v3285_v41, 0.0  ;;  %v3334_v30 = vadd.f32 %v3333_v15, %v5630_v40 }
 0x369   :  { %v3217_v52 = vpop.f32.mrf.mxu0  ;;  %v3290_v56 = vpop.f32.mrf.mxu1 }
 0x36a   :  { %v3289_v24 = vadd.f32 %v3288_v3, %v3216_v16  ;;  %v3218_v35 = vadd.f32 %v3217_v52, %v5597_v44  ;;  %v5637_v34 = vmax.f32 %v3287_v45, 0.0  ;;  %v3322_v42 = vadd.f32 %v3321_v59, %v5632_v46 }
 0x36b   :  { %v3221_v39 = vpop.f32.mrf.mxu0  ;;  %v3294_v1 = vpop.f32.mrf.mxu1 }
 0x36c   :  { %v3291_v11 = vadd.f32 %v3290_v56, %v3218_v35  ;;  %v3222_v28 = vadd.f32 %v3221_v39, %v5594_v9  ;;  %v5639_v13 = vmax.f32 %v3289_v24, 0.0  ;;  %v3335_v48 = vadd.f32 %v3334_v30, %v5637_v34 }
 0x36d   :  { %v3223_v49 = vpop.f32.mrf.mxu0  ;;  %v3296_v17 = vpop.f32.mrf.mxu1 }
 0x36e   :  { %v3295_v19 = vadd.f32 %v3294_v1, %v3222_v28  ;;  %v3224_v36 = vadd.f32 %v3223_v49, %v5597_v44  ;;  %v5644_v57 = vmax.f32 %v3291_v11, 0.0  ;;  %v3323_v38 = vadd.f32 %v3322_v42, %v5639_v13 }
 0x36f   :  { %v3225_v23 = vpop.f32.mrf.mxu0  ;;  %v3298_v12 = vpop.f32.mrf.mxu1 }
 0x370   :  { %v5646_v4 = vmax.f32 %v3295_v19, 0.0  ;;  %v3297_v29 = vadd.f32 %v3296_v17, %v3224_v36  ;;  %v3226_v18 = vadd.f32 %v3225_v23, %v5594_v9  ;;  %v3336_v27 = vadd.f32 %v3335_v48, %v5644_v57 }
 0x371   :  { %v3227_v62 = vpop.f32.mrf.mxu0  ;;  %v3300_v50 = vpop.f32.mrf.mxu1 }
 0x372   :  { %v5651_v0 = vmax.f32 %v3297_v29, 0.0  ;;  %v3299_v58 = vadd.f32 %v3298_v12, %v3226_v18  ;;  %v3228_v31 = vadd.f32 %v3227_v62, %v5597_v44  ;;  %v3324_v7 = vadd.f32 %v3323_v38, %v5646_v4 }
 0x374   :  { %v5656_v25 = vmax.f32 %v3299_v58, 0.0  ;;  %v3301_v61 = vadd.f32 %v3300_v50, %v3228_v31  ;;  %v3337_v9 = vadd.f32 %v3336_v27, %v5651_v0 }
 0x376   :  { %v3325_v55 = vadd.f32 %v3324_v7, %v5656_v25  ;;  %v5660_v63 = vmax.f32 %v3301_v61, 0.0 }
 0x378   :  { %v3326_v53 = vrot.slane %v3325_v55, 4  ;;  %v3338_v60 = vadd.f32 %v3337_v9, %v5660_v63 }
 0x37a   :  { %v3327_v33 = vadd.f32 %v3326_v53, %v3325_v55  ;;  %v3339_v54 = vrot.slane %v3338_v60, 4 }
 0x37c   :  { %v3328_v44 = vrot.slane %v3327_v33, 2  ;;  %v3340_v10 = vadd.f32 %v3339_v54, %v3338_v60 }
 0x37e   :  { %v3329_v41 = vadd.f32 %v3328_v44, %v3327_v33  ;;  %v3341_v37 = vrot.slane %v3340_v10, 2 }
 0x380   :  { %v3330_v3 = vrot.slane %v3329_v41, 1  ;;  %v3342_v16 = vadd.f32 %v3341_v37, %v3340_v10 }
 0x382   :  { %v3331_v8 = vadd.f32 %v3330_v3, %v3329_v41  ;;  %v3343_v45 = vrot.slane %v3342_v16, 1 }
 0x384   :  { %v5663_v52 = vmul.f32 0.015625, %v3331_v8  ;;  %v3344_v20 = vadd.f32 %v3343_v45, %v3342_v16 }
 0x386   :  { %v3347_v56 = vsub.f32 %v5610_v6, %v5663_v52  ;;  %v3349_v24 = vsub.f32 %v5608_v2, %v5663_v52  ;;  %v3351_v35 = vsub.f32 %v5615_v21, %v5663_v52  ;;  %v3353_v5 = vsub.f32 %v5624_v14, %v5663_v52 }
 0x387   :  { %v3355_v11 = vsub.f32 %v5632_v46, %v5663_v52  ;;  %v5675_v59 = vmul.f32 0.015625, %v3344_v20  ;;  %v3357_v49 = vsub.f32 %v5639_v13, %v5663_v52  ;;  %v3359_v23 = vsub.f32 %v5646_v4, %v5663_v52 }
 0x388   :  { %v3363_v39 = vmul.f32 %v3347_v56, %v3347_v56  ;;  %v3365_v1 = vmul.f32 %v3349_v24, %v3349_v24  ;;  %v3367_v28 = vmul.f32 %v3351_v35, %v3351_v35  ;;  %v3369_v17 = vmul.f32 %v3353_v5, %v3353_v5 }
 0x389   :  { %v3348_v36 = vsub.f32 %v5617_v32, %v5675_v59  ;;  %v3350_v30 = vsub.f32 %v5613_v43, %v5675_v59  ;;  %v3352_v42 = vsub.f32 %v5622_v47, %v5675_v59  ;;  %v3371_v12 = vmul.f32 %v3355_v11, %v3355_v11 }
 0x38a   :  { %v3379_v15 = vadd.f32 %v3365_v1, %v3363_v39  ;;  %v3354_v18 = vsub.f32 %v5630_v40, %v5675_v59  ;;  %v3361_v38 = vsub.f32 %v5656_v25, %v5663_v52  ;;  %v3373_v58 = vmul.f32 %v3357_v49, %v3357_v49 }
 0x38b   :  { %v3364_v48 = vmul.f32 %v3348_v36, %v3348_v36  ;;  %v3366_v62 = vmul.f32 %v3350_v30, %v3350_v30  ;;  %v3356_v50 = vsub.f32 %v5637_v34, %v5675_v59  ;;  %v3368_v27 = vmul.f32 %v3352_v42, %v3352_v42 }
 0x38c   :  { %v3380_v19 = vadd.f32 %v3379_v15, %v3367_v28  ;;  %v3375_v61 = vmul.f32 %v3359_v23, %v3359_v23  ;;  %v3358_v55 = vsub.f32 %v5644_v57, %v5675_v59  ;;  %v3370_v53 = vmul.f32 %v3354_v18, %v3354_v18 }
 0x38d   :  { %v3392_v7 = vadd.f32 %v3366_v62, %v3364_v48  ;;  %v3377_v33 = vmul.f32 %v3361_v38, %v3361_v38  ;;  %v3360_v44 = vsub.f32 %v5651_v0, %v5675_v59  ;;  %v3372_v10 = vmul.f32 %v3356_v50, %v3356_v50 }
 0x38e   :  { %v3381_v29 = vadd.f32 %v3380_v19, %v3369_v17  ;;  %v3362_v3 = vsub.f32 %v5660_v63, %v5675_v59  ;;  %v3374_v16 = vmul.f32 %v3358_v55, %v3358_v55 }
 0x38f   :  { %v3393_v60 = vadd.f32 %v3392_v7, %v3368_v27  ;;  %v3376_v56 = vmul.f32 %v3360_v44, %v3360_v44 }
 0x390   :  { %v3382_v31 = vadd.f32 %v3381_v29, %v3371_v12  ;;  %v3378_v20 = vmul.f32 %v3362_v3, %v3362_v3 }
 0x391   :  { %v3394_v41 = vadd.f32 %v3393_v60, %v3370_v53 }
 0x392   :  { %v3383_v9 = vadd.f32 %v3382_v31, %v3373_v58  ;;  %v3407_v31 = vld [vmem:[%s5747_s7] sm:$0x3] }
 0x393   :  { %v3395_v8 = vadd.f32 %v3394_v41, %v3372_v10 }
 0x394   :  { %v3384_v54 = vadd.f32 %v3383_v9, %v3375_v61 }
 0x395   :  { %v3396_v24 = vadd.f32 %v3395_v8, %v3374_v16 }
 0x396   :  { %v3385_v37 = vadd.f32 %v3384_v54, %v3377_v33  ;;  %v3431_v33 = vld [vmem:[%s5748_s8] sm:$0x3] }
 0x397   :  { %v3397_v5 = vadd.f32 %v3396_v24, %v3376_v56 }
 0x398   :  { %v3386_v45 = vrot.slane %v3385_v37, 4 }
 0x399   :  { %v3398_v1 = vadd.f32 %v3397_v5, %v3378_v20 }
 0x39a   :  { %v3387_v35 = vadd.f32 %v3386_v45, %v3385_v37 }
 0x39b   :  { %v3399_v28 = vrot.slane %v3398_v1, 4 }
 0x39c   :  { %v3388_v39 = vrot.slane %v3387_v35, 2 }
 0x39d   :  { %v3400_v49 = vadd.f32 %v3399_v28, %v3398_v1 }
 0x39e   :  { %v3389_v11 = vadd.f32 %v3388_v39, %v3387_v35 }
 0x39f   :  { %v3401_v19 = vrot.slane %v3400_v49, 2 }
 0x3a0   :  { %v3390_v15 = vrot.slane %v3389_v11, 1 }
 0x3a1   :  { %v3402_v36 = vadd.f32 %v3401_v19, %v3400_v49 }
 0x3a2   :  { %v3391_v17 = vadd.f32 %v3390_v15, %v3389_v11 }
 0x3a3   :  { %v3403_v42 = vrot.slane %v3402_v36, 1 }
 0x3a4   :  { %v3405_v30 = vmul.f32 0.015625, %v3391_v17 }
 0x3a5   :  { %v3404_v23 = vadd.f32 %v3403_v42, %v3402_v36 }
 0x3a6   :  { %v3408_v12 = vadd.f32 1e-05, %v3405_v30 }
 0x3a7   :  { %v3406_v29 = vmul.f32 0.015625, %v3404_v23 }
 0x3a8   :  { %4655 = vrsqrt.f32 %v3408_v12 }
 0x3a9   :  { %v3409_v18 = vadd.f32 1e-05, %v3406_v29 }
 0x3ab   :  { %4657 = vrsqrt.f32 %v3409_v18 }
 0x3b5   :  { %v4656_v48 = vpop.eup %4655 }
 0x3b8   :  { %v4658_v62 = vpop.eup %4657 }
 0x3b9   :  { %v3414_v38 = vcombine.low %v4656_v48, %v4658_v62 }
 0x3bb   :  { %v3421_v58 = vrot.slane %v3414_v38, %v5451_v26 }
 0x3bd   :  { %v3428_v50 = vrot.slane %v3421_v58, %v5451_v26 }
 0x3bf   :  { %v3430_v27 = vmul.f32 %v3428_v50, %v3407_v31 }
 0x3c1   :  { %v3436_v7 = vrot.slane %v3430_v27, %v5801_v22  ;;  %v3440_v61 = vrot.slane %v3430_v27, %v5802_v51 }
 0x3c3   :  { %v3443_v9 = vmul.f32 %v3436_v7, %v5663_v52  ;;  %v3444_v55 = vmul.f32 %v3440_v61, %v5675_v59  ;;  %v3479_v44 = vmul.f32 %v3440_v61, %v5660_v63  ;;  %v3465_v41 = vmul.f32 %v3440_v61, %v5617_v32 }
 0x3c4   :  { %v3467_v37 = vmul.f32 %v3440_v61, %v5613_v43  ;;  %v3473_v52 = vmul.f32 %v3440_v61, %v5637_v34  ;;  %v3475_v59 = vmul.f32 %v3440_v61, %v5644_v57  ;;  %v3464_v3 = vmul.f32 %v3436_v7, %v5610_v6 }
 0x3c5   :  { %v3447_v53 = vcombine.low %v3443_v9, %v3444_v55  ;;  %v3466_v45 = vmul.f32 %v3436_v7, %v5608_v2  ;;  %v3474_v63 = vmul.f32 %v3436_v7, %v5639_v13  ;;  %v3469_v32 = vmul.f32 %v3440_v61, %v5622_v47 }
 0x3c6   :  { %v3471_v43 = vmul.f32 %v3440_v61, %v5630_v40  ;;  %v3477_v34 = vmul.f32 %v3440_v61, %v5651_v0  ;;  %v3468_v0 = vmul.f32 %v3436_v7, %v5615_v21  ;;  %v3470_v28 = vmul.f32 %v3436_v7, %v5624_v14  ;;  %v4063_v14 = vld [vmem:[%s5750_s10] ss:$0 sm:$0xff]  ;;  %s4823_s10 = smov [#allocation13]  }
 0x3c7   :  { %v3454_v60 = vrot.slane %v3447_v53, %v5451_v26  ;;  %v3476_v49 = vmul.f32 %v3436_v7, %v5646_v4  ;;  %v3478_v17 = vmul.f32 %v3436_v7, %v5656_v25  ;;  %s3728_s15 = sshll.u32 %s4823_s10, 4  ;;  %s3729_s15 = int_to_ptr.vmem [resolvable:$true] %s3728_s15 }
 0x3c8   :  { %s4779_s16 = scalar_lea.vmem %s3729_s15, 1024  ;;  %p4784_p3 = scmp.lt.s32.totalorder %s3729_s15, %s3729_s15 }
 0x3c9   :  { %v3461_v54 = vrot.slane %v3454_v60, %v5451_v26  ;;  %v3472_v26 = vmul.f32 %v3436_v7, %v5632_v46  ;;  %p4780_p2 = scmp.ne.s32.totalorder %s3729_s15, %s4779_s16  ;;  %p4785_p4 = scmp.lt.s32.totalorder %s4779_s16, %s4779_s16 }
 0x3cb   :  { %v3463_v10 = vsub.f32 %v3431_v33, %v3461_v54  ;;  %p4786_p5 = por %p4785_p4, %p4784_p3 }
 0x3cd   :  { %v3484_v16 = vrot.slane %v3463_v10, %v5801_v22  ;;  %v3488_v8 = vrot.slane %v3463_v10, %v5802_v51  ;;  %p4787_p6 = pnand %p4786_p5, %p4780_p2 }
 0x3cf   :  { %v3492_v56 = vadd.f32 %v3488_v8, %v3465_v41  ;;  %v3494_v57 = vadd.f32 %v3488_v8, %v3467_v37  ;;  %v3500_v24 = vadd.f32 %v3488_v8, %v3473_v52  ;;  %v3502_v6 = vadd.f32 %v3488_v8, %v3475_v59 }
 0x3d0   :  { %v3491_v35 = vadd.f32 %v3484_v16, %v3464_v3  ;;  %v3493_v22 = vadd.f32 %v3484_v16, %v3466_v45  ;;  %v3499_v20 = vadd.f32 %v3484_v16, %v3472_v26  ;;  %v3501_v51 = vadd.f32 %v3484_v16, %v3474_v63 }
 0x3d1   :  { %v3508_v5 = vpack.c.bf16 %v3494_v57, %v3492_v56  ;;  %v3512_v2 = vpack.c.bf16 %v3502_v6, %v3500_v24  ;;  %v3496_v39 = vadd.f32 %v3488_v8, %v3469_v32  ;;  %v3498_v46 = vadd.f32 %v3488_v8, %v3471_v43 }
 0x3d2   :  { %v3507_v1 = vpack.c.bf16 %v3493_v22, %v3491_v35  ;;  %v3511_v13 = vpack.c.bf16 %v3501_v51, %v3499_v20  ;;  %v3504_v11 = vadd.f32 %v3488_v8, %v3477_v34  ;;  %v3506_v47 = vadd.f32 %v3488_v8, %v3479_v44 }
 0x3d3   :  { %3682 = vmatprep.mubr.bf16.mxu0 %v3508_v5  ;;  %3698 = vmatprep.mubr.bf16.mxu1 %v3512_v2  ;;  %v3510_v40 = vpack.c.bf16 %v3498_v46, %v3496_v39  ;;  %v3495_v19 = vadd.f32 %v3484_v16, %v3468_v0  ;;  %v3497_v36 = vadd.f32 %v3484_v16, %v3470_v28 }
 0x3d4   :  { %3683 = vmatmul.mubr.bf16.vlgmr.msra.gmra.mxu0 %v3507_v1  ;;  %3699 = vmatmul.mubr.bf16.vlgmr.msra.gmra.mxu1 %v3511_v13  ;;  %v3514_v15 = vpack.c.bf16 %v3506_v47, %v3504_v11  ;;  %v3503_v30 = vadd.f32 %v3484_v16, %v3476_v49  ;;  %v3505_v42 = vadd.f32 %v3484_v16, %v3478_v17 }
 0x3d5   :  { %3690 = vmatprep.mubr.bf16.mxu0 %v3510_v40  ;;  %v3509_v23 = vpack.c.bf16 %v3497_v36, %v3495_v19 }
 0x3d6   :  { %3706 = vmatprep.mubr.bf16.mxu1 %v3514_v15  ;;  %v3513_v12 = vpack.c.bf16 %v3505_v42, %v3503_v30 }
 0x3dc   :  { %3691 = vmatmul.mubr.bf16.gmra.mxu0 %v3509_v23  ;;  %3707 = vmatmul.mubr.bf16.gmra.mxu1 %v3513_v12 }
 0x494   :  { %v4096_v21 = vpop.f32.mrf.mxu0  ;;  %v4108_v29 = vpop.f32.mrf.mxu1 }
 0x496   :  { %v4097_v18 = vpop.f32.mrf.mxu0  ;;  %v4109_v4 = vpop.f32.mrf.mxu1 }
 0x497   :  { %v4098_v48 = vadd.f32 %v4097_v18, %v4096_v21  ;;  %v4110_v25 = vadd.f32 %v4109_v4, %v4108_v29 }
 0x498   :  { %v4099_v62 = vpop.f32.mrf.mxu0  ;;  %v4111_v38 = vpop.f32.mrf.mxu1 }
 0x499   :  { %v3685_v58 = vadd.f32 %v4098_v48, %v4063_v14  ;;  %v3701_v31 = vadd.f32 %v4110_v25, %v4063_v14 }
 0x49a   :  { %v4100_v50 = vpop.f32.mrf.mxu0  ;;  %v4112_v27 = vpop.f32.mrf.mxu1 }
 0x49b   :  { %3715 = vst [vmem:[#allocation13] sm:$0xff] %v3685_v58  ;;  %3719 = vst [vmem:[#allocation13 + $0x20] sm:$0xff] %v3701_v31  ;;  %v4101_v7 = vadd.f32 %v4100_v50, %v4099_v62  ;;  %v4113_v61 = vadd.f32 %v4112_v27, %v4111_v38 }
 0x49c   :  { %v4102_v9 = vpop.f32.mrf.mxu0  ;;  %v4114_v55 = vpop.f32.mrf.mxu1 }
 0x49d   :  { %v3688_v53 = vadd.f32 %v4101_v7, %v4063_v14  ;;  %v3704_v60 = vadd.f32 %v4113_v61, %v4063_v14 }
 0x49e   :  { %v4103_v33 = vpop.f32.mrf.mxu0  ;;  %v4115_v54 = vpop.f32.mrf.mxu1 }
 0x49f   :  { %3716 = vst [vmem:[#allocation13 + $0x8] sm:$0xff] %v3688_v53  ;;  %3720 = vst [vmem:[#allocation13 + $0x28] sm:$0xff] %v3704_v60  ;;  %v4104_v44 = vadd.f32 %v4103_v33, %v4102_v9  ;;  %v4116_v10 = vadd.f32 %v4115_v54, %v4114_v55 }
 0x4a0   :  { %v4105_v41 = vpop.f32.mrf.mxu0  ;;  %v4117_v37 = vpop.f32.mrf.mxu1 }
 0x4a1   :  { %v3693_v52 = vadd.f32 %v4104_v44, %v4063_v14  ;;  %v3709_v59 = vadd.f32 %v4116_v10, %v4063_v14 }
 0x4a2   :  { %v4106_v3 = vpop.f32.mrf.mxu0  ;;  %v4118_v16 = vpop.f32.mrf.mxu1 }
 0x4a3   :  { %3717 = vst [vmem:[#allocation13 + $0x10] sm:$0xff] %v3693_v52  ;;  %3721 = vst [vmem:[#allocation13 + $0x30] sm:$0xff] %v3709_v59  ;;  %v4107_v8 = vadd.f32 %v4106_v3, %v4105_v41  ;;  %v4119_v45 = vadd.f32 %v4118_v16, %v4117_v37 }
 0x4a5   :  { %v3696_v26 = vadd.f32 %v4107_v8, %v4063_v14  ;;  %v3712_v63 = vadd.f32 %v4119_v45, %v4063_v14 }
 0x4a7   :  { %3718 = vst [vmem:[#allocation13 + $0x18] sm:$0xff] %v3696_v26  ;;  %3722 = vst [vmem:[#allocation13 + $0x38] sm:$0xff] %v3712_v63 }
 0x4a8   :  { %4790 = shalt.err (!%p4787_p6)
}
 0x4a9   :  { %3734 = dma.vmem_to_hbm [thread:$0]  %s3729_s15, 1024, %s5751_s11, [#allocation4], %s4818_s0, %s4818_s0, %s4819_s23  }
 0x4aa   :  { %4807 = dma.done.wait [#allocation4], 1024  }
 0x4ab   :  { %4808 = vsyncadd [#allocation4], 4294966272 }
 0x4ac   :  { %3738 = vsyncpa [#allocation3], 1 }
 0x4ad   :  { %3739 = vsyncpa [#allocation6], 1 }
 0x4ae   :  { %3740 = vsyncpa [#allocation9], 1 }
 0x4af   :  { %3741 = vsyncpa [#allocation12], 1 }
 0x4b0   :  { %3742 = vsyncpa [#allocation4], 1 }

</bundles_post_ra>
